<compile_context>
chip_gen: v7x
topology: tpu7x:2x2x1
jax: 0.10.0
libtpu: 0.0.40
codegen_flags: <defaults>
</compile_context>

<pallas_src>
import functools

import jax
import jax.numpy as jnp
import numpy as np
from jax.experimental import pallas as pl
from jax.experimental.pallas import tpu as pltpu

_VMEM_LIMIT = 64 * 1024 * 1024


# ----------------------------------------------------------------------------
# Fused kernel: %3 pad + MaxPool(3,2,1) + DoubleConv, one sample per grid step.
# ----------------------------------------------------------------------------
def _encoder_kernel(x_ref, w1_ref, b1_ref, g1_ref, bt1_ref,
                    w2_ref, b2_ref, g2_ref, bt2_ref,
                    o_ref,
                    xpad_ref, cmax_ref, pool_ref, p1_ref, p2_ref,
                    *, xd, yd, eps):
    # x_ref:    (1, H, W, Cin)       raw NHWC sample
    # w*_ref:   (9*Cin, Cout) bf16   conv weights, rows ordered (kh, kw, cin)
    # b*/g*/bt*: (1, C) f32          conv bias / GN gamma / GN beta
    # o_ref:    (1, Ho*Wo, C2) f32
    # xpad_ref: (Hp+2, Wp+2, Cin)    VMEM: %3 zero pad + -inf pool halo
    # cmax_ref: (Hp+2, Wo, Cin)      VMEM: separable column max
    # pool_ref: (Ho, Wo, Cin)        VMEM: pooled activation
    # p1/p2:    (Ho*Wo, 9*C) bf16    VMEM: im2col patches for conv1 / conv2
    _, H, W, Cin = x_ref.shape
    Hp, Wp = H + xd, W + yd
    Ho, Wo, _ = pool_ref.shape
    C1 = w1_ref.shape[1]

    # ---------- %3 zero pad + MaxPool2d(3, stride=2, pad=1), all in VMEM ----
    # Border of -inf (MaxPool2d padding), trailing %3-pad rows/cols of 0.
    xpad_ref[...] = jnp.full(xpad_ref.shape, -jnp.inf, dtype=xpad_ref.dtype)
    if xd > 0:
        xpad_ref[pl.ds(H + 1, xd), pl.ds(1, Wp), :] = jnp.zeros(
            (xd, Wp, Cin), xpad_ref.dtype)
    if yd > 0:
        xpad_ref[pl.ds(1, Hp), pl.ds(W + 1, yd), :] = jnp.zeros(
            (Hp, yd, Cin), xpad_ref.dtype)
    xpad_ref[pl.ds(1, H), pl.ds(1, W), :] = x_ref[0]

    # Separable 3x3 max with the stride-2 subsample folded into strided reads:
    # 4 maxima total, no stride-1 intermediate map is materialized.
    cmax_ref[...] = jnp.maximum(
        jnp.maximum(xpad_ref[:, pl.ds(0, Wo, stride=2), :],
                    xpad_ref[:, pl.ds(1, Wo, stride=2), :]),
        xpad_ref[:, pl.ds(2, Wo, stride=2), :])
    pool_ref[...] = jnp.maximum(
        jnp.maximum(cmax_ref[pl.ds(0, Ho, stride=2)],
                    cmax_ref[pl.ds(1, Ho, stride=2)]),
        cmax_ref[pl.ds(2, Ho, stride=2)])

    # ---------- DoubleConv = (conv3x3 pad=1 -> ReLU -> GroupNorm(1, C)) x 2 -
    def fill_patches(p_ref, get_row, C):
        # p_ref[h*Wo + w, (kh*3 + kw)*C + c] = act[h + kh - 1, w + kw - 1, c]
        # (zero-padded 3x3 neighbourhood).  W-padded rows are built once and
        # reused across the three kh offsets.
        zero_row = jnp.zeros((Wo + 2, C), jnp.float32)
        zero_col = jnp.zeros((1, C), jnp.float32)
        rows = [zero_row] + [
            jnp.concatenate([zero_col, get_row(r), zero_col], axis=0)
            for r in range(Ho)] + [zero_row]
        for h in range(Ho):
            pieces = []
            for kh in range(3):
                rowp = rows[h + kh]                       # (Wo+2, C)
                pieces.extend(rowp[kw:kw + Wo, :] for kw in range(3))
            p_ref[pl.ds(h * Wo, Wo), :] = jnp.concatenate(
                pieces, axis=-1).astype(p_ref.dtype)

    def conv_relu_stats(p_ref, w_ref, b_ref):
        # One bf16 MXU matmul over the in-VMEM patches (+ bias + ReLU) and a
        # single-pass GroupNorm(1, C): mean / rstd from sum and sum-of-squares.
        y = jnp.dot(p_ref[...], w_ref[...], preferred_element_type=jnp.float32)
        y = jnp.maximum(y + b_ref[...], 0.0)
        cnt = float(y.shape[0] * y.shape[1])
        mean = jnp.sum(y) / cnt
        var = jnp.sum(y * y) / cnt - mean * mean
        return y, mean, jax.lax.rsqrt(var + eps)

    # ---- conv1 + ReLU + GN1 -------------------------------------------------
    fill_patches(p1_ref, lambda r: pool_ref[r].astype(jnp.float32), Cin)
    y1, m1, r1 = conv_relu_stats(p1_ref, w1_ref, b1_ref)
    a1 = r1 * g1_ref[...]               # (1, C1) folded GN scale
    c1 = bt1_ref[...] - m1 * a1         # (1, C1) folded GN shift

    # ---- conv2 + ReLU + GN2 (intermediate never leaves VMEM) ----------------
    fill_patches(p2_ref, lambda r: y1[r * Wo:(r + 1) * Wo, :] * a1 + c1, C1)
    y2, m2, r2 = conv_relu_stats(p2_ref, w2_ref, b2_ref)
    a2 = r2 * g2_ref[...]
    c2 = bt2_ref[...] - m2 * a2
    o_ref[0] = (y2 * a2 + c2).astype(o_ref.dtype)


# ----------------------------------------------------------------------------
# Encoder forward
# ----------------------------------------------------------------------------
def encoder_forward(x_nchw, params, eps=1e-5):
    """x: (N, Cin, H, W) NCHW f32 -> (N, Cout, Ho, Wo) NCHW f32."""
    # TODO(synk): the two boundary layout transposes exist only because the
    # module's external contract is NCHW; a channels-last model would drop them.
    x = jnp.transpose(x_nchw, (0, 2, 3, 1))            # NCHW -> NHWC
    N, H, W, Cin = x.shape
    xd, yd = H % 3, W % 3
    Hp, Wp = H + xd, W + yd
    Ho = (Hp - 1) // 2 + 1
    Wo = (Wp - 1) // 2 + 1
    P = Ho * Wo

    w1, w2 = params["w1"], params["w2"]
    C1, C2 = w1.shape[0], w2.shape[0]

    def wmat(w):  # (Cout, Cin, 3, 3) -> (9*Cin, Cout), rows ordered (kh, kw, cin)
        return (jnp.transpose(w, (2, 3, 1, 0))
                .reshape(9 * w.shape[1], w.shape[0]).astype(jnp.bfloat16))

    def row(v):
        return v.reshape(1, -1).astype(jnp.float32)

    wm1, wm2 = wmat(w1), wmat(w2)
    b1, g1, bt1 = row(params["b1"]), row(params["g1"]), row(params["bt1"])
    b2, g2, bt2 = row(params["b2"]), row(params["g2"]), row(params["bt2"])

    def bcast_spec(shape):
        return pl.BlockSpec(shape, lambda n: (0,) * len(shape))

    out = pl.pallas_call(
        functools.partial(_encoder_kernel, xd=xd, yd=yd, eps=eps),
        out_shape=jax.ShapeDtypeStruct((N, P, C2), jnp.float32),
        grid_spec=pltpu.PrefetchScalarGridSpec(
            num_scalar_prefetch=0,
            grid=(N,),
            in_specs=[
                pl.BlockSpec((1, H, W, Cin), lambda n: (n, 0, 0, 0)),
                bcast_spec((9 * Cin, C1)),
                bcast_spec((1, C1)), bcast_spec((1, C1)), bcast_spec((1, C1)),
                bcast_spec((9 * C1, C2)),
                bcast_spec((1, C2)), bcast_spec((1, C2)), bcast_spec((1, C2)),
            ],
            out_specs=pl.BlockSpec((1, P, C2), lambda n: (n, 0, 0)),
            scratch_shapes=[
                pltpu.VMEM((Hp + 2, Wp + 2, Cin), x.dtype),   # padded image
                pltpu.VMEM((Hp + 2, Wo, Cin), x.dtype),       # column max
                pltpu.VMEM((Ho, Wo, Cin), x.dtype),           # pooled act
                pltpu.VMEM((P, 9 * Cin), jnp.bfloat16),       # conv1 patches
                pltpu.VMEM((P, 9 * C1), jnp.bfloat16),        # conv2 patches
            ],
        ),
        compiler_params=pltpu.CompilerParams(
            dimension_semantics=("parallel",),
            vmem_limit_bytes=_VMEM_LIMIT,
        ),
    )(x, wm1, b1, g1, bt1, wm2, b2, g2, bt2)

    out = out.reshape(N, Ho, Wo, C2)       # free reshape: (N, P, C2) contiguous
    return jnp.transpose(out, (0, 3, 1, 2))             # NHWC -> NCHW


# ----------------------------------------------------------------------------
# Pure-JAX reference (for correctness check)
# ----------------------------------------------------------------------------
def encoder_reference(x, params):
    N, C, H, W = x.shape
    xd, yd = H % 3, W % 3
    if xd + yd != 0:
        x = jnp.pad(x, ((0, 0), (0, 0), (0, xd), (0, yd)))
    x = jax.lax.reduce_window(x, -jnp.inf, jax.lax.max,
                              (1, 1, 3, 3), (1, 1, 2, 2),
                              ((0, 0), (0, 0), (1, 1), (1, 1)))

    def block(x, w, b, g, bt):
        y = jax.lax.conv_general_dilated(
            x, w, (1, 1), ((1, 1), (1, 1)),
            dimension_numbers=("NCHW", "OIHW", "NCHW"))
        y = y + b.reshape(1, -1, 1, 1)
        y = jnp.maximum(y, 0.0)
        mean = jnp.mean(y, axis=(1, 2, 3), keepdims=True)
        var = jnp.mean((y - mean) ** 2, axis=(1, 2, 3), keepdims=True)
        y = (y - mean) * jax.lax.rsqrt(var + 1e-5)
        return y * g.reshape(1, -1, 1, 1) + bt.reshape(1, -1, 1, 1)

    x = block(x, params["w1"], params["b1"], params["g1"], params["bt1"])
    x = block(x, params["w2"], params["b2"], params["g2"], params["bt2"])
    return x


# ----------------------------------------------------------------------------
def make_params(key, in_channels, out_channels):
    # DoubleConv channel split
    if in_channels < out_channels:
        c1_in, c1_out = in_channels, out_channels // 2
        c2_in, c2_out = c1_out, out_channels
    else:
        c1_in, c1_out = in_channels, out_channels
        c2_in, c2_out = out_channels, out_channels
    ks = jax.random.split(key, 8)
    return {
        "w1": 0.2 * jax.random.normal(ks[0], (c1_out, c1_in, 3, 3), jnp.float32),
        "b1": 0.1 * jax.random.normal(ks[1], (c1_out,), jnp.float32),
        "g1": 1.0 + 0.1 * jax.random.normal(ks[2], (c1_out,), jnp.float32),
        "bt1": 0.1 * jax.random.normal(ks[3], (c1_out,), jnp.float32),
        "w2": 0.2 * jax.random.normal(ks[4], (c2_out, c2_in, 3, 3), jnp.float32),
        "b2": 0.1 * jax.random.normal(ks[5], (c2_out,), jnp.float32),
        "g2": 1.0 + 0.1 * jax.random.normal(ks[6], (c2_out,), jnp.float32),
        "bt2": 0.1 * jax.random.normal(ks[7], (c2_out,), jnp.float32),
    }


if __name__ == "__main__":
    key = jax.random.PRNGKey(0)
    kx, kp = jax.random.split(key)

    N, Cin, H, W = 2, 4, 16, 16
    Cout = 8
    x = jax.random.normal(kx, (N, Cin, H, W), dtype=jnp.float32)
    params = make_params(kp, Cin, Cout)

    out = jax.block_until_ready(encoder_forward(x, params))
    ref = jax.block_until_ready(encoder_reference(x, params))
    assert out.shape == ref.shape, (out.shape, ref.shape)
    # bf16 MXU operands in the kernel vs a pure-f32 reference -> loose-ish
    # tolerance; a real indexing / GroupNorm bug would be O(1) off and still fail.
    np.testing.assert_allclose(np.asarray(out), np.asarray(ref), atol=1e-1, rtol=1e-1)
    print("KERNEL_OK")
</pallas_src>

<mosaic_0001>
module attributes {stable_mosaic.version = 11 : i64} {
  func.func @_encoder_kernel(%arg0: i32, %arg1: memref<1x16x16x4xf32, #tpu.memory_space<vmem>>, %arg2: memref<36x4xbf16, #tpu.memory_space<vmem>>, %arg3: memref<1x4xf32, #tpu.memory_space<vmem>>, %arg4: memref<1x4xf32, #tpu.memory_space<vmem>>, %arg5: memref<1x4xf32, #tpu.memory_space<vmem>>, %arg6: memref<36x8xbf16, #tpu.memory_space<vmem>>, %arg7: memref<1x8xf32, #tpu.memory_space<vmem>>, %arg8: memref<1x8xf32, #tpu.memory_space<vmem>>, %arg9: memref<1x8xf32, #tpu.memory_space<vmem>>, %arg10: memref<1x81x8xf32, #tpu.memory_space<vmem>>, %arg11: memref<19x19x4xf32, #tpu.memory_space<vmem>>, %arg12: memref<19x9x4xf32, #tpu.memory_space<vmem>>, %arg13: memref<9x9x4xf32, #tpu.memory_space<vmem>>, %arg14: memref<81x36xbf16, #tpu.memory_space<vmem>>, %arg15: memref<81x36xbf16, #tpu.memory_space<vmem>>) attributes {dimension_semantics = [#tpu.dimension_semantics<parallel>], iteration_bounds = array<i64: 2>, scalar_prefetch = 0 : i64, scratch_operands = 5 : i64, tpu.core_type = #tpu.core_type<tc>, window_params = [{transform_indices = @transform_0, window_bounds = array<i64: 1, 16, 16, 4>}, {pipeline_mode = #tpu.pipeline_mode<synchronous>, transform_indices = @transform_1, window_bounds = array<i64: 36, 4>}, {pipeline_mode = #tpu.pipeline_mode<synchronous>, transform_indices = @transform_2, window_bounds = array<i64: 1, 4>}, {pipeline_mode = #tpu.pipeline_mode<synchronous>, transform_indices = @transform_3, window_bounds = array<i64: 1, 4>}, {pipeline_mode = #tpu.pipeline_mode<synchronous>, transform_indices = @transform_4, window_bounds = array<i64: 1, 4>}, {pipeline_mode = #tpu.pipeline_mode<synchronous>, transform_indices = @transform_5, window_bounds = array<i64: 36, 8>}, {pipeline_mode = #tpu.pipeline_mode<synchronous>, transform_indices = @transform_6, window_bounds = array<i64: 1, 8>}, {pipeline_mode = #tpu.pipeline_mode<synchronous>, transform_indices = @transform_7, window_bounds = array<i64: 1, 8>}, {pipeline_mode = #tpu.pipeline_mode<synchronous>, transform_indices = @transform_8, window_bounds = array<i64: 1, 8>}, {transform_indices = @transform_9, window_bounds = array<i64: 1, 81, 8>}]} {
    %cst = arith.constant 0xFF800000 : f32
    %0 = vector.broadcast %cst : f32 to vector<19x19x4xf32>
    %c0 = arith.constant 0 : index
    %c0_0 = arith.constant 0 : index
    %c0_1 = arith.constant 0 : index
    %1 = vector.load %arg11[%c0, %c0_0, %c0_1] : memref<19x19x4xf32, #tpu.memory_space<vmem>>, vector<19x19x4xf32>
    tpu.vector_store %arg11[%c0, %c0_0, %c0_1], %0 {strides = array<i32>} : memref<19x19x4xf32, #tpu.memory_space<vmem>>, vector<19x19x4xf32>,
    %cst_2 = arith.constant 0.000000e+00 : f32
    %2 = vector.broadcast %cst_2 : f32 to vector<1x17x4xf32>
    %c17 = arith.constant 17 : index
    %c1 = arith.constant 1 : index
    %c0_3 = arith.constant 0 : index
    %3 = vector.load %arg11[%c17, %c1, %c0_3] : memref<19x19x4xf32, #tpu.memory_space<vmem>>, vector<1x17x4xf32>
    tpu.vector_store %arg11[%c17, %c1, %c0_3], %2 {strides = array<i32>} : memref<19x19x4xf32, #tpu.memory_space<vmem>>, vector<1x17x4xf32>,
    %cst_4 = arith.constant 0.000000e+00 : f32
    %4 = vector.broadcast %cst_4 : f32 to vector<17x1x4xf32>
    %c1_5 = arith.constant 1 : index
    %c17_6 = arith.constant 17 : index
    %c0_7 = arith.constant 0 : index
    %5 = vector.load %arg11[%c1_5, %c17_6, %c0_7] : memref<19x19x4xf32, #tpu.memory_space<vmem>>, vector<17x1x4xf32>
    tpu.vector_store %arg11[%c1_5, %c17_6, %c0_7], %4 {strides = array<i32>} : memref<19x19x4xf32, #tpu.memory_space<vmem>>, vector<17x1x4xf32>,
    %c0_8 = arith.constant 0 : index
    %c0_9 = arith.constant 0 : index
    %c0_10 = arith.constant 0 : index
    %c0_11 = arith.constant 0 : index
    %6 = vector.load %arg1[%c0_8, %c0_9, %c0_10, %c0_11] : memref<1x16x16x4xf32, #tpu.memory_space<vmem>>, vector<1x16x16x4xf32>
    %7 = vector.shape_cast %6 : vector<1x16x16x4xf32> to vector<16x16x4xf32>
    %c1_12 = arith.constant 1 : index
    %c1_13 = arith.constant 1 : index
    %c0_14 = arith.constant 0 : index
    %8 = vector.load %arg11[%c1_12, %c1_13, %c0_14] : memref<19x19x4xf32, #tpu.memory_space<vmem>>, vector<16x16x4xf32>
    tpu.vector_store %arg11[%c1_12, %c1_13, %c0_14], %7 {strides = array<i32>} : memref<19x19x4xf32, #tpu.memory_space<vmem>>, vector<16x16x4xf32>,
    %c0_15 = arith.constant 0 : index
    %c0_16 = arith.constant 0 : index
    %c0_17 = arith.constant 0 : index
    %9 = tpu.strided_load %arg11[%c0_15, %c0_16, %c0_17] {strides = array<i32: 1, 2, 1>} : memref<19x19x4xf32, #tpu.memory_space<vmem>>, vector<19x9x4xf32>
    %c0_18 = arith.constant 0 : index
    %c1_19 = arith.constant 1 : index
    %c0_20 = arith.constant 0 : index
    %10 = tpu.strided_load %arg11[%c0_18, %c1_19, %c0_20] {strides = array<i32: 1, 2, 1>} : memref<19x19x4xf32, #tpu.memory_space<vmem>>, vector<19x9x4xf32>
    %11 = arith.maximumf %9, %10 : vector<19x9x4xf32>
    %c0_21 = arith.constant 0 : index
    %c2 = arith.constant 2 : index
    %c0_22 = arith.constant 0 : index
    %12 = tpu.strided_load %arg11[%c0_21, %c2, %c0_22] {strides = array<i32: 1, 2, 1>} : memref<19x19x4xf32, #tpu.memory_space<vmem>>, vector<19x9x4xf32>
    %13 = arith.maximumf %11, %12 : vector<19x9x4xf32>
    %c0_23 = arith.constant 0 : index
    %c0_24 = arith.constant 0 : index
    %c0_25 = arith.constant 0 : index
    %14 = vector.load %arg12[%c0_23, %c0_24, %c0_25] : memref<19x9x4xf32, #tpu.memory_space<vmem>>, vector<19x9x4xf32>
    tpu.vector_store %arg12[%c0_23, %c0_24, %c0_25], %13 {strides = array<i32>} : memref<19x9x4xf32, #tpu.memory_space<vmem>>, vector<19x9x4xf32>,
    %c0_26 = arith.constant 0 : index
    %c0_27 = arith.constant 0 : index
    %c0_28 = arith.constant 0 : index
    %15 = tpu.strided_load %arg12[%c0_26, %c0_27, %c0_28] {strides = array<i32: 2, 1, 1>} : memref<19x9x4xf32, #tpu.memory_space<vmem>>, vector<9x9x4xf32>
    %c1_29 = arith.constant 1 : index
    %c0_30 = arith.constant 0 : index
    %c0_31 = arith.constant 0 : index
    %16 = tpu.strided_load %arg12[%c1_29, %c0_30, %c0_31] {strides = array<i32: 2, 1, 1>} : memref<19x9x4xf32, #tpu.memory_space<vmem>>, vector<9x9x4xf32>
    %17 = arith.maximumf %15, %16 : vector<9x9x4xf32>
    %c2_32 = arith.constant 2 : index
    %c0_33 = arith.constant 0 : index
    %c0_34 = arith.constant 0 : index
    %18 = tpu.strided_load %arg12[%c2_32, %c0_33, %c0_34] {strides = array<i32: 2, 1, 1>} : memref<19x9x4xf32, #tpu.memory_space<vmem>>, vector<9x9x4xf32>
    %19 = arith.maximumf %17, %18 : vector<9x9x4xf32>
    %c0_35 = arith.constant 0 : index
    %c0_36 = arith.constant 0 : index
    %c0_37 = arith.constant 0 : index
    %20 = vector.load %arg13[%c0_35, %c0_36, %c0_37] : memref<9x9x4xf32, #tpu.memory_space<vmem>>, vector<9x9x4xf32>
    tpu.vector_store %arg13[%c0_35, %c0_36, %c0_37], %19 {strides = array<i32>} : memref<9x9x4xf32, #tpu.memory_space<vmem>>, vector<9x9x4xf32>,
    %cst_38 = arith.constant 0.000000e+00 : f32
    %21 = vector.broadcast %cst_38 : f32 to vector<11x4xf32>
    %cst_39 = arith.constant 0.000000e+00 : f32
    %22 = vector.broadcast %cst_39 : f32 to vector<1x4xf32>
    %c0_40 = arith.constant 0 : index
    %c0_41 = arith.constant 0 : index
    %c0_42 = arith.constant 0 : index
    %23 = vector.load %arg13[%c0_40, %c0_41, %c0_42] : memref<9x9x4xf32, #tpu.memory_space<vmem>>, vector<1x9x4xf32>
    %24 = vector.shape_cast %23 : vector<1x9x4xf32> to vector<9x4xf32>
    %25 = tpu.concatenate %22, %24, %22 in 0 : vector<1x4xf32>, vector<9x4xf32>, vector<1x4xf32> -> vector<11x4xf32>
    %c1_43 = arith.constant 1 : index
    %c0_44 = arith.constant 0 : index
    %c0_45 = arith.constant 0 : index
    %26 = vector.load %arg13[%c1_43, %c0_44, %c0_45] : memref<9x9x4xf32, #tpu.memory_space<vmem>>, vector<1x9x4xf32>
    %27 = vector.shape_cast %26 : vector<1x9x4xf32> to vector<9x4xf32>
    %28 = tpu.concatenate %22, %27, %22 in 0 : vector<1x4xf32>, vector<9x4xf32>, vector<1x4xf32> -> vector<11x4xf32>
    %c2_46 = arith.constant 2 : index
    %c0_47 = arith.constant 0 : index
    %c0_48 = arith.constant 0 : index
    %29 = vector.load %arg13[%c2_46, %c0_47, %c0_48] : memref<9x9x4xf32, #tpu.memory_space<vmem>>, vector<1x9x4xf32>
    %30 = vector.shape_cast %29 : vector<1x9x4xf32> to vector<9x4xf32>
    %31 = tpu.concatenate %22, %30, %22 in 0 : vector<1x4xf32>, vector<9x4xf32>, vector<1x4xf32> -> vector<11x4xf32>
    %c3 = arith.constant 3 : index
    %c0_49 = arith.constant 0 : index
    %c0_50 = arith.constant 0 : index
    %32 = vector.load %arg13[%c3, %c0_49, %c0_50] : memref<9x9x4xf32, #tpu.memory_space<vmem>>, vector<1x9x4xf32>
    %33 = vector.shape_cast %32 : vector<1x9x4xf32> to vector<9x4xf32>
    %34 = tpu.concatenate %22, %33, %22 in 0 : vector<1x4xf32>, vector<9x4xf32>, vector<1x4xf32> -> vector<11x4xf32>
    %c4 = arith.constant 4 : index
    %c0_51 = arith.constant 0 : index
    %c0_52 = arith.constant 0 : index
    %35 = vector.load %arg13[%c4, %c0_51, %c0_52] : memref<9x9x4xf32, #tpu.memory_space<vmem>>, vector<1x9x4xf32>
    %36 = vector.shape_cast %35 : vector<1x9x4xf32> to vector<9x4xf32>
    %37 = tpu.concatenate %22, %36, %22 in 0 : vector<1x4xf32>, vector<9x4xf32>, vector<1x4xf32> -> vector<11x4xf32>
    %c5 = arith.constant 5 : index
    %c0_53 = arith.constant 0 : index
    %c0_54 = arith.constant 0 : index
    %38 = vector.load %arg13[%c5, %c0_53, %c0_54] : memref<9x9x4xf32, #tpu.memory_space<vmem>>, vector<1x9x4xf32>
    %39 = vector.shape_cast %38 : vector<1x9x4xf32> to vector<9x4xf32>
    %40 = tpu.concatenate %22, %39, %22 in 0 : vector<1x4xf32>, vector<9x4xf32>, vector<1x4xf32> -> vector<11x4xf32>
    %c6 = arith.constant 6 : index
    %c0_55 = arith.constant 0 : index
    %c0_56 = arith.constant 0 : index
    %41 = vector.load %arg13[%c6, %c0_55, %c0_56] : memref<9x9x4xf32, #tpu.memory_space<vmem>>, vector<1x9x4xf32>
    %42 = vector.shape_cast %41 : vector<1x9x4xf32> to vector<9x4xf32>
    %43 = tpu.concatenate %22, %42, %22 in 0 : vector<1x4xf32>, vector<9x4xf32>, vector<1x4xf32> -> vector<11x4xf32>
    %c7 = arith.constant 7 : index
    %c0_57 = arith.constant 0 : index
    %c0_58 = arith.constant 0 : index
    %44 = vector.load %arg13[%c7, %c0_57, %c0_58] : memref<9x9x4xf32, #tpu.memory_space<vmem>>, vector<1x9x4xf32>
    %45 = vector.shape_cast %44 : vector<1x9x4xf32> to vector<9x4xf32>
    %46 = tpu.concatenate %22, %45, %22 in 0 : vector<1x4xf32>, vector<9x4xf32>, vector<1x4xf32> -> vector<11x4xf32>
    %c8 = arith.constant 8 : index
    %c0_59 = arith.constant 0 : index
    %c0_60 = arith.constant 0 : index
    %47 = vector.load %arg13[%c8, %c0_59, %c0_60] : memref<9x9x4xf32, #tpu.memory_space<vmem>>, vector<1x9x4xf32>
    %48 = vector.shape_cast %47 : vector<1x9x4xf32> to vector<9x4xf32>
    %49 = tpu.concatenate %22, %48, %22 in 0 : vector<1x4xf32>, vector<9x4xf32>, vector<1x4xf32> -> vector<11x4xf32>
    %50 = vector.extract_strided_slice %21 {offsets = [0, 0], sizes = [9, 4], strides = [1, 1]} : vector<11x4xf32> to vector<9x4xf32>
    %51 = vector.extract_strided_slice %21 {offsets = [1, 0], sizes = [9, 4], strides = [1, 1]} : vector<11x4xf32> to vector<9x4xf32>
    %52 = vector.extract_strided_slice %21 {offsets = [2, 0], sizes = [9, 4], strides = [1, 1]} : vector<11x4xf32> to vector<9x4xf32>
    %53 = vector.extract_strided_slice %25 {offsets = [0, 0], sizes = [9, 4], strides = [1, 1]} : vector<11x4xf32> to vector<9x4xf32>
    %54 = vector.extract_strided_slice %25 {offsets = [1, 0], sizes = [9, 4], strides = [1, 1]} : vector<11x4xf32> to vector<9x4xf32>
    %55 = vector.extract_strided_slice %25 {offsets = [2, 0], sizes = [9, 4], strides = [1, 1]} : vector<11x4xf32> to vector<9x4xf32>
    %56 = vector.extract_strided_slice %28 {offsets = [0, 0], sizes = [9, 4], strides = [1, 1]} : vector<11x4xf32> to vector<9x4xf32>
    %57 = vector.extract_strided_slice %28 {offsets = [1, 0], sizes = [9, 4], strides = [1, 1]} : vector<11x4xf32> to vector<9x4xf32>
    %58 = vector.extract_strided_slice %28 {offsets = [2, 0], sizes = [9, 4], strides = [1, 1]} : vector<11x4xf32> to vector<9x4xf32>
    %59 = tpu.concatenate %50, %51, %52, %53, %54, %55, %56, %57, %58 in 1 : vector<9x4xf32>, vector<9x4xf32>, vector<9x4xf32>, vector<9x4xf32>, vector<9x4xf32>, vector<9x4xf32>, vector<9x4xf32>, vector<9x4xf32>, vector<9x4xf32> -> vector<9x36xf32>
    %60 = arith.truncf %59 : vector<9x36xf32> to vector<9x36xbf16>
    %c0_61 = arith.constant 0 : index
    %c0_62 = arith.constant 0 : index
    %61 = vector.load %arg14[%c0_61, %c0_62] : memref<81x36xbf16, #tpu.memory_space<vmem>>, vector<9x36xbf16>
    tpu.vector_store %arg14[%c0_61, %c0_62], %60 {strides = array<i32>} : memref<81x36xbf16, #tpu.memory_space<vmem>>, vector<9x36xbf16>,
    %62 = vector.extract_strided_slice %25 {offsets = [0, 0], sizes = [9, 4], strides = [1, 1]} : vector<11x4xf32> to vector<9x4xf32>
    %63 = vector.extract_strided_slice %25 {offsets = [1, 0], sizes = [9, 4], strides = [1, 1]} : vector<11x4xf32> to vector<9x4xf32>
    %64 = vector.extract_strided_slice %25 {offsets = [2, 0], sizes = [9, 4], strides = [1, 1]} : vector<11x4xf32> to vector<9x4xf32>
    %65 = vector.extract_strided_slice %28 {offsets = [0, 0], sizes = [9, 4], strides = [1, 1]} : vector<11x4xf32> to vector<9x4xf32>
    %66 = vector.extract_strided_slice %28 {offsets = [1, 0], sizes = [9, 4], strides = [1, 1]} : vector<11x4xf32> to vector<9x4xf32>
    %67 = vector.extract_strided_slice %28 {offsets = [2, 0], sizes = [9, 4], strides = [1, 1]} : vector<11x4xf32> to vector<9x4xf32>
    %68 = vector.extract_strided_slice %31 {offsets = [0, 0], sizes = [9, 4], strides = [1, 1]} : vector<11x4xf32> to vector<9x4xf32>
    %69 = vector.extract_strided_slice %31 {offsets = [1, 0], sizes = [9, 4], strides = [1, 1]} : vector<11x4xf32> to vector<9x4xf32>
    %70 = vector.extract_strided_slice %31 {offsets = [2, 0], sizes = [9, 4], strides = [1, 1]} : vector<11x4xf32> to vector<9x4xf32>
    %71 = tpu.concatenate %62, %63, %64, %65, %66, %67, %68, %69, %70 in 1 : vector<9x4xf32>, vector<9x4xf32>, vector<9x4xf32>, vector<9x4xf32>, vector<9x4xf32>, vector<9x4xf32>, vector<9x4xf32>, vector<9x4xf32>, vector<9x4xf32> -> vector<9x36xf32>
    %72 = arith.truncf %71 : vector<9x36xf32> to vector<9x36xbf16>
    %c9 = arith.constant 9 : index
    %c0_63 = arith.constant 0 : index
    %73 = vector.load %arg14[%c9, %c0_63] : memref<81x36xbf16, #tpu.memory_space<vmem>>, vector<9x36xbf16>
    tpu.vector_store %arg14[%c9, %c0_63], %72 {strides = array<i32>} : memref<81x36xbf16, #tpu.memory_space<vmem>>, vector<9x36xbf16>,
    %74 = vector.extract_strided_slice %28 {offsets = [0, 0], sizes = [9, 4], strides = [1, 1]} : vector<11x4xf32> to vector<9x4xf32>
    %75 = vector.extract_strided_slice %28 {offsets = [1, 0], sizes = [9, 4], strides = [1, 1]} : vector<11x4xf32> to vector<9x4xf32>
    %76 = vector.extract_strided_slice %28 {offsets = [2, 0], sizes = [9, 4], strides = [1, 1]} : vector<11x4xf32> to vector<9x4xf32>
    %77 = vector.extract_strided_slice %31 {offsets = [0, 0], sizes = [9, 4], strides = [1, 1]} : vector<11x4xf32> to vector<9x4xf32>
    %78 = vector.extract_strided_slice %31 {offsets = [1, 0], sizes = [9, 4], strides = [1, 1]} : vector<11x4xf32> to vector<9x4xf32>
    %79 = vector.extract_strided_slice %31 {offsets = [2, 0], sizes = [9, 4], strides = [1, 1]} : vector<11x4xf32> to vector<9x4xf32>
    %80 = vector.extract_strided_slice %34 {offsets = [0, 0], sizes = [9, 4], strides = [1, 1]} : vector<11x4xf32> to vector<9x4xf32>
    %81 = vector.extract_strided_slice %34 {offsets = [1, 0], sizes = [9, 4], strides = [1, 1]} : vector<11x4xf32> to vector<9x4xf32>
    %82 = vector.extract_strided_slice %34 {offsets = [2, 0], sizes = [9, 4], strides = [1, 1]} : vector<11x4xf32> to vector<9x4xf32>
    %83 = tpu.concatenate %74, %75, %76, %77, %78, %79, %80, %81, %82 in 1 : vector<9x4xf32>, vector<9x4xf32>, vector<9x4xf32>, vector<9x4xf32>, vector<9x4xf32>, vector<9x4xf32>, vector<9x4xf32>, vector<9x4xf32>, vector<9x4xf32> -> vector<9x36xf32>
    %84 = arith.truncf %83 : vector<9x36xf32> to vector<9x36xbf16>
    %c18 = arith.constant 18 : index
    %c0_64 = arith.constant 0 : index
    %85 = vector.load %arg14[%c18, %c0_64] : memref<81x36xbf16, #tpu.memory_space<vmem>>, vector<9x36xbf16>
    tpu.vector_store %arg14[%c18, %c0_64], %84 {strides = array<i32>} : memref<81x36xbf16, #tpu.memory_space<vmem>>, vector<9x36xbf16>,
    %86 = vector.extract_strided_slice %31 {offsets = [0, 0], sizes = [9, 4], strides = [1, 1]} : vector<11x4xf32> to vector<9x4xf32>
    %87 = vector.extract_strided_slice %31 {offsets = [1, 0], sizes = [9, 4], strides = [1, 1]} : vector<11x4xf32> to vector<9x4xf32>
    %88 = vector.extract_strided_slice %31 {offsets = [2, 0], sizes = [9, 4], strides = [1, 1]} : vector<11x4xf32> to vector<9x4xf32>
    %89 = vector.extract_strided_slice %34 {offsets = [0, 0], sizes = [9, 4], strides = [1, 1]} : vector<11x4xf32> to vector<9x4xf32>
    %90 = vector.extract_strided_slice %34 {offsets = [1, 0], sizes = [9, 4], strides = [1, 1]} : vector<11x4xf32> to vector<9x4xf32>
    %91 = vector.extract_strided_slice %34 {offsets = [2, 0], sizes = [9, 4], strides = [1, 1]} : vector<11x4xf32> to vector<9x4xf32>
    %92 = vector.extract_strided_slice %37 {offsets = [0, 0], sizes = [9, 4], strides = [1, 1]} : vector<11x4xf32> to vector<9x4xf32>
    %93 = vector.extract_strided_slice %37 {offsets = [1, 0], sizes = [9, 4], strides = [1, 1]} : vector<11x4xf32> to vector<9x4xf32>
    %94 = vector.extract_strided_slice %37 {offsets = [2, 0], sizes = [9, 4], strides = [1, 1]} : vector<11x4xf32> to vector<9x4xf32>
    %95 = tpu.concatenate %86, %87, %88, %89, %90, %91, %92, %93, %94 in 1 : vector<9x4xf32>, vector<9x4xf32>, vector<9x4xf32>, vector<9x4xf32>, vector<9x4xf32>, vector<9x4xf32>, vector<9x4xf32>, vector<9x4xf32>, vector<9x4xf32> -> vector<9x36xf32>
    %96 = arith.truncf %95 : vector<9x36xf32> to vector<9x36xbf16>
    %c27 = arith.constant 27 : index
    %c0_65 = arith.constant 0 : index
    %97 = vector.load %arg14[%c27, %c0_65] : memref<81x36xbf16, #tpu.memory_space<vmem>>, vector<9x36xbf16>
    tpu.vector_store %arg14[%c27, %c0_65], %96 {strides = array<i32>} : memref<81x36xbf16, #tpu.memory_space<vmem>>, vector<9x36xbf16>,
    %98 = vector.extract_strided_slice %34 {offsets = [0, 0], sizes = [9, 4], strides = [1, 1]} : vector<11x4xf32> to vector<9x4xf32>
    %99 = vector.extract_strided_slice %34 {offsets = [1, 0], sizes = [9, 4], strides = [1, 1]} : vector<11x4xf32> to vector<9x4xf32>
    %100 = vector.extract_strided_slice %34 {offsets = [2, 0], sizes = [9, 4], strides = [1, 1]} : vector<11x4xf32> to vector<9x4xf32>
    %101 = vector.extract_strided_slice %37 {offsets = [0, 0], sizes = [9, 4], strides = [1, 1]} : vector<11x4xf32> to vector<9x4xf32>
    %102 = vector.extract_strided_slice %37 {offsets = [1, 0], sizes = [9, 4], strides = [1, 1]} : vector<11x4xf32> to vector<9x4xf32>
    %103 = vector.extract_strided_slice %37 {offsets = [2, 0], sizes = [9, 4], strides = [1, 1]} : vector<11x4xf32> to vector<9x4xf32>
    %104 = vector.extract_strided_slice %40 {offsets = [0, 0], sizes = [9, 4], strides = [1, 1]} : vector<11x4xf32> to vector<9x4xf32>
    %105 = vector.extract_strided_slice %40 {offsets = [1, 0], sizes = [9, 4], strides = [1, 1]} : vector<11x4xf32> to vector<9x4xf32>
    %106 = vector.extract_strided_slice %40 {offsets = [2, 0], sizes = [9, 4], strides = [1, 1]} : vector<11x4xf32> to vector<9x4xf32>
    %107 = tpu.concatenate %98, %99, %100, %101, %102, %103, %104, %105, %106 in 1 : vector<9x4xf32>, vector<9x4xf32>, vector<9x4xf32>, vector<9x4xf32>, vector<9x4xf32>, vector<9x4xf32>, vector<9x4xf32>, vector<9x4xf32>, vector<9x4xf32> -> vector<9x36xf32>
    %108 = arith.truncf %107 : vector<9x36xf32> to vector<9x36xbf16>
    %c36 = arith.constant 36 : index
    %c0_66 = arith.constant 0 : index
    %109 = vector.load %arg14[%c36, %c0_66] : memref<81x36xbf16, #tpu.memory_space<vmem>>, vector<9x36xbf16>
    tpu.vector_store %arg14[%c36, %c0_66], %108 {strides = array<i32>} : memref<81x36xbf16, #tpu.memory_space<vmem>>, vector<9x36xbf16>,
    %110 = vector.extract_strided_slice %37 {offsets = [0, 0], sizes = [9, 4], strides = [1, 1]} : vector<11x4xf32> to vector<9x4xf32>
    %111 = vector.extract_strided_slice %37 {offsets = [1, 0], sizes = [9, 4], strides = [1, 1]} : vector<11x4xf32> to vector<9x4xf32>
    %112 = vector.extract_strided_slice %37 {offsets = [2, 0], sizes = [9, 4], strides = [1, 1]} : vector<11x4xf32> to vector<9x4xf32>
    %113 = vector.extract_strided_slice %40 {offsets = [0, 0], sizes = [9, 4], strides = [1, 1]} : vector<11x4xf32> to vector<9x4xf32>
    %114 = vector.extract_strided_slice %40 {offsets = [1, 0], sizes = [9, 4], strides = [1, 1]} : vector<11x4xf32> to vector<9x4xf32>
    %115 = vector.extract_strided_slice %40 {offsets = [2, 0], sizes = [9, 4], strides = [1, 1]} : vector<11x4xf32> to vector<9x4xf32>
    %116 = vector.extract_strided_slice %43 {offsets = [0, 0], sizes = [9, 4], strides = [1, 1]} : vector<11x4xf32> to vector<9x4xf32>
    %117 = vector.extract_strided_slice %43 {offsets = [1, 0], sizes = [9, 4], strides = [1, 1]} : vector<11x4xf32> to vector<9x4xf32>
    %118 = vector.extract_strided_slice %43 {offsets = [2, 0], sizes = [9, 4], strides = [1, 1]} : vector<11x4xf32> to vector<9x4xf32>
    %119 = tpu.concatenate %110, %111, %112, %113, %114, %115, %116, %117, %118 in 1 : vector<9x4xf32>, vector<9x4xf32>, vector<9x4xf32>, vector<9x4xf32>, vector<9x4xf32>, vector<9x4xf32>, vector<9x4xf32>, vector<9x4xf32>, vector<9x4xf32> -> vector<9x36xf32>
    %120 = arith.truncf %119 : vector<9x36xf32> to vector<9x36xbf16>
    %c45 = arith.constant 45 : index
    %c0_67 = arith.constant 0 : index
    %121 = vector.load %arg14[%c45, %c0_67] : memref<81x36xbf16, #tpu.memory_space<vmem>>, vector<9x36xbf16>
    tpu.vector_store %arg14[%c45, %c0_67], %120 {strides = array<i32>} : memref<81x36xbf16, #tpu.memory_space<vmem>>, vector<9x36xbf16>,
    %122 = vector.extract_strided_slice %40 {offsets = [0, 0], sizes = [9, 4], strides = [1, 1]} : vector<11x4xf32> to vector<9x4xf32>
    %123 = vector.extract_strided_slice %40 {offsets = [1, 0], sizes = [9, 4], strides = [1, 1]} : vector<11x4xf32> to vector<9x4xf32>
    %124 = vector.extract_strided_slice %40 {offsets = [2, 0], sizes = [9, 4], strides = [1, 1]} : vector<11x4xf32> to vector<9x4xf32>
    %125 = vector.extract_strided_slice %43 {offsets = [0, 0], sizes = [9, 4], strides = [1, 1]} : vector<11x4xf32> to vector<9x4xf32>
    %126 = vector.extract_strided_slice %43 {offsets = [1, 0], sizes = [9, 4], strides = [1, 1]} : vector<11x4xf32> to vector<9x4xf32>
    %127 = vector.extract_strided_slice %43 {offsets = [2, 0], sizes = [9, 4], strides = [1, 1]} : vector<11x4xf32> to vector<9x4xf32>
    %128 = vector.extract_strided_slice %46 {offsets = [0, 0], sizes = [9, 4], strides = [1, 1]} : vector<11x4xf32> to vector<9x4xf32>
    %129 = vector.extract_strided_slice %46 {offsets = [1, 0], sizes = [9, 4], strides = [1, 1]} : vector<11x4xf32> to vector<9x4xf32>
    %130 = vector.extract_strided_slice %46 {offsets = [2, 0], sizes = [9, 4], strides = [1, 1]} : vector<11x4xf32> to vector<9x4xf32>
    %131 = tpu.concatenate %122, %123, %124, %125, %126, %127, %128, %129, %130 in 1 : vector<9x4xf32>, vector<9x4xf32>, vector<9x4xf32>, vector<9x4xf32>, vector<9x4xf32>, vector<9x4xf32>, vector<9x4xf32>, vector<9x4xf32>, vector<9x4xf32> -> vector<9x36xf32>
    %132 = arith.truncf %131 : vector<9x36xf32> to vector<9x36xbf16>
    %c54 = arith.constant 54 : index
    %c0_68 = arith.constant 0 : index
    %133 = vector.load %arg14[%c54, %c0_68] : memref<81x36xbf16, #tpu.memory_space<vmem>>, vector<9x36xbf16>
    tpu.vector_store %arg14[%c54, %c0_68], %132 {strides = array<i32>} : memref<81x36xbf16, #tpu.memory_space<vmem>>, vector<9x36xbf16>,
    %134 = vector.extract_strided_slice %43 {offsets = [0, 0], sizes = [9, 4], strides = [1, 1]} : vector<11x4xf32> to vector<9x4xf32>
    %135 = vector.extract_strided_slice %43 {offsets = [1, 0], sizes = [9, 4], strides = [1, 1]} : vector<11x4xf32> to vector<9x4xf32>
    %136 = vector.extract_strided_slice %43 {offsets = [2, 0], sizes = [9, 4], strides = [1, 1]} : vector<11x4xf32> to vector<9x4xf32>
    %137 = vector.extract_strided_slice %46 {offsets = [0, 0], sizes = [9, 4], strides = [1, 1]} : vector<11x4xf32> to vector<9x4xf32>
    %138 = vector.extract_strided_slice %46 {offsets = [1, 0], sizes = [9, 4], strides = [1, 1]} : vector<11x4xf32> to vector<9x4xf32>
    %139 = vector.extract_strided_slice %46 {offsets = [2, 0], sizes = [9, 4], strides = [1, 1]} : vector<11x4xf32> to vector<9x4xf32>
    %140 = vector.extract_strided_slice %49 {offsets = [0, 0], sizes = [9, 4], strides = [1, 1]} : vector<11x4xf32> to vector<9x4xf32>
    %141 = vector.extract_strided_slice %49 {offsets = [1, 0], sizes = [9, 4], strides = [1, 1]} : vector<11x4xf32> to vector<9x4xf32>
    %142 = vector.extract_strided_slice %49 {offsets = [2, 0], sizes = [9, 4], strides = [1, 1]} : vector<11x4xf32> to vector<9x4xf32>
    %143 = tpu.concatenate %134, %135, %136, %137, %138, %139, %140, %141, %142 in 1 : vector<9x4xf32>, vector<9x4xf32>, vector<9x4xf32>, vector<9x4xf32>, vector<9x4xf32>, vector<9x4xf32>, vector<9x4xf32>, vector<9x4xf32>, vector<9x4xf32> -> vector<9x36xf32>
    %144 = arith.truncf %143 : vector<9x36xf32> to vector<9x36xbf16>
    %c63 = arith.constant 63 : index
    %c0_69 = arith.constant 0 : index
    %145 = vector.load %arg14[%c63, %c0_69] : memref<81x36xbf16, #tpu.memory_space<vmem>>, vector<9x36xbf16>
    tpu.vector_store %arg14[%c63, %c0_69], %144 {strides = array<i32>} : memref<81x36xbf16, #tpu.memory_space<vmem>>, vector<9x36xbf16>,
    %146 = vector.extract_strided_slice %46 {offsets = [0, 0], sizes = [9, 4], strides = [1, 1]} : vector<11x4xf32> to vector<9x4xf32>
    %147 = vector.extract_strided_slice %46 {offsets = [1, 0], sizes = [9, 4], strides = [1, 1]} : vector<11x4xf32> to vector<9x4xf32>
    %148 = vector.extract_strided_slice %46 {offsets = [2, 0], sizes = [9, 4], strides = [1, 1]} : vector<11x4xf32> to vector<9x4xf32>
    %149 = vector.extract_strided_slice %49 {offsets = [0, 0], sizes = [9, 4], strides = [1, 1]} : vector<11x4xf32> to vector<9x4xf32>
    %150 = vector.extract_strided_slice %49 {offsets = [1, 0], sizes = [9, 4], strides = [1, 1]} : vector<11x4xf32> to vector<9x4xf32>
    %151 = vector.extract_strided_slice %49 {offsets = [2, 0], sizes = [9, 4], strides = [1, 1]} : vector<11x4xf32> to vector<9x4xf32>
    %152 = vector.extract_strided_slice %21 {offsets = [0, 0], sizes = [9, 4], strides = [1, 1]} : vector<11x4xf32> to vector<9x4xf32>
    %153 = vector.extract_strided_slice %21 {offsets = [1, 0], sizes = [9, 4], strides = [1, 1]} : vector<11x4xf32> to vector<9x4xf32>
    %154 = vector.extract_strided_slice %21 {offsets = [2, 0], sizes = [9, 4], strides = [1, 1]} : vector<11x4xf32> to vector<9x4xf32>
    %155 = tpu.concatenate %146, %147, %148, %149, %150, %151, %152, %153, %154 in 1 : vector<9x4xf32>, vector<9x4xf32>, vector<9x4xf32>, vector<9x4xf32>, vector<9x4xf32>, vector<9x4xf32>, vector<9x4xf32>, vector<9x4xf32>, vector<9x4xf32> -> vector<9x36xf32>
    %156 = arith.truncf %155 : vector<9x36xf32> to vector<9x36xbf16>
    %c72 = arith.constant 72 : index
    %c0_70 = arith.constant 0 : index
    %157 = vector.load %arg14[%c72, %c0_70] : memref<81x36xbf16, #tpu.memory_space<vmem>>, vector<9x36xbf16>
    tpu.vector_store %arg14[%c72, %c0_70], %156 {strides = array<i32>} : memref<81x36xbf16, #tpu.memory_space<vmem>>, vector<9x36xbf16>,
    %c0_71 = arith.constant 0 : index
    %c0_72 = arith.constant 0 : index
    %158 = vector.load %arg14[%c0_71, %c0_72] : memref<81x36xbf16, #tpu.memory_space<vmem>>, vector<81x36xbf16>
    %c0_73 = arith.constant 0 : index
    %c0_74 = arith.constant 0 : index
    %159 = vector.load %arg2[%c0_73, %c0_74] : memref<36x4xbf16, #tpu.memory_space<vmem>>, vector<36x4xbf16>
    %cst_75 = arith.constant dense<0.000000e+00> : vector<81x4xf32>
    %160 = tpu.matmul %158, %159, %cst_75 {dimension_numbers = #tpu.dot_dimension_numbers<[1], [0], [0], [1], [0, 0, 1, 1], [], []>} : vector<81x36xbf16>, vector<36x4xbf16>, vector<81x4xf32> -> vector<81x4xf32>
    %c0_76 = arith.constant 0 : index
    %c0_77 = arith.constant 0 : index
    %161 = vector.load %arg3[%c0_76, %c0_77] : memref<1x4xf32, #tpu.memory_space<vmem>>, vector<1x4xf32>
    %162 = vector.broadcast %161 : vector<1x4xf32> to vector<81x4xf32>
    %163 = arith.addf %160, %162 : vector<81x4xf32>
    %cst_78 = arith.constant 0.000000e+00 : f32
    %164 = vector.broadcast %cst_78 : f32 to vector<81x4xf32>
    %165 = arith.maximumf %163, %164 : vector<81x4xf32>
    %166 = vector.shape_cast %165 : vector<81x4xf32> to vector<1x81x4xf32>
    %cst_79 = arith.constant dense<0.000000e+00> : vector<1xf32>
    %167 = vector.multi_reduction <add>, %166, %cst_79 [1, 2] : vector<1x81x4xf32> to vector<1xf32>
    %168 = vector.shape_cast %167 : vector<1xf32> to vector<1x1x1xf32>
    %169 = vector.extract %168[0, 0, 0] : f32 from vector<1x1x1xf32>
    %cst_80 = arith.constant 3.240000e+02 : f32
    %170 = arith.divf %169, %cst_80 : f32
    %171 = arith.mulf %165, %165 : vector<81x4xf32>
    %172 = vector.shape_cast %171 : vector<81x4xf32> to vector<1x81x4xf32>
    %cst_81 = arith.constant dense<0.000000e+00> : vector<1xf32>
    %173 = vector.multi_reduction <add>, %172, %cst_81 [1, 2] : vector<1x81x4xf32> to vector<1xf32>
    %174 = vector.shape_cast %173 : vector<1xf32> to vector<1x1x1xf32>
    %175 = vector.extract %174[0, 0, 0] : f32 from vector<1x1x1xf32>
    %cst_82 = arith.constant 3.240000e+02 : f32
    %176 = arith.divf %175, %cst_82 : f32
    %177 = arith.mulf %170, %170 : f32
    %178 = arith.subf %176, %177 : f32
    %cst_83 = arith.constant 9.99999974E-6 : f32
    %179 = arith.addf %178, %cst_83 : f32
    %180 = math.rsqrt %179 : f32
    %c0_84 = arith.constant 0 : index
    %c0_85 = arith.constant 0 : index
    %181 = vector.load %arg4[%c0_84, %c0_85] : memref<1x4xf32, #tpu.memory_space<vmem>>, vector<1x4xf32>
    %182 = vector.broadcast %180 : f32 to vector<1x4xf32>
    %183 = arith.mulf %182, %181 : vector<1x4xf32>
    %c0_86 = arith.constant 0 : index
    %c0_87 = arith.constant 0 : index
    %184 = vector.load %arg5[%c0_86, %c0_87] : memref<1x4xf32, #tpu.memory_space<vmem>>, vector<1x4xf32>
    %185 = vector.broadcast %170 : f32 to vector<1x4xf32>
    %186 = arith.mulf %185, %183 : vector<1x4xf32>
    %187 = arith.subf %184, %186 : vector<1x4xf32>
    %cst_88 = arith.constant 0.000000e+00 : f32
    %188 = vector.broadcast %cst_88 : f32 to vector<11x4xf32>
    %cst_89 = arith.constant 0.000000e+00 : f32
    %189 = vector.broadcast %cst_89 : f32 to vector<1x4xf32>
    %190 = vector.extract_strided_slice %165 {offsets = [0, 0], sizes = [9, 4], strides = [1, 1]} : vector<81x4xf32> to vector<9x4xf32>
    %191 = vector.broadcast %183 : vector<1x4xf32> to vector<9x4xf32>
    %192 = arith.mulf %190, %191 : vector<9x4xf32>
    %193 = vector.broadcast %187 : vector<1x4xf32> to vector<9x4xf32>
    %194 = arith.addf %192, %193 : vector<9x4xf32>
    %195 = tpu.concatenate %189, %194, %189 in 0 : vector<1x4xf32>, vector<9x4xf32>, vector<1x4xf32> -> vector<11x4xf32>
    %196 = vector.extract_strided_slice %165 {offsets = [9, 0], sizes = [9, 4], strides = [1, 1]} : vector<81x4xf32> to vector<9x4xf32>
    %197 = vector.broadcast %183 : vector<1x4xf32> to vector<9x4xf32>
    %198 = arith.mulf %196, %197 : vector<9x4xf32>
    %199 = vector.broadcast %187 : vector<1x4xf32> to vector<9x4xf32>
    %200 = arith.addf %198, %199 : vector<9x4xf32>
    %201 = tpu.concatenate %189, %200, %189 in 0 : vector<1x4xf32>, vector<9x4xf32>, vector<1x4xf32> -> vector<11x4xf32>
    %202 = vector.extract_strided_slice %165 {offsets = [18, 0], sizes = [9, 4], strides = [1, 1]} : vector<81x4xf32> to vector<9x4xf32>
    %203 = vector.broadcast %183 : vector<1x4xf32> to vector<9x4xf32>
    %204 = arith.mulf %202, %203 : vector<9x4xf32>
    %205 = vector.broadcast %187 : vector<1x4xf32> to vector<9x4xf32>
    %206 = arith.addf %204, %205 : vector<9x4xf32>
    %207 = tpu.concatenate %189, %206, %189 in 0 : vector<1x4xf32>, vector<9x4xf32>, vector<1x4xf32> -> vector<11x4xf32>
    %208 = vector.extract_strided_slice %165 {offsets = [27, 0], sizes = [9, 4], strides = [1, 1]} : vector<81x4xf32> to vector<9x4xf32>
    %209 = vector.broadcast %183 : vector<1x4xf32> to vector<9x4xf32>
    %210 = arith.mulf %208, %209 : vector<9x4xf32>
    %211 = vector.broadcast %187 : vector<1x4xf32> to vector<9x4xf32>
    %212 = arith.addf %210, %211 : vector<9x4xf32>
    %213 = tpu.concatenate %189, %212, %189 in 0 : vector<1x4xf32>, vector<9x4xf32>, vector<1x4xf32> -> vector<11x4xf32>
    %214 = vector.extract_strided_slice %165 {offsets = [36, 0], sizes = [9, 4], strides = [1, 1]} : vector<81x4xf32> to vector<9x4xf32>
    %215 = vector.broadcast %183 : vector<1x4xf32> to vector<9x4xf32>
    %216 = arith.mulf %214, %215 : vector<9x4xf32>
    %217 = vector.broadcast %187 : vector<1x4xf32> to vector<9x4xf32>
    %218 = arith.addf %216, %217 : vector<9x4xf32>
    %219 = tpu.concatenate %189, %218, %189 in 0 : vector<1x4xf32>, vector<9x4xf32>, vector<1x4xf32> -> vector<11x4xf32>
    %220 = vector.extract_strided_slice %165 {offsets = [45, 0], sizes = [9, 4], strides = [1, 1]} : vector<81x4xf32> to vector<9x4xf32>
    %221 = vector.broadcast %183 : vector<1x4xf32> to vector<9x4xf32>
    %222 = arith.mulf %220, %221 : vector<9x4xf32>
    %223 = vector.broadcast %187 : vector<1x4xf32> to vector<9x4xf32>
    %224 = arith.addf %222, %223 : vector<9x4xf32>
    %225 = tpu.concatenate %189, %224, %189 in 0 : vector<1x4xf32>, vector<9x4xf32>, vector<1x4xf32> -> vector<11x4xf32>
    %226 = vector.extract_strided_slice %165 {offsets = [54, 0], sizes = [9, 4], strides = [1, 1]} : vector<81x4xf32> to vector<9x4xf32>
    %227 = vector.broadcast %183 : vector<1x4xf32> to vector<9x4xf32>
    %228 = arith.mulf %226, %227 : vector<9x4xf32>
    %229 = vector.broadcast %187 : vector<1x4xf32> to vector<9x4xf32>
    %230 = arith.addf %228, %229 : vector<9x4xf32>
    %231 = tpu.concatenate %189, %230, %189 in 0 : vector<1x4xf32>, vector<9x4xf32>, vector<1x4xf32> -> vector<11x4xf32>
    %232 = vector.extract_strided_slice %165 {offsets = [63, 0], sizes = [9, 4], strides = [1, 1]} : vector<81x4xf32> to vector<9x4xf32>
    %233 = vector.broadcast %183 : vector<1x4xf32> to vector<9x4xf32>
    %234 = arith.mulf %232, %233 : vector<9x4xf32>
    %235 = vector.broadcast %187 : vector<1x4xf32> to vector<9x4xf32>
    %236 = arith.addf %234, %235 : vector<9x4xf32>
    %237 = tpu.concatenate %189, %236, %189 in 0 : vector<1x4xf32>, vector<9x4xf32>, vector<1x4xf32> -> vector<11x4xf32>
    %238 = vector.extract_strided_slice %165 {offsets = [72, 0], sizes = [9, 4], strides = [1, 1]} : vector<81x4xf32> to vector<9x4xf32>
    %239 = vector.broadcast %183 : vector<1x4xf32> to vector<9x4xf32>
    %240 = arith.mulf %238, %239 : vector<9x4xf32>
    %241 = vector.broadcast %187 : vector<1x4xf32> to vector<9x4xf32>
    %242 = arith.addf %240, %241 : vector<9x4xf32>
    %243 = tpu.concatenate %189, %242, %189 in 0 : vector<1x4xf32>, vector<9x4xf32>, vector<1x4xf32> -> vector<11x4xf32>
    %244 = vector.extract_strided_slice %188 {offsets = [0, 0], sizes = [9, 4], strides = [1, 1]} : vector<11x4xf32> to vector<9x4xf32>
    %245 = vector.extract_strided_slice %188 {offsets = [1, 0], sizes = [9, 4], strides = [1, 1]} : vector<11x4xf32> to vector<9x4xf32>
    %246 = vector.extract_strided_slice %188 {offsets = [2, 0], sizes = [9, 4], strides = [1, 1]} : vector<11x4xf32> to vector<9x4xf32>
    %247 = vector.extract_strided_slice %195 {offsets = [0, 0], sizes = [9, 4], strides = [1, 1]} : vector<11x4xf32> to vector<9x4xf32>
    %248 = vector.extract_strided_slice %195 {offsets = [1, 0], sizes = [9, 4], strides = [1, 1]} : vector<11x4xf32> to vector<9x4xf32>
    %249 = vector.extract_strided_slice %195 {offsets = [2, 0], sizes = [9, 4], strides = [1, 1]} : vector<11x4xf32> to vector<9x4xf32>
    %250 = vector.extract_strided_slice %201 {offsets = [0, 0], sizes = [9, 4], strides = [1, 1]} : vector<11x4xf32> to vector<9x4xf32>
    %251 = vector.extract_strided_slice %201 {offsets = [1, 0], sizes = [9, 4], strides = [1, 1]} : vector<11x4xf32> to vector<9x4xf32>
    %252 = vector.extract_strided_slice %201 {offsets = [2, 0], sizes = [9, 4], strides = [1, 1]} : vector<11x4xf32> to vector<9x4xf32>
    %253 = tpu.concatenate %244, %245, %246, %247, %248, %249, %250, %251, %252 in 1 : vector<9x4xf32>, vector<9x4xf32>, vector<9x4xf32>, vector<9x4xf32>, vector<9x4xf32>, vector<9x4xf32>, vector<9x4xf32>, vector<9x4xf32>, vector<9x4xf32> -> vector<9x36xf32>
    %254 = arith.truncf %253 : vector<9x36xf32> to vector<9x36xbf16>
    %c0_90 = arith.constant 0 : index
    %c0_91 = arith.constant 0 : index
    %255 = vector.load %arg15[%c0_90, %c0_91] : memref<81x36xbf16, #tpu.memory_space<vmem>>, vector<9x36xbf16>
    tpu.vector_store %arg15[%c0_90, %c0_91], %254 {strides = array<i32>} : memref<81x36xbf16, #tpu.memory_space<vmem>>, vector<9x36xbf16>,
    %256 = vector.extract_strided_slice %195 {offsets = [0, 0], sizes = [9, 4], strides = [1, 1]} : vector<11x4xf32> to vector<9x4xf32>
    %257 = vector.extract_strided_slice %195 {offsets = [1, 0], sizes = [9, 4], strides = [1, 1]} : vector<11x4xf32> to vector<9x4xf32>
    %258 = vector.extract_strided_slice %195 {offsets = [2, 0], sizes = [9, 4], strides = [1, 1]} : vector<11x4xf32> to vector<9x4xf32>
    %259 = vector.extract_strided_slice %201 {offsets = [0, 0], sizes = [9, 4], strides = [1, 1]} : vector<11x4xf32> to vector<9x4xf32>
    %260 = vector.extract_strided_slice %201 {offsets = [1, 0], sizes = [9, 4], strides = [1, 1]} : vector<11x4xf32> to vector<9x4xf32>
    %261 = vector.extract_strided_slice %201 {offsets = [2, 0], sizes = [9, 4], strides = [1, 1]} : vector<11x4xf32> to vector<9x4xf32>
    %262 = vector.extract_strided_slice %207 {offsets = [0, 0], sizes = [9, 4], strides = [1, 1]} : vector<11x4xf32> to vector<9x4xf32>
    %263 = vector.extract_strided_slice %207 {offsets = [1, 0], sizes = [9, 4], strides = [1, 1]} : vector<11x4xf32> to vector<9x4xf32>
    %264 = vector.extract_strided_slice %207 {offsets = [2, 0], sizes = [9, 4], strides = [1, 1]} : vector<11x4xf32> to vector<9x4xf32>
    %265 = tpu.concatenate %256, %257, %258, %259, %260, %261, %262, %263, %264 in 1 : vector<9x4xf32>, vector<9x4xf32>, vector<9x4xf32>, vector<9x4xf32>, vector<9x4xf32>, vector<9x4xf32>, vector<9x4xf32>, vector<9x4xf32>, vector<9x4xf32> -> vector<9x36xf32>
    %266 = arith.truncf %265 : vector<9x36xf32> to vector<9x36xbf16>
    %c9_92 = arith.constant 9 : index
    %c0_93 = arith.constant 0 : index
    %267 = vector.load %arg15[%c9_92, %c0_93] : memref<81x36xbf16, #tpu.memory_space<vmem>>, vector<9x36xbf16>
    tpu.vector_store %arg15[%c9_92, %c0_93], %266 {strides = array<i32>} : memref<81x36xbf16, #tpu.memory_space<vmem>>, vector<9x36xbf16>,
    %268 = vector.extract_strided_slice %201 {offsets = [0, 0], sizes = [9, 4], strides = [1, 1]} : vector<11x4xf32> to vector<9x4xf32>
    %269 = vector.extract_strided_slice %201 {offsets = [1, 0], sizes = [9, 4], strides = [1, 1]} : vector<11x4xf32> to vector<9x4xf32>
    %270 = vector.extract_strided_slice %201 {offsets = [2, 0], sizes = [9, 4], strides = [1, 1]} : vector<11x4xf32> to vector<9x4xf32>
    %271 = vector.extract_strided_slice %207 {offsets = [0, 0], sizes = [9, 4], strides = [1, 1]} : vector<11x4xf32> to vector<9x4xf32>
    %272 = vector.extract_strided_slice %207 {offsets = [1, 0], sizes = [9, 4], strides = [1, 1]} : vector<11x4xf32> to vector<9x4xf32>
    %273 = vector.extract_strided_slice %207 {offsets = [2, 0], sizes = [9, 4], strides = [1, 1]} : vector<11x4xf32> to vector<9x4xf32>
    %274 = vector.extract_strided_slice %213 {offsets = [0, 0], sizes = [9, 4], strides = [1, 1]} : vector<11x4xf32> to vector<9x4xf32>
    %275 = vector.extract_strided_slice %213 {offsets = [1, 0], sizes = [9, 4], strides = [1, 1]} : vector<11x4xf32> to vector<9x4xf32>
    %276 = vector.extract_strided_slice %213 {offsets = [2, 0], sizes = [9, 4], strides = [1, 1]} : vector<11x4xf32> to vector<9x4xf32>
    %277 = tpu.concatenate %268, %269, %270, %271, %272, %273, %274, %275, %276 in 1 : vector<9x4xf32>, vector<9x4xf32>, vector<9x4xf32>, vector<9x4xf32>, vector<9x4xf32>, vector<9x4xf32>, vector<9x4xf32>, vector<9x4xf32>, vector<9x4xf32> -> vector<9x36xf32>
    %278 = arith.truncf %277 : vector<9x36xf32> to vector<9x36xbf16>
    %c18_94 = arith.constant 18 : index
    %c0_95 = arith.constant 0 : index
    %279 = vector.load %arg15[%c18_94, %c0_95] : memref<81x36xbf16, #tpu.memory_space<vmem>>, vector<9x36xbf16>
    tpu.vector_store %arg15[%c18_94, %c0_95], %278 {strides = array<i32>} : memref<81x36xbf16, #tpu.memory_space<vmem>>, vector<9x36xbf16>,
    %280 = vector.extract_strided_slice %207 {offsets = [0, 0], sizes = [9, 4], strides = [1, 1]} : vector<11x4xf32> to vector<9x4xf32>
    %281 = vector.extract_strided_slice %207 {offsets = [1, 0], sizes = [9, 4], strides = [1, 1]} : vector<11x4xf32> to vector<9x4xf32>
    %282 = vector.extract_strided_slice %207 {offsets = [2, 0], sizes = [9, 4], strides = [1, 1]} : vector<11x4xf32> to vector<9x4xf32>
    %283 = vector.extract_strided_slice %213 {offsets = [0, 0], sizes = [9, 4], strides = [1, 1]} : vector<11x4xf32> to vector<9x4xf32>
    %284 = vector.extract_strided_slice %213 {offsets = [1, 0], sizes = [9, 4], strides = [1, 1]} : vector<11x4xf32> to vector<9x4xf32>
    %285 = vector.extract_strided_slice %213 {offsets = [2, 0], sizes = [9, 4], strides = [1, 1]} : vector<11x4xf32> to vector<9x4xf32>
    %286 = vector.extract_strided_slice %219 {offsets = [0, 0], sizes = [9, 4], strides = [1, 1]} : vector<11x4xf32> to vector<9x4xf32>
    %287 = vector.extract_strided_slice %219 {offsets = [1, 0], sizes = [9, 4], strides = [1, 1]} : vector<11x4xf32> to vector<9x4xf32>
    %288 = vector.extract_strided_slice %219 {offsets = [2, 0], sizes = [9, 4], strides = [1, 1]} : vector<11x4xf32> to vector<9x4xf32>
    %289 = tpu.concatenate %280, %281, %282, %283, %284, %285, %286, %287, %288 in 1 : vector<9x4xf32>, vector<9x4xf32>, vector<9x4xf32>, vector<9x4xf32>, vector<9x4xf32>, vector<9x4xf32>, vector<9x4xf32>, vector<9x4xf32>, vector<9x4xf32> -> vector<9x36xf32>
    %290 = arith.truncf %289 : vector<9x36xf32> to vector<9x36xbf16>
    %c27_96 = arith.constant 27 : index
    %c0_97 = arith.constant 0 : index
    %291 = vector.load %arg15[%c27_96, %c0_97] : memref<81x36xbf16, #tpu.memory_space<vmem>>, vector<9x36xbf16>
    tpu.vector_store %arg15[%c27_96, %c0_97], %290 {strides = array<i32>} : memref<81x36xbf16, #tpu.memory_space<vmem>>, vector<9x36xbf16>,
    %292 = vector.extract_strided_slice %213 {offsets = [0, 0], sizes = [9, 4], strides = [1, 1]} : vector<11x4xf32> to vector<9x4xf32>
    %293 = vector.extract_strided_slice %213 {offsets = [1, 0], sizes = [9, 4], strides = [1, 1]} : vector<11x4xf32> to vector<9x4xf32>
    %294 = vector.extract_strided_slice %213 {offsets = [2, 0], sizes = [9, 4], strides = [1, 1]} : vector<11x4xf32> to vector<9x4xf32>
    %295 = vector.extract_strided_slice %219 {offsets = [0, 0], sizes = [9, 4], strides = [1, 1]} : vector<11x4xf32> to vector<9x4xf32>
    %296 = vector.extract_strided_slice %219 {offsets = [1, 0], sizes = [9, 4], strides = [1, 1]} : vector<11x4xf32> to vector<9x4xf32>
    %297 = vector.extract_strided_slice %219 {offsets = [2, 0], sizes = [9, 4], strides = [1, 1]} : vector<11x4xf32> to vector<9x4xf32>
    %298 = vector.extract_strided_slice %225 {offsets = [0, 0], sizes = [9, 4], strides = [1, 1]} : vector<11x4xf32> to vector<9x4xf32>
    %299 = vector.extract_strided_slice %225 {offsets = [1, 0], sizes = [9, 4], strides = [1, 1]} : vector<11x4xf32> to vector<9x4xf32>
    %300 = vector.extract_strided_slice %225 {offsets = [2, 0], sizes = [9, 4], strides = [1, 1]} : vector<11x4xf32> to vector<9x4xf32>
    %301 = tpu.concatenate %292, %293, %294, %295, %296, %297, %298, %299, %300 in 1 : vector<9x4xf32>, vector<9x4xf32>, vector<9x4xf32>, vector<9x4xf32>, vector<9x4xf32>, vector<9x4xf32>, vector<9x4xf32>, vector<9x4xf32>, vector<9x4xf32> -> vector<9x36xf32>
    %302 = arith.truncf %301 : vector<9x36xf32> to vector<9x36xbf16>
    %c36_98 = arith.constant 36 : index
    %c0_99 = arith.constant 0 : index
    %303 = vector.load %arg15[%c36_98, %c0_99] : memref<81x36xbf16, #tpu.memory_space<vmem>>, vector<9x36xbf16>
    tpu.vector_store %arg15[%c36_98, %c0_99], %302 {strides = array<i32>} : memref<81x36xbf16, #tpu.memory_space<vmem>>, vector<9x36xbf16>,
    %304 = vector.extract_strided_slice %219 {offsets = [0, 0], sizes = [9, 4], strides = [1, 1]} : vector<11x4xf32> to vector<9x4xf32>
    %305 = vector.extract_strided_slice %219 {offsets = [1, 0], sizes = [9, 4], strides = [1, 1]} : vector<11x4xf32> to vector<9x4xf32>
    %306 = vector.extract_strided_slice %219 {offsets = [2, 0], sizes = [9, 4], strides = [1, 1]} : vector<11x4xf32> to vector<9x4xf32>
    %307 = vector.extract_strided_slice %225 {offsets = [0, 0], sizes = [9, 4], strides = [1, 1]} : vector<11x4xf32> to vector<9x4xf32>
    %308 = vector.extract_strided_slice %225 {offsets = [1, 0], sizes = [9, 4], strides = [1, 1]} : vector<11x4xf32> to vector<9x4xf32>
    %309 = vector.extract_strided_slice %225 {offsets = [2, 0], sizes = [9, 4], strides = [1, 1]} : vector<11x4xf32> to vector<9x4xf32>
    %310 = vector.extract_strided_slice %231 {offsets = [0, 0], sizes = [9, 4], strides = [1, 1]} : vector<11x4xf32> to vector<9x4xf32>
    %311 = vector.extract_strided_slice %231 {offsets = [1, 0], sizes = [9, 4], strides = [1, 1]} : vector<11x4xf32> to vector<9x4xf32>
    %312 = vector.extract_strided_slice %231 {offsets = [2, 0], sizes = [9, 4], strides = [1, 1]} : vector<11x4xf32> to vector<9x4xf32>
    %313 = tpu.concatenate %304, %305, %306, %307, %308, %309, %310, %311, %312 in 1 : vector<9x4xf32>, vector<9x4xf32>, vector<9x4xf32>, vector<9x4xf32>, vector<9x4xf32>, vector<9x4xf32>, vector<9x4xf32>, vector<9x4xf32>, vector<9x4xf32> -> vector<9x36xf32>
    %314 = arith.truncf %313 : vector<9x36xf32> to vector<9x36xbf16>
    %c45_100 = arith.constant 45 : index
    %c0_101 = arith.constant 0 : index
    %315 = vector.load %arg15[%c45_100, %c0_101] : memref<81x36xbf16, #tpu.memory_space<vmem>>, vector<9x36xbf16>
    tpu.vector_store %arg15[%c45_100, %c0_101], %314 {strides = array<i32>} : memref<81x36xbf16, #tpu.memory_space<vmem>>, vector<9x36xbf16>,
    %316 = vector.extract_strided_slice %225 {offsets = [0, 0], sizes = [9, 4], strides = [1, 1]} : vector<11x4xf32> to vector<9x4xf32>
    %317 = vector.extract_strided_slice %225 {offsets = [1, 0], sizes = [9, 4], strides = [1, 1]} : vector<11x4xf32> to vector<9x4xf32>
    %318 = vector.extract_strided_slice %225 {offsets = [2, 0], sizes = [9, 4], strides = [1, 1]} : vector<11x4xf32> to vector<9x4xf32>
    %319 = vector.extract_strided_slice %231 {offsets = [0, 0], sizes = [9, 4], strides = [1, 1]} : vector<11x4xf32> to vector<9x4xf32>
    %320 = vector.extract_strided_slice %231 {offsets = [1, 0], sizes = [9, 4], strides = [1, 1]} : vector<11x4xf32> to vector<9x4xf32>
    %321 = vector.extract_strided_slice %231 {offsets = [2, 0], sizes = [9, 4], strides = [1, 1]} : vector<11x4xf32> to vector<9x4xf32>
    %322 = vector.extract_strided_slice %237 {offsets = [0, 0], sizes = [9, 4], strides = [1, 1]} : vector<11x4xf32> to vector<9x4xf32>
    %323 = vector.extract_strided_slice %237 {offsets = [1, 0], sizes = [9, 4], strides = [1, 1]} : vector<11x4xf32> to vector<9x4xf32>
    %324 = vector.extract_strided_slice %237 {offsets = [2, 0], sizes = [9, 4], strides = [1, 1]} : vector<11x4xf32> to vector<9x4xf32>
    %325 = tpu.concatenate %316, %317, %318, %319, %320, %321, %322, %323, %324 in 1 : vector<9x4xf32>, vector<9x4xf32>, vector<9x4xf32>, vector<9x4xf32>, vector<9x4xf32>, vector<9x4xf32>, vector<9x4xf32>, vector<9x4xf32>, vector<9x4xf32> -> vector<9x36xf32>
    %326 = arith.truncf %325 : vector<9x36xf32> to vector<9x36xbf16>
    %c54_102 = arith.constant 54 : index
    %c0_103 = arith.constant 0 : index
    %327 = vector.load %arg15[%c54_102, %c0_103] : memref<81x36xbf16, #tpu.memory_space<vmem>>, vector<9x36xbf16>
    tpu.vector_store %arg15[%c54_102, %c0_103], %326 {strides = array<i32>} : memref<81x36xbf16, #tpu.memory_space<vmem>>, vector<9x36xbf16>,
    %328 = vector.extract_strided_slice %231 {offsets = [0, 0], sizes = [9, 4], strides = [1, 1]} : vector<11x4xf32> to vector<9x4xf32>
    %329 = vector.extract_strided_slice %231 {offsets = [1, 0], sizes = [9, 4], strides = [1, 1]} : vector<11x4xf32> to vector<9x4xf32>
    %330 = vector.extract_strided_slice %231 {offsets = [2, 0], sizes = [9, 4], strides = [1, 1]} : vector<11x4xf32> to vector<9x4xf32>
    %331 = vector.extract_strided_slice %237 {offsets = [0, 0], sizes = [9, 4], strides = [1, 1]} : vector<11x4xf32> to vector<9x4xf32>
    %332 = vector.extract_strided_slice %237 {offsets = [1, 0], sizes = [9, 4], strides = [1, 1]} : vector<11x4xf32> to vector<9x4xf32>
    %333 = vector.extract_strided_slice %237 {offsets = [2, 0], sizes = [9, 4], strides = [1, 1]} : vector<11x4xf32> to vector<9x4xf32>
    %334 = vector.extract_strided_slice %243 {offsets = [0, 0], sizes = [9, 4], strides = [1, 1]} : vector<11x4xf32> to vector<9x4xf32>
    %335 = vector.extract_strided_slice %243 {offsets = [1, 0], sizes = [9, 4], strides = [1, 1]} : vector<11x4xf32> to vector<9x4xf32>
    %336 = vector.extract_strided_slice %243 {offsets = [2, 0], sizes = [9, 4], strides = [1, 1]} : vector<11x4xf32> to vector<9x4xf32>
    %337 = tpu.concatenate %328, %329, %330, %331, %332, %333, %334, %335, %336 in 1 : vector<9x4xf32>, vector<9x4xf32>, vector<9x4xf32>, vector<9x4xf32>, vector<9x4xf32>, vector<9x4xf32>, vector<9x4xf32>, vector<9x4xf32>, vector<9x4xf32> -> vector<9x36xf32>
    %338 = arith.truncf %337 : vector<9x36xf32> to vector<9x36xbf16>
    %c63_104 = arith.constant 63 : index
    %c0_105 = arith.constant 0 : index
    %339 = vector.load %arg15[%c63_104, %c0_105] : memref<81x36xbf16, #tpu.memory_space<vmem>>, vector<9x36xbf16>
    tpu.vector_store %arg15[%c63_104, %c0_105], %338 {strides = array<i32>} : memref<81x36xbf16, #tpu.memory_space<vmem>>, vector<9x36xbf16>,
    %340 = vector.extract_strided_slice %237 {offsets = [0, 0], sizes = [9, 4], strides = [1, 1]} : vector<11x4xf32> to vector<9x4xf32>
    %341 = vector.extract_strided_slice %237 {offsets = [1, 0], sizes = [9, 4], strides = [1, 1]} : vector<11x4xf32> to vector<9x4xf32>
    %342 = vector.extract_strided_slice %237 {offsets = [2, 0], sizes = [9, 4], strides = [1, 1]} : vector<11x4xf32> to vector<9x4xf32>
    %343 = vector.extract_strided_slice %243 {offsets = [0, 0], sizes = [9, 4], strides = [1, 1]} : vector<11x4xf32> to vector<9x4xf32>
    %344 = vector.extract_strided_slice %243 {offsets = [1, 0], sizes = [9, 4], strides = [1, 1]} : vector<11x4xf32> to vector<9x4xf32>
    %345 = vector.extract_strided_slice %243 {offsets = [2, 0], sizes = [9, 4], strides = [1, 1]} : vector<11x4xf32> to vector<9x4xf32>
    %346 = vector.extract_strided_slice %188 {offsets = [0, 0], sizes = [9, 4], strides = [1, 1]} : vector<11x4xf32> to vector<9x4xf32>
    %347 = vector.extract_strided_slice %188 {offsets = [1, 0], sizes = [9, 4], strides = [1, 1]} : vector<11x4xf32> to vector<9x4xf32>
    %348 = vector.extract_strided_slice %188 {offsets = [2, 0], sizes = [9, 4], strides = [1, 1]} : vector<11x4xf32> to vector<9x4xf32>
    %349 = tpu.concatenate %340, %341, %342, %343, %344, %345, %346, %347, %348 in 1 : vector<9x4xf32>, vector<9x4xf32>, vector<9x4xf32>, vector<9x4xf32>, vector<9x4xf32>, vector<9x4xf32>, vector<9x4xf32>, vector<9x4xf32>, vector<9x4xf32> -> vector<9x36xf32>
    %350 = arith.truncf %349 : vector<9x36xf32> to vector<9x36xbf16>
    %c72_106 = arith.constant 72 : index
    %c0_107 = arith.constant 0 : index
    %351 = vector.load %arg15[%c72_106, %c0_107] : memref<81x36xbf16, #tpu.memory_space<vmem>>, vector<9x36xbf16>
    tpu.vector_store %arg15[%c72_106, %c0_107], %350 {strides = array<i32>} : memref<81x36xbf16, #tpu.memory_space<vmem>>, vector<9x36xbf16>,
    %c0_108 = arith.constant 0 : index
    %c0_109 = arith.constant 0 : index
    %352 = vector.load %arg15[%c0_108, %c0_109] : memref<81x36xbf16, #tpu.memory_space<vmem>>, vector<81x36xbf16>
    %c0_110 = arith.constant 0 : index
    %c0_111 = arith.constant 0 : index
    %353 = vector.load %arg6[%c0_110, %c0_111] : memref<36x8xbf16, #tpu.memory_space<vmem>>, vector<36x8xbf16>
    %cst_112 = arith.constant dense<0.000000e+00> : vector<81x8xf32>
    %354 = tpu.matmul %352, %353, %cst_112 {dimension_numbers = #tpu.dot_dimension_numbers<[1], [0], [0], [1], [0, 0, 1, 1], [], []>} : vector<81x36xbf16>, vector<36x8xbf16>, vector<81x8xf32> -> vector<81x8xf32>
    %c0_113 = arith.constant 0 : index
    %c0_114 = arith.constant 0 : index
    %355 = vector.load %arg7[%c0_113, %c0_114] : memref<1x8xf32, #tpu.memory_space<vmem>>, vector<1x8xf32>
    %356 = vector.broadcast %355 : vector<1x8xf32> to vector<81x8xf32>
    %357 = arith.addf %354, %356 : vector<81x8xf32>
    %cst_115 = arith.constant 0.000000e+00 : f32
    %358 = vector.broadcast %cst_115 : f32 to vector<81x8xf32>
    %359 = arith.maximumf %357, %358 : vector<81x8xf32>
    %360 = vector.shape_cast %359 : vector<81x8xf32> to vector<1x81x8xf32>
    %cst_116 = arith.constant dense<0.000000e+00> : vector<1xf32>
    %361 = vector.multi_reduction <add>, %360, %cst_116 [1, 2] : vector<1x81x8xf32> to vector<1xf32>
    %362 = vector.shape_cast %361 : vector<1xf32> to vector<1x1x1xf32>
    %363 = vector.extract %362[0, 0, 0] : f32 from vector<1x1x1xf32>
    %cst_117 = arith.constant 6.480000e+02 : f32
    %364 = arith.divf %363, %cst_117 : f32
    %365 = arith.mulf %359, %359 : vector<81x8xf32>
    %366 = vector.shape_cast %365 : vector<81x8xf32> to vector<1x81x8xf32>
    %cst_118 = arith.constant dense<0.000000e+00> : vector<1xf32>
    %367 = vector.multi_reduction <add>, %366, %cst_118 [1, 2] : vector<1x81x8xf32> to vector<1xf32>
    %368 = vector.shape_cast %367 : vector<1xf32> to vector<1x1x1xf32>
    %369 = vector.extract %368[0, 0, 0] : f32 from vector<1x1x1xf32>
    %cst_119 = arith.constant 6.480000e+02 : f32
    %370 = arith.divf %369, %cst_119 : f32
    %371 = arith.mulf %364, %364 : f32
    %372 = arith.subf %370, %371 : f32
    %cst_120 = arith.constant 9.99999974E-6 : f32
    %373 = arith.addf %372, %cst_120 : f32
    %374 = math.rsqrt %373 : f32
    %c0_121 = arith.constant 0 : index
    %c0_122 = arith.constant 0 : index
    %375 = vector.load %arg8[%c0_121, %c0_122] : memref<1x8xf32, #tpu.memory_space<vmem>>, vector<1x8xf32>
    %376 = vector.broadcast %374 : f32 to vector<1x8xf32>
    %377 = arith.mulf %376, %375 : vector<1x8xf32>
    %c0_123 = arith.constant 0 : index
    %c0_124 = arith.constant 0 : index
    %378 = vector.load %arg9[%c0_123, %c0_124] : memref<1x8xf32, #tpu.memory_space<vmem>>, vector<1x8xf32>
    %379 = vector.broadcast %364 : f32 to vector<1x8xf32>
    %380 = arith.mulf %379, %377 : vector<1x8xf32>
    %381 = arith.subf %378, %380 : vector<1x8xf32>
    %382 = vector.broadcast %377 : vector<1x8xf32> to vector<81x8xf32>
    %383 = arith.mulf %359, %382 : vector<81x8xf32>
    %384 = vector.broadcast %381 : vector<1x8xf32> to vector<81x8xf32>
    %385 = arith.addf %383, %384 : vector<81x8xf32>
    %c0_125 = arith.constant 0 : index
    %c0_126 = arith.constant 0 : index
    %c0_127 = arith.constant 0 : index
    %386 = vector.load %arg10[%c0_125, %c0_126, %c0_127] : memref<1x81x8xf32, #tpu.memory_space<vmem>>, vector<1x81x8xf32>
    %387 = vector.shape_cast %386 : vector<1x81x8xf32> to vector<81x8xf32>
    %388 = vector.shape_cast %385 : vector<81x8xf32> to vector<1x81x8xf32>
    tpu.vector_store %arg10[%c0_125, %c0_126, %c0_127], %388 {strides = array<i32>} : memref<1x81x8xf32, #tpu.memory_space<vmem>>, vector<1x81x8xf32>,
    return
  }
  func.func @transform_0(%arg0: i32) -> (i32, i32, i32, i32) {
    %c0_i32 = arith.constant 0 : i32
    %c0_i32_0 = arith.constant 0 : i32
    %c0_i32_1 = arith.constant 0 : i32
    %c0_i32_2 = arith.constant 0 : i32
    return %arg0, %c0_i32, %c0_i32_0, %c0_i32_1 : i32, i32, i32, i32
  }
  func.func @transform_1(%arg0: i32) -> (i32, i32) {
    %c0_i32 = arith.constant 0 : i32
    %c0_i32_0 = arith.constant 0 : i32
    %c0_i32_1 = arith.constant 0 : i32
    return %c0_i32, %c0_i32_0 : i32, i32
  }
  func.func @transform_2(%arg0: i32) -> (i32, i32) {
    %c0_i32 = arith.constant 0 : i32
    %c0_i32_0 = arith.constant 0 : i32
    %c0_i32_1 = arith.constant 0 : i32
    return %c0_i32, %c0_i32_0 : i32, i32
  }
  func.func @transform_3(%arg0: i32) -> (i32, i32) {
    %c0_i32 = arith.constant 0 : i32
    %c0_i32_0 = arith.constant 0 : i32
    %c0_i32_1 = arith.constant 0 : i32
    return %c0_i32, %c0_i32_0 : i32, i32
  }
  func.func @transform_4(%arg0: i32) -> (i32, i32) {
    %c0_i32 = arith.constant 0 : i32
    %c0_i32_0 = arith.constant 0 : i32
    %c0_i32_1 = arith.constant 0 : i32
    return %c0_i32, %c0_i32_0 : i32, i32
  }
  func.func @transform_5(%arg0: i32) -> (i32, i32) {
    %c0_i32 = arith.constant 0 : i32
    %c0_i32_0 = arith.constant 0 : i32
    %c0_i32_1 = arith.constant 0 : i32
    return %c0_i32, %c0_i32_0 : i32, i32
  }
  func.func @transform_6(%arg0: i32) -> (i32, i32) {
    %c0_i32 = arith.constant 0 : i32
    %c0_i32_0 = arith.constant 0 : i32
    %c0_i32_1 = arith.constant 0 : i32
    return %c0_i32, %c0_i32_0 : i32, i32
  }
  func.func @transform_7(%arg0: i32) -> (i32, i32) {
    %c0_i32 = arith.constant 0 : i32
    %c0_i32_0 = arith.constant 0 : i32
    %c0_i32_1 = arith.constant 0 : i32
    return %c0_i32, %c0_i32_0 : i32, i32
  }
  func.func @transform_8(%arg0: i32) -> (i32, i32) {
    %c0_i32 = arith.constant 0 : i32
    %c0_i32_0 = arith.constant 0 : i32
    %c0_i32_1 = arith.constant 0 : i32
    return %c0_i32, %c0_i32_0 : i32, i32
  }
  func.func @transform_9(%arg0: i32) -> (i32, i32, i32) {
    %c0_i32 = arith.constant 0 : i32
    %c0_i32_0 = arith.constant 0 : i32
    %c0_i32_1 = arith.constant 0 : i32
    return %arg0, %c0_i32, %c0_i32_0 : i32, i32, i32
  }
}

</mosaic_0001>

<bundles_post_ra>
// kernel: tpu_custom_call.1
= control target key start
LH: loop header
LB: loop body
LE: loop exit
PB: predicated region body
PF: predicated region fallthrough
CT: control target
= control target key end

     0   :  { %s7413_s0 = inlined_call_operand.hbm [shape: f32[2,16,16,4], index: 0, kind: input, shape index: {}]   ;;  %s7414_s1 = inlined_call_operand.hbm [shape: bf16[36,4], index: 1, kind: input, shape index: {}]   ;;  %s7415_s2 = inlined_call_operand.hbm [shape: f32[1,4], index: 2, kind: input, shape index: {}]   ;;  %s7416_s3 = inlined_call_operand.hbm [shape: f32[1,4], index: 3, kind: input, shape index: {}]   ;;  %s7417_s4 = inlined_call_operand.hbm [shape: f32[1,4], index: 4, kind: input, shape index: {}]   ;;  %s7418_s5 = inlined_call_operand.hbm [shape: bf16[36,8], index: 5, kind: input, shape index: {}]   ;;  %s7419_s6 = inlined_call_operand.hbm [shape: f32[1,8], index: 6, kind: input, shape index: {}]   ;;  %s7420_s7 = inlined_call_operand.hbm [shape: f32[1,8], index: 7, kind: input, shape index: {}]   ;;  %s7421_s8 = inlined_call_operand.hbm [shape: f32[1,8], index: 8, kind: input, shape index: {}]   ;;  %s7422_s9 = inlined_call_operand.hbm [shape: f32[2,81,8], index: 9, kind: output, shape index: {}]  }
   0x1   :  { %7480 = sst [smem:[#allocation41_spill]] %s7414_s1 }
   0x2   :  { %7481 = sst [smem:[#allocation42_spill]] %s7422_s9 }
   0x3   :  { %14 = vsyncpa [#allocation8], 0 }
   0x4   :  { %16 = vsyncpa [#allocation8 + $0x1], 0 }
   0x5   :  { %17 = vsyncpa [#allocation11], 0 }
   0x6   :  { %18 = vsyncpa [#allocation14], 0 }
   0x7   :  { %19 = vsyncpa [#allocation17], 0 }
   0x8   :  { %20 = vsyncpa [#allocation20], 0 }
   0x9   :  { %21 = vsyncpa [#allocation9], 0 }
   0xa   :  { %23 = vsyncpa [#allocation9 + $0x1], 0  ;;  %s5095_s30 = smov 0   ;;  %s5097_s10 = smov 0  }
   0xb   :  { %s5099_s11 = smov 0   ;;  %s5101_s12 = smov 0  }
   0xc LB: > { %s5020_s13 = smov [#allocation10]   ;;  %s5116_s15 = sadd.s32 4294967295, %s5018_s12   ;;  %s5018_s12 = sphi %s5101_s12, %s7917_s12   ;;  %s5014_s11 = sphi %s5099_s11, %s7916_s11   ;;  %s5010_s10 = sphi %s5097_s10, %s7915_s10   ;;  %s5006_s30 = sphi %s5095_s30, %s7914_s30  }
   0xd   : > { %s266_s14 = sshll.u32 %s5020_s13, 4  ;;  %p3647_p0 = scmp.ge.s32.totalorder %s5018_s12, 1  ;;  %s5121_s14 = int_to_ptr.vmem [resolvable:$true] %s266_s14 }
   0xe   : > { %p7424_p1 = scmp.eq.s32.totalorder %s5116_s15, 0  ;;  %p254_p2 = scmp.lt.s32.totalorder %s5018_s12, 3 }
   0xf   : > { %s5021_s17 = smov [#allocation13]   ;;  %s5022_s20 = smov [#allocation16]  }
  0x10   : > { %p5123_p3 = pnand %p3647_p0, %p254_p2  ;;  %s291_s18 = sshll.u32 %s5021_s17, 4  ;;  %s5136_s18 = int_to_ptr.vmem [resolvable:$true] %s291_s18 }
  0x11   : > { %s312_s21 = sshll.u32 %s5022_s20, 4  ;;  %s7484_s1 = sld [smem:[#allocation41_spill]]  ;;  %s5138_s21 = int_to_ptr.vmem [resolvable:$true] %s312_s21 }
  0x12   : > { %s7482_s16 = scalar_select %p5123_p3, 1, 0 }
  0x13   : > { %p3884_p5 = pneg %p5123_p3 }
  0x15   : > { %p5132_p6 = pnand %p3884_p5, %p7424_p1 }
  0x17   : > { %s4682_s24 = scalar_lea.hbm %s7484_s1, 320  ;;  %p5148_p8 = pneg %p5132_p6 }
  0x18   : > { %p4683_p7 = scmp.ne.s32.totalorder %s7484_s1, %s4682_s24  ;;  %p4689_p11 = scmp.lt.u32.totalorder %s4682_s24, %s7484_s1 }
  0x1a   : > { %p4685_p9 = pnand %p5148_p8, %p4683_p7 }
  0x1c   : > { %p4686_p10 = pneg %p4685_p9 }
  0x1e   : > { %p4691_p12 = pnand %p4689_p11, %p4686_p10 }
  0x20   : > { %4694 = shalt.err (!%p4691_p12)
}
  0x21   : > { %s4695_s13 = scalar_lea.vmem %s5121_s14, 320  ;;  %p4703_p5 = scmp.lt.s32.totalorder %s5121_s14, %s5121_s14 }
  0x22   : > { %p4696_p13 = scmp.ne.s32.totalorder %s5121_s14, %s4695_s13  ;;  %p4704_p4 = scmp.lt.s32.totalorder %s4695_s13, %s4695_s13 }
  0x24   : > { %p4698_p0 = pnand %p4696_p13, %p5148_p8  ;;  %p4705_p7 = por %p4704_p4, %p4703_p5 }
  0x26   : > { %p4699_p2 = pneg %p4698_p0 }
  0x28   : > { %p4706_p9 = pnand %p4705_p7, %p4699_p2 }
  0x2a   : > { %4709 = shalt.err (!%p4706_p9)
}
  0x2b   : > { %s5023_s17 = smov 64   ;;  %s5024_s20 = smov 4  }
  0x2c   : > { %3887 = dma.hbm_to_vmem [thread:$0]  (!%p5132_p6), %s7484_s1, 320, %s5121_s14, [#allocation11], %s5023_s17, %s5023_s17, %s5024_s20  }
  0x2d   : > { %s4710_s26 = scalar_lea.hbm %s7416_s3, 16 }
  0x2e   : > { %p4711_p4 = scmp.ne.s32.totalorder %s7416_s3, %s4710_s26  ;;  %p4717_p12 = scmp.lt.u32.totalorder %s4710_s26, %s7416_s3 }
  0x30   : > { %p4713_p10 = pnand %p4711_p4, %p5148_p8 }
  0x32   : > { %p4714_p11 = pneg %p4713_p10 }
  0x34   : > { %p4719_p13 = pnand %p4717_p12, %p4714_p11 }
  0x36   : > { %4722 = shalt.err (!%p4719_p13)
}
  0x37   : > { %s4723_s14 = scalar_lea.vmem %s5136_s18, 16  ;;  %s4730_s22 = scalar_lea.vmem %s5136_s18, 32 }
  0x38   : > { %p4724_p0 = scmp.ne.s32.totalorder %s5136_s18, %s4723_s14  ;;  %p4731_p7 = scmp.lt.s32.totalorder %s5136_s18, %s5136_s18 }
  0x39   : > { %p4732_p9 = scmp.lt.s32.totalorder %s4730_s22, %s4723_s14 }
  0x3a   : > { %p4726_p2 = pnand %p4724_p0, %p5148_p8 }
  0x3b   : > { %p4733_p4 = por %p4732_p9, %p4731_p7 }
  0x3c   : > { %p4727_p5 = pneg %p4726_p2 }
  0x3e   : > { %p4734_p10 = pnand %p4733_p4, %p4727_p5 }
  0x40   : > { %4737 = shalt.err (!%p4734_p10)
}
  0x41   : > { %3893 = dma.hbm_to_vmem [thread:$0]  (!%p5132_p6), %s7416_s3, 16, %s5136_s18, [#allocation14]  }
  0x42   : > { %s4738_s26 = scalar_lea.hbm %s7418_s5, 320 }
  0x43   : > { %p4739_p11 = scmp.ne.s32.totalorder %s7418_s5, %s4738_s26  ;;  %p4745_p0 = scmp.lt.u32.totalorder %s4738_s26, %s7418_s5 }
  0x45   : > { %p4741_p12 = pnand %p4739_p11, %p5148_p8 }
  0x47   : > { %p4742_p13 = pneg %p4741_p12 }
  0x49   : > { %p4747_p2 = pnand %p4745_p0, %p4742_p13 }
  0x4b   : > { %4750 = shalt.err (!%p4747_p2)
}
  0x4c   : > { %s4751_s18 = scalar_lea.vmem %s5138_s21, 320  ;;  %p4759_p4 = scmp.lt.s32.totalorder %s5138_s21, %s5138_s21 }
  0x4d   : > { %p4752_p5 = scmp.ne.s32.totalorder %s5138_s21, %s4751_s18  ;;  %p4760_p10 = scmp.lt.s32.totalorder %s4751_s18, %s4751_s18 }
  0x4f   : > { %p4754_p7 = pnand %p4752_p5, %p5148_p8  ;;  %p4761_p11 = por %p4760_p10, %p4759_p4 }
  0x51   : > { %p4755_p9 = pneg %p4754_p7 }
  0x53   : > { %p4762_p12 = pnand %p4761_p11, %p4755_p9 }
  0x55   : > { %4765 = shalt.err (!%p4762_p12)
}
  0x56   : > { %3899 = dma.hbm_to_vmem [thread:$0]  (!%p5132_p6), %s7418_s5, 320, %s5138_s21, [#allocation17], %s5023_s17, %s5023_s17, %s5024_s20  }
  0x57   : > { %s5025_s23 = smov [#allocation19]   ;;  %s5026_s25 = smov [#allocation12]  }
  0x58   : > { %s337_s24 = sshll.u32 %s5025_s23, 4  ;;  %s280_s26 = sshll.u32 %s5026_s25, 4  ;;  %s338_s24 = int_to_ptr.vmem [resolvable:$true] %s337_s24  ;;  %s281_s26 = int_to_ptr.vmem [resolvable:$true] %s280_s26 }
  0x59   : > { %s4766_s13 = scalar_lea.hbm %s7420_s7, 16 }
  0x5a   : > { %p4767_p13 = scmp.ne.s32.totalorder %s7420_s7, %s4766_s13  ;;  %p4773_p5 = scmp.lt.u32.totalorder %s4766_s13, %s7420_s7 }
  0x5c   : > { %p4769_p0 = pnand %p4767_p13, %p5148_p8 }
  0x5e   : > { %p4770_p2 = pneg %p4769_p0 }
  0x60   : > { %p4775_p7 = pnand %p4773_p5, %p4770_p2 }
  0x62   : > { %4778 = shalt.err (!%p4775_p7)
}
  0x63   : > { %s4779_s21 = scalar_lea.vmem %s338_s24, 16  ;;  %s4786_s17 = scalar_lea.vmem %s338_s24, 32 }
  0x64   : > { %p4780_p9 = scmp.ne.s32.totalorder %s338_s24, %s4779_s21  ;;  %p4787_p11 = scmp.lt.s32.totalorder %s338_s24, %s338_s24 }
  0x65   : > { %p4788_p12 = scmp.lt.s32.totalorder %s4786_s17, %s4779_s21 }
  0x66   : > { %p4782_p4 = pnand %p4780_p9, %p5148_p8 }
  0x67   : > { %p4789_p1 = por %p4788_p12, %p4787_p11 }
  0x68   : > { %p4783_p10 = pneg %p4782_p4 }
  0x6a   : > { %p4790_p3 = pnand %p4789_p1, %p4783_p10 }
  0x6c   : > { %4793 = shalt.err (!%p4790_p3)
}
  0x6d   : > { %3905 = dma.hbm_to_vmem [thread:$0]  (!%p5132_p6), %s7420_s7, 16, %s338_s24, [#allocation20]  }
  0x6e   : > { %s4794_s25 = scalar_lea.hbm %s7415_s2, 16 }
  0x6f   : > { %p4795_p13 = scmp.ne.s32.totalorder %s7415_s2, %s4794_s25  ;;  %p4801_p3 = scmp.lt.u32.totalorder %s4794_s25, %s7415_s2 }
  0x71   : > { %p4797_p0 = pnand %p4795_p13, %p5148_p8 }
  0x73   : > { %p4798_p1 = pneg %p4797_p0 }
  0x75   : > { %p4803_p2 = pnand %p4801_p3, %p4798_p1 }
  0x77   : > { %4806 = shalt.err (!%p4803_p2)
}
  0x78   : > { %s4807_s18 = scalar_lea.vmem %s281_s26, 16  ;;  %s4814_s24 = scalar_lea.vmem %s281_s26, 32 }
  0x79   : > { %p4808_p5 = scmp.ne.s32.totalorder %s281_s26, %s4807_s18  ;;  %p4815_p4 = scmp.lt.s32.totalorder %s281_s26, %s281_s26 }
  0x7a   : > { %p4816_p10 = scmp.lt.s32.totalorder %s4814_s24, %s4807_s18 }
  0x7b   : > { %p4810_p7 = pnand %p4808_p5, %p5148_p8 }
  0x7c   : > { %p4817_p11 = por %p4816_p10, %p4815_p4 }
  0x7d   : > { %p4811_p9 = pneg %p4810_p7 }
  0x7f   : > { %p4818_p12 = pnand %p4817_p11, %p4811_p9 }
  0x81   : > { %4821 = shalt.err (!%p4818_p12)
}
  0x82   : > { %3890 = dma.hbm_to_vmem [thread:$0]  (!%p5132_p6), %s7415_s2, 16, %s281_s26, [#allocation11]  }
  0x83   : > { %s5027_s17 = smov [#allocation15]   ;;  %s5028_s9 = smov [#allocation18]  }
  0x84   : > { %s302_s20 = sshll.u32 %s5027_s17, 4  ;;  %s326_s1 = sshll.u32 %s5028_s9, 4  ;;  %s303_s20 = int_to_ptr.vmem [resolvable:$true] %s302_s20  ;;  %s327_s1 = int_to_ptr.vmem [resolvable:$true] %s326_s1 }
  0x85   : > { %s4822_s28 = scalar_lea.hbm %s7417_s4, 16 }
  0x86   : > { %p4823_p13 = scmp.ne.s32.totalorder %s7417_s4, %s4822_s28  ;;  %p4829_p3 = scmp.lt.u32.totalorder %s4822_s28, %s7417_s4 }
  0x88   : > { %p4825_p0 = pnand %p4823_p13, %p5148_p8 }
  0x8a   : > { %p4826_p1 = pneg %p4825_p0 }
  0x8c   : > { %p4831_p2 = pnand %p4829_p3, %p4826_p1 }
  0x8e   : > { %4834 = shalt.err (!%p4831_p2)
}
  0x8f   : > { %s4835_s26 = scalar_lea.vmem %s303_s20, 16  ;;  %s4842_s24 = scalar_lea.vmem %s303_s20, 32 }
  0x90   : > { %p4836_p5 = scmp.ne.s32.totalorder %s303_s20, %s4835_s26  ;;  %p4843_p4 = scmp.lt.s32.totalorder %s303_s20, %s303_s20 }
  0x91   : > { %p4844_p10 = scmp.lt.s32.totalorder %s4842_s24, %s4835_s26 }
  0x92   : > { %p4838_p7 = pnand %p4836_p5, %p5148_p8 }
  0x93   : > { %p4845_p11 = por %p4844_p10, %p4843_p4 }
  0x94   : > { %p4839_p9 = pneg %p4838_p7 }
  0x96   : > { %p4846_p12 = pnand %p4845_p11, %p4839_p9 }
  0x98   : > { %4849 = shalt.err (!%p4846_p12)
}
  0x99   : > { %3896 = dma.hbm_to_vmem [thread:$0]  (!%p5132_p6), %s7417_s4, 16, %s303_s20, [#allocation14]  }
  0x9a   : > { %s4850_s23 = scalar_lea.hbm %s7419_s6, 16 }
  0x9b   : > { %p4851_p13 = scmp.ne.s32.totalorder %s7419_s6, %s4850_s23  ;;  %p4857_p3 = scmp.lt.u32.totalorder %s4850_s23, %s7419_s6 }
  0x9d   : > { %p4853_p0 = pnand %p4851_p13, %p5148_p8 }
  0x9f   : > { %p4854_p1 = pneg %p4853_p0 }
  0xa1   : > { %p4859_p2 = pnand %p4857_p3, %p4854_p1 }
  0xa3   : > { %4862 = shalt.err (!%p4859_p2)
}
  0xa4   : > { %s4863_s14 = scalar_lea.vmem %s327_s1, 16  ;;  %s4870_s20 = scalar_lea.vmem %s327_s1, 32 }
  0xa5   : > { %p4864_p5 = scmp.ne.s32.totalorder %s327_s1, %s4863_s14  ;;  %p4871_p4 = scmp.lt.s32.totalorder %s327_s1, %s327_s1 }
  0xa6   : > { %p4872_p10 = scmp.lt.s32.totalorder %s4870_s20, %s4863_s14 }
  0xa7   : > { %p4866_p7 = pnand %p4864_p5, %p5148_p8 }
  0xa8   : > { %p4873_p11 = por %p4872_p10, %p4871_p4 }
  0xa9   : > { %p4867_p9 = pneg %p4866_p7 }
  0xab   : > { %p4874_p12 = pnand %p4873_p11, %p4867_p9 }
  0xad   : > { %4877 = shalt.err (!%p4874_p12)
}
  0xae   : > { %3902 = dma.hbm_to_vmem [thread:$0]  (!%p5132_p6), %s7419_s6, 16, %s327_s1, [#allocation17]  }
  0xaf   : > { %s5029_s24 = smov [#allocation21]   ;;  %s4878_s9 = scalar_lea.hbm %s7421_s8, 16 }
  0xb0   : > { %s348_s22 = sshll.u32 %s5029_s24, 4  ;;  %p4879_p13 = scmp.ne.s32.totalorder %s7421_s8, %s4878_s9  ;;  %s349_s22 = int_to_ptr.vmem [resolvable:$true] %s348_s22 }
  0xb1   : > { %p4885_p3 = scmp.lt.u32.totalorder %s4878_s9, %s7421_s8 }
  0xb2   : > { %p4881_p0 = pnand %p4879_p13, %p5148_p8 }
  0xb4   : > { %p4882_p1 = pneg %p4881_p0 }
  0xb6   : > { %p4887_p2 = pnand %p4885_p3, %p4882_p1 }
  0xb8   : > { %4890 = shalt.err (!%p4887_p2)
}
  0xb9   : > { %s4891_s1 = scalar_lea.vmem %s349_s22, 16  ;;  %s4898_s13 = scalar_lea.vmem %s349_s22, 32 }
  0xba   : > { %p4892_p5 = scmp.ne.s32.totalorder %s349_s22, %s4891_s1  ;;  %p4899_p4 = scmp.lt.s32.totalorder %s349_s22, %s349_s22 }
  0xbb   : > { %p4900_p10 = scmp.lt.s32.totalorder %s4898_s13, %s4891_s1 }
  0xbc   : > { %p4894_p7 = pnand %p4892_p5, %p5148_p8 }
  0xbd   : > { %p4901_p11 = por %p4900_p10, %p4899_p4 }
  0xbe   : > { %p4895_p9 = pneg %p4894_p7 }
  0xc0   : > { %p4902_p12 = pnand %p4901_p11, %p4895_p9 }
  0xc2   : > { %4905 = shalt.err (!%p4902_p12)
}
  0xc3   : > { %3908 = dma.hbm_to_vmem [thread:$0]  (!%p5132_p6), %s7421_s8, 16, %s349_s22, [#allocation20]  }
  0xc4   : > { %s3646_s27 = sadd.s32 4294967294, %s5018_s12   ;;  %s5314_s19 = sadd.s32 1, %s5018_s12  }
  0xc5   : > { %s33_s18 = ssub.s32 %s5018_s12, %s5314_s19  ;;  %s36_s26 = sadd.s32 1, %s5014_s11 }
  0xc6   : > { %p34_p8 = scmp.eq.s32.totalorder %s33_s18, 0  ;;  %p43_p13 = scmp.ne.s32.totalorder %s5014_s11, %s5010_s10 }
  0xc7   : > { %p44_p0 = scmp.eq.s32.totalorder %s5018_s12, 0  ;;  %p49_p1 = scmp.ne.s32.totalorder %s5010_s10, %s5006_s30 }
  0xc8   : > { %s5325_s24 = scalar_select %p34_p8, %s5014_s11, %s36_s26  }
  0xc9   : > { %p5327_p3 = por %p44_p0, %p43_p13  ;;  %p7487_p2 = scmp.eq.s32.totalorder %s5116_s15, 0 }
  0xca   : > { %p241_p5 = scmp.eq.s32.totalorder %s5116_s15, 1  ;;  %p247_p7 = scmp.eq.s32.totalorder %s3646_s27, 1 }
  0xcb   : > { %p5333_p6 = por %p7487_p2, %p49_p1  ;;  %p3925_p9 = scmp.lt.s32.totalorder %s5018_s12, 2 }
  0xcc   : > { %s359_s17 = sand.u32 1, %s5014_s11   ;;  %p5340_p4 = por %p241_p5, %p43_p13 }
  0xcd   : > { %p5344_p10 = por %p247_p7, %p49_p1  ;;  %s3657_s25 = sshll.u32 %s359_s17, 8 }
  0xce   : > { %s7489_s9 = scalar_select %p5340_p4, 1, 0 }
  0xcf   : > { %s7490_s23 = scalar_select %p5344_p10, 1, 0 }
  0xd0   : > { %s3741_s28 = sshll.u32 %s5018_s12, 12  ;;  %s363_s14 = scalar_lea.vmem [#allocation7], %s3657_s25 }
  0xd1   : > { %s5352_s13 = scalar_lea.hbm %s7413_s0, %s3741_s28  ;;  %s370_s20 = sshll.u32 %s363_s14, 4  ;;  %s5354_s20 = int_to_ptr.vmem [resolvable:$true] %s370_s20 }
  0xd2   : > { %p5358_p11 = pnand %p3925_p9, %p5327_p3  ;;  %s5362_s18 = scalar_lea.sflag [#allocation8], %s359_s17 }
  0xd3   : > { %s4906_s26 = scalar_lea.hbm %s5352_s13, 4096  ;;  %s4911_s21 = scalar_lea.hbm %s7413_s0, 8192 }
  0xd4   : > { %p4907_p12 = scmp.ne.s32.totalorder %s5352_s13, %s4906_s26  ;;  %p4908_p8 = pneg %p5358_p11 }
  0xd5   : > { %p4912_p1 = scmp.lt.u32.totalorder %s5352_s13, %s7413_s0  ;;  %p4913_p3 = scmp.lt.u32.totalorder %s4911_s21, %s4906_s26 }
  0xd6   : > { %p4909_p13 = pnand %p4908_p8, %p4907_p12  ;;  %p4915_p5 = scmp.lt.u32.totalorder %s4906_s26, %s5352_s13 }
  0xd7   : > { %p4914_p2 = por %p4913_p3, %p4912_p1 }
  0xd8   : > { %p4910_p0 = pneg %p4909_p13 }
  0xd9   : > { %p4916_p7 = por %p4915_p5, %p4914_p2 }
  0xdb   : > { %p4917_p9 = pnand %p4916_p7, %p4910_p0 }
  0xdd   : > { %4920 = shalt.err (!%p4917_p9)
}
  0xde   : > { %s4921_s17 = scalar_lea.vmem %s5354_s20, 4096  ;;  %s5030_s14 = smov [#allocation7]  }
  0xdf   : > { %p4922_p12 = scmp.ne.s32.totalorder %s5354_s20, %s4921_s17  ;;  %s4926_s25 = sshll.u32 %s5030_s14, 4  ;;  %s4927_s25 = int_to_ptr.vmem [resolvable:$false] %s4926_s25 }
  0xe0   : > { %s4928_s28 = scalar_lea.vmem %s4927_s25, 8192  ;;  %p4929_p4 = scmp.lt.s32.totalorder %s5354_s20, %s4927_s25 }
  0xe1   : > { %p4924_p13 = pnand %p4922_p12, %p4908_p8  ;;  %p4930_p1 = scmp.lt.s32.totalorder %s4928_s28, %s4921_s17 }
  0xe3   : > { %p4925_p10 = pneg %p4924_p13  ;;  %p4931_p3 = por %p4930_p1, %p4929_p4 }
  0xe5   : > { %p4932_p2 = pnand %p4931_p3, %p4925_p10 }
  0xe7   : > { %4935 = shalt.err (!%p4932_p2)
}
  0xe8   : > { %s5031_s26 = smov 128   ;;  %s5032_s21 = smov 8  }
  0xe9   : > { %3912 = dma.hbm_to_vmem [thread:$0]  (!%p5358_p11), %s5352_s13, 4096, %s5354_s20, %s5362_s18, %s5031_s26, %s5031_s26, %s5032_s21  }
  0xea   : > { %p7492_p8 = scmp.ne.s32.totalorder %s7482_s16, 0 }
  0xec   : > { %382 = sbr.rel (%p7492_p8) target bundleno = 1971 (0x7b3), region = 56 }
  0xf3   : > { %s5393_s29 = sand.u32 1, %s5010_s10  }
  0xf4   : > { %s3661_s1 = sshll.u32 %s5393_s29, 8  ;;  %s385_s17 = scalar_lea.sflag [#allocation8], %s5393_s29 }
  0xf5   : > { %s5397_s14 = scalar_lea.vmem [#allocation7], %s3661_s1 }
  0xf6   : > { %4981 = dma.done.wait (%p5333_p6), %s385_s17, 4096  }
  0xf7   : > { %4983 = vsyncadd (%p5333_p6), %s385_s17, 4294963200  ;;  %p7493_p4 = scmp.eq.s32.totalorder %s5116_s15, 0 }
  0xf9   : > { %4985 = dma.done.wait (%p7493_p4), [#allocation11], 336   ;;  %p7494_p10 = pmov %p7493_p4 }
  0xfa   : > { %p7495_p11 = pmov %p7493_p4 }
  0xfb   : > { %4987 = vsyncadd (%p7494_p10), [#allocation11], 4294966960 }
  0xfc   : > { %4989 = dma.done.wait (%p7495_p11), [#allocation14], 32   ;;  %p7496_p0 = pmov %p7493_p4 }
  0xfe   : > { %4991 = vsyncadd (%p7496_p0), [#allocation14], 4294967264  ;;  %p7497_p5 = pmov %p7496_p0 }
  0xff   : > { %p7498_p7 = pmov %p7496_p0 }
 0x100   : > { %4993 = dma.done.wait (%p7497_p5), [#allocation17], 336  }
 0x101   : > { %4995 = vsyncadd (%p7498_p7), [#allocation17], 4294966960  ;;  %p7499_p6 = pmov %p7496_p0 }
 0x102   : > { %p7500_p9 = pmov %p7496_p0 }
 0x103   : > { %4997 = dma.done.wait (%p7499_p6), [#allocation20], 32  }
 0x104   : > { %4999 = vsyncadd (%p7500_p9), [#allocation20], 4294967264  ;;  %vm7437_vm0 = vcmask 31744   ;;  %vm459_vm1 = vcmask 26624   ;;  %v5033_v0 = vmov -inf   ;;  %vm7429_vm2 = vcmask 24576  }
 0x105   : > { %476 = vst.msk [vmem:[#allocation2 + $0x90] sm:$0xff] %vm7437_vm0, %v5033_v0  ;;  %477 = vst.msk [vmem:[#allocation2 + $0x98] sm:$0xff] %vm7437_vm0, %v5033_v0  ;;  %v5034_v1 = vmov 0.0   ;;  %v548_v2 = vld [vmem:[%s5397_s14 + $0x50] sm:$0xff]  ;;  %v549_v3 = vld [vmem:[%s5397_s14 + $0x58] sm:$0xff]  ;;  %vm7430_vm3 = vcmask 1040384  }
 0x106   : > { %478 = vst.msk [vmem:[#allocation2 + $0xa0] sm:$0x7] %vm459_vm1, %v5033_v0  ;;  %481 = vst.msk [vmem:[#allocation2 + $0xb8] sm:$0x7] %vm459_vm1, %v5033_v0  ;;  %v550_v4 = vld [vmem:[%s5397_s14 + $0x60] sm:$0xff]  ;;  %v551_v5 = vld [vmem:[%s5397_s14 + $0x68] sm:$0xff] }
 0x107   : > { %479 = vst.msk [vmem:[#allocation2 + $0xa8] sm:$0xff] %vm7437_vm0, %v5033_v0  ;;  %480 = vst.msk [vmem:[#allocation2 + $0xb0] sm:$0xff] %vm7437_vm0, %v5033_v0  ;;  %v552_v6 = vld [vmem:[%s5397_s14 + $0x70] sm:$0xff]  ;;  %v553_v7 = vld [vmem:[%s5397_s14 + $0x78] sm:$0xff]  ;;  %vm7436_vm4 = vcmask 1041408   ;;  %s5035_s16 = smov 12  }
 0x108   : > { %482 = vst.msk [vmem:[#allocation2 + $0xc0] sm:$0xff] %vm7437_vm0, %v5033_v0  ;;  %483 = vst.msk [vmem:[#allocation2 + $0xc8] sm:$0xff] %vm7437_vm0, %v5033_v0  ;;  %v554_v8 = vld [vmem:[%s5397_s14 + $0x80] sm:$0xff]  ;;  %v555_v9 = vld [vmem:[%s5397_s14 + $0x88] sm:$0xff]  ;;  %s5036_s22 = smov 24   ;;  %vm7427_vm5 = vcmask 1046528  }
 0x109   : > { %484 = vst.msk [vmem:[#allocation2 + $0xd0] sm:$0x7] %vm459_vm1, %v5033_v0  ;;  %487 = vst.msk [vmem:[#allocation2 + $0xe8] sm:$0x7] %vm459_vm1, %v5033_v0  ;;  %v556_v10 = vld [vmem:[%s5397_s14 + $0x90] sm:$0xff]  ;;  %v557_v11 = vld [vmem:[%s5397_s14 + $0x98] sm:$0xff] }
 0x10a   : > { %485 = vst.msk [vmem:[#allocation2 + $0xd8] sm:$0xff] %vm7437_vm0, %v5033_v0  ;;  %486 = vst.msk [vmem:[#allocation2 + $0xe0] sm:$0xff] %vm7437_vm0, %v5033_v0  ;;  %v538_v12 = vld [vmem:[%s5397_s14] sm:$0xff]  ;;  %v539_v13 = vld [vmem:[%s5397_s14 + $0x8] sm:$0xff]  ;;  %vm7428_vm6 = vcmask 1045504   ;;  %s5037_s13 = smov 4  }
 0x10b   : > { %488 = vst.msk [vmem:[#allocation2 + $0xf0] sm:$0xff] %vm7437_vm0, %v5033_v0  ;;  %489 = vst.msk [vmem:[#allocation2 + $0xf8] sm:$0xff] %vm7437_vm0, %v5033_v0  ;;  %v540_v14 = vld [vmem:[%s5397_s14 + $0x10] sm:$0xff]  ;;  %v541_v15 = vld [vmem:[%s5397_s14 + $0x18] sm:$0xff]  ;;  %s5038_s20 = smov 8   ;;  %s7463_s27 = smov 20  }
 0x10c   : > { %490 = vst.msk [vmem:[#allocation2 + $0x100] sm:$0x7] %vm459_vm1, %v5033_v0  ;;  %460 = vst.msk [vmem:[#allocation2 + $0x10] sm:$0x7] %vm459_vm1, %v5033_v0  ;;  %v542_v16 = vld [vmem:[%s5397_s14 + $0x20] sm:$0xff]  ;;  %v543_v17 = vld [vmem:[%s5397_s14 + $0x28] sm:$0xff] }
 0x10d   : > { %457 = vst.msk [vmem:[#allocation2] sm:$0xff] %vm7437_vm0, %v5033_v0  ;;  %458 = vst.msk [vmem:[#allocation2 + $0x8] sm:$0xff] %vm7437_vm0, %v5033_v0  ;;  %v544_v18 = vld [vmem:[%s5397_s14 + $0x30] sm:$0xff]  ;;  %v545_v19 = vld [vmem:[%s5397_s14 + $0x38] sm:$0xff]  ;;  %s5040_s18 = smov 16   ;;  %s7465_s25 = smov 28  }
 0x10e   : > { %461 = vst.msk [vmem:[#allocation2 + $0x18] sm:$0xff] %vm7437_vm0, %v5033_v0  ;;  %462 = vst.msk [vmem:[#allocation2 + $0x20] sm:$0xff] %vm7437_vm0, %v5033_v0  ;;  %v546_v20 = vld [vmem:[%s5397_s14 + $0x40] sm:$0xff]  ;;  %v547_v21 = vld [vmem:[%s5397_s14 + $0x48] sm:$0xff]  ;;  %s7461_s28 = smov 32   ;;  %vm7447_vm7 = vcmask 64512  }
 0x10f   : > { %463 = vst.msk [vmem:[#allocation2 + $0x28] sm:$0x7] %vm459_vm1, %v5033_v0  ;;  %466 = vst.msk [vmem:[#allocation2 + $0x40] sm:$0x7] %vm459_vm1, %v5033_v0  ;;  %v558_v52 = vld [vmem:[%s5397_s14 + $0xa0] sm:$0xff]  ;;  %v559_v56 = vld [vmem:[%s5397_s14 + $0xa8] sm:$0xff] }
 0x110   : > { %464 = vst.msk [vmem:[#allocation2 + $0x30] sm:$0xff] %vm7437_vm0, %v5033_v0  ;;  %465 = vst.msk [vmem:[#allocation2 + $0x38] sm:$0xff] %vm7437_vm0, %v5033_v0  ;;  %vm7446_vm8 = vcmask 97280   ;;  %vm7438_vm9 = vcmask 130048   ;;  %vm7440_vm10 = vcmask 162816   ;;  %vm7449_vm11 = vcmask 195584  }
 0x111   : > { %467 = vst.msk [vmem:[#allocation2 + $0x48] sm:$0xff] %vm7437_vm0, %v5033_v0  ;;  %468 = vst.msk [vmem:[#allocation2 + $0x50] sm:$0xff] %vm7437_vm0, %v5033_v0  ;;  %vm7452_vm12 = vcmask 228352   ;;  %vm7442_vm13 = vcmask 261120   ;;  %vm1432_vm14 = vcmask 1044484   ;;  %vm7441_vm15 = vcmask 289793  }
 0x112   : > { %469 = vst.msk [vmem:[#allocation2 + $0x58] sm:$0x7] %vm459_vm1, %v5033_v0  ;;  %472 = vst.msk [vmem:[#allocation2 + $0x70] sm:$0x7] %vm459_vm1, %v5033_v0  ;;  %p7911_p13 = scmp.ne.s32.totalorder %s7489_s9, 0 }
 0x113   : > { %470 = vst.msk [vmem:[#allocation2 + $0x60] sm:$0xff] %vm7437_vm0, %v5033_v0  ;;  %471 = vst.msk [vmem:[#allocation2 + $0x68] sm:$0xff] %vm7437_vm0, %v5033_v0  ;;  %v604_v41 = vld [vmem:[#allocation2 + $0x10] ss:$2 sm:$0x1] }
 0x114   : > { %473 = vst.msk [vmem:[#allocation2 + $0x78] sm:$0xff] %vm7437_vm0, %v5033_v0  ;;  %474 = vst.msk [vmem:[#allocation2 + $0x80] sm:$0xff] %vm7437_vm0, %v5033_v0  ;;  %v602_v33 = vld [vmem:[#allocation2] ss:$2 sm:$0xff]  ;;  %v678_v34 = vld [vmem:[#allocation2 + $0x1] ss:$2 sm:$0xff] }
 0x115   : > { %475 = vst.msk [vmem:[#allocation2 + $0x88] sm:$0x7] %vm459_vm1, %v5033_v0  ;;  %493 = vst.msk [vmem:[#allocation2 + $0x118] sm:$0x7] %vm459_vm1, %v5033_v0  ;;  %v753_v60 = vmax.f32 %v602_v33, %v678_v34 }
 0x116   : > { %491 = vst.msk [vmem:[#allocation2 + $0x108] sm:$0xff] %vm7437_vm0, %v5033_v0  ;;  %492 = vst.msk [vmem:[#allocation2 + $0x110] sm:$0xff] %vm7437_vm0, %v5033_v0  ;;  %v680_v42 = vld [vmem:[#allocation2 + $0x11] ss:$2 sm:$0x1] }
 0x117   : > { %494 = vst.msk [vmem:[#allocation2 + $0x120] sm:$0xff] %vm7437_vm0, %v5033_v0  ;;  %495 = vst.msk [vmem:[#allocation2 + $0x128] sm:$0xff] %vm7437_vm0, %v5033_v0  ;;  %v754_v63 = vmax.f32 %v604_v41, %v680_v42 }
 0x118   : > { %496 = vst.msk [vmem:[#allocation2 + $0x130] sm:$0x7] %vm459_vm1, %v5033_v0  ;;  %499 = vst.msk [vmem:[#allocation2 + $0x148] sm:$0x7] %vm459_vm1, %v5033_v0 }
 0x119   : > { %497 = vst.msk [vmem:[#allocation2 + $0x138] sm:$0xff] %vm7437_vm0, %v5033_v0  ;;  %498 = vst.msk [vmem:[#allocation2 + $0x140] sm:$0xff] %vm7437_vm0, %v5033_v0 }
 0x11a   : > { %500 = vst.msk [vmem:[#allocation2 + $0x150] sm:$0xff] %vm7437_vm0, %v5033_v0  ;;  %501 = vst.msk [vmem:[#allocation2 + $0x158] sm:$0xff] %vm7437_vm0, %v5033_v0 }
 0x11b   : > { %502 = vst.msk [vmem:[#allocation2 + $0x160] sm:$0x7] %vm459_vm1, %v5033_v0  ;;  %505 = vst.msk [vmem:[#allocation2 + $0x178] sm:$0x7] %vm459_vm1, %v5033_v0 }
 0x11c   : > { %503 = vst.msk [vmem:[#allocation2 + $0x168] sm:$0xff] %vm7437_vm0, %v5033_v0  ;;  %504 = vst.msk [vmem:[#allocation2 + $0x170] sm:$0xff] %vm7437_vm0, %v5033_v0 }
 0x11d   : > { %506 = vst.msk [vmem:[#allocation2 + $0x180] sm:$0xff] %vm7437_vm0, %v5033_v0  ;;  %507 = vst.msk [vmem:[#allocation2 + $0x188] sm:$0xff] %vm7437_vm0, %v5033_v0 }
 0x11e   : > { %508 = vst.msk [vmem:[#allocation2 + $0x190] sm:$0x7] %vm459_vm1, %v5033_v0  ;;  %511 = vst.msk [vmem:[#allocation2 + $0x1a8] sm:$0x7] %vm459_vm1, %v5033_v0 }
 0x11f   : > { %509 = vst.msk [vmem:[#allocation2 + $0x198] sm:$0xff] %vm7437_vm0, %v5033_v0  ;;  %510 = vst.msk [vmem:[#allocation2 + $0x1a0] sm:$0xff] %vm7437_vm0, %v5033_v0 }
 0x120   : > { %512 = vst.msk [vmem:[#allocation2 + $0x1b0] sm:$0xff] %vm7437_vm0, %v5033_v0  ;;  %513 = vst.msk [vmem:[#allocation2 + $0x1b8] sm:$0xff] %vm7437_vm0, %v5033_v0 }
 0x121   : > { %514 = vst.msk [vmem:[#allocation2 + $0x1c0] sm:$0x7] %vm459_vm1, %v5033_v0  ;;  %vm7431_vm1 = vcmask 287744  }
 0x122   : > { %530 = vst.msk [vmem:[#allocation2 + $0x101] sm:$0x1] %vm7429_vm2, %v5034_v1  ;;  %526 = vst.msk [vmem:[#allocation2 + $0xa1] sm:$0x1] %vm7429_vm2, %v5034_v1 }
 0x123   : > { %527 = vst.msk [vmem:[#allocation2 + $0xb9] sm:$0x1] %vm7429_vm2, %v5034_v1  ;;  %528 = vst.msk [vmem:[#allocation2 + $0xd1] sm:$0x1] %vm7429_vm2, %v5034_v1 }
 0x124   : > { %529 = vst.msk [vmem:[#allocation2 + $0xe9] sm:$0x1] %vm7429_vm2, %v5034_v1  ;;  %521 = vst.msk [vmem:[#allocation2 + $0x29] sm:$0x1] %vm7429_vm2, %v5034_v1 }
 0x125   : > { %522 = vst.msk [vmem:[#allocation2 + $0x41] sm:$0x1] %vm7429_vm2, %v5034_v1  ;;  %519 = vst.msk [vmem:[#allocation2 + $0x1a9] sm:$0x1] %vm7429_vm2, %v5034_v1 }
 0x126   : > { %516 = vst.msk [vmem:[#allocation2 + $0x199] sm:$0xff] %vm7437_vm0, %v5034_v1  ;;  %517 = vst.msk [vmem:[#allocation2 + $0x1a1] sm:$0xff] %vm7437_vm0, %v5034_v1 }
 0x127   : > { %523 = vst.msk [vmem:[#allocation2 + $0x59] sm:$0x1] %vm7429_vm2, %v5034_v1  ;;  %524 = vst.msk [vmem:[#allocation2 + $0x71] sm:$0x1] %vm7429_vm2, %v5034_v1 }
 0x128   : > { %525 = vst.msk [vmem:[#allocation2 + $0x89] sm:$0x1] %vm7429_vm2, %v5034_v1  ;;  %531 = vst.msk [vmem:[#allocation2 + $0x119] sm:$0x1] %vm7429_vm2, %v5034_v1 }
 0x129   : > { %532 = vst.msk [vmem:[#allocation2 + $0x131] sm:$0x1] %vm7429_vm2, %v5034_v1  ;;  %533 = vst.msk [vmem:[#allocation2 + $0x149] sm:$0x1] %vm7429_vm2, %v5034_v1 }
 0x12a   : > { %534 = vst.msk [vmem:[#allocation2 + $0x161] sm:$0x1] %vm7429_vm2, %v5034_v1  ;;  %535 = vst.msk [vmem:[#allocation2 + $0x179] sm:$0x1] %vm7429_vm2, %v5034_v1 }
 0x12b   : > { %536 = vst.msk [vmem:[#allocation2 + $0x191] sm:$0x1] %vm7429_vm2, %v5034_v1  ;;  %537 = vst.msk [vmem:[#allocation2 + $0x1a9] sm:$0x1] %vm7429_vm2, %v5034_v1  ;;  %v560_v1 = vld [vmem:[%s5397_s14 + $0xb0] sm:$0xff] }
 0x12c   : > { %580 = vst.msk [vmem:[#allocation2 + $0x91] sm:$0xff] %vm7437_vm0, %v548_v2  ;;  %581 = vst.msk [vmem:[#allocation2 + $0x99] sm:$0xff] %vm7437_vm0, %v549_v3  ;;  %v684_v61 = vld [vmem:[#allocation2 + $0x29] ss:$2 sm:$0x1] }
 0x12d   : > { %582 = vst.msk [vmem:[#allocation2 + $0xa9] sm:$0xff] %vm7437_vm0, %v550_v4  ;;  %583 = vst.msk [vmem:[#allocation2 + $0xb1] sm:$0xff] %vm7437_vm0, %v551_v5  ;;  %v688_v2 = vld [vmem:[#allocation2 + $0x41] ss:$2 sm:$0x1] }
 0x12e   : > { %584 = vst.msk [vmem:[#allocation2 + $0xc1] sm:$0xff] %vm7437_vm0, %v552_v6  ;;  %585 = vst.msk [vmem:[#allocation2 + $0xc9] sm:$0xff] %vm7437_vm0, %v553_v7  ;;  %v561_v6 = vld [vmem:[%s5397_s14 + $0xb8] sm:$0xff] }
 0x12f   : > { %586 = vst.msk [vmem:[#allocation2 + $0xd9] sm:$0xff] %vm7437_vm0, %v554_v8  ;;  %587 = vst.msk [vmem:[#allocation2 + $0xe1] sm:$0xff] %vm7437_vm0, %v555_v9  ;;  %v700_v42 = vld [vmem:[#allocation2 + $0x89] ss:$2 sm:$0x1] }
 0x130   : > { %588 = vst.msk [vmem:[#allocation2 + $0xf1] sm:$0xff] %vm7437_vm0, %v556_v10  ;;  %589 = vst.msk [vmem:[#allocation2 + $0xf9] sm:$0xff] %vm7437_vm0, %v557_v11  ;;  %v792_v10 = vld [vmem:[#allocation2 + $0x2] ss:$2 sm:$0xff] }
 0x131   : > { %570 = vst.msk [vmem:[#allocation2 + $0x19] sm:$0xff] %vm7437_vm0, %v538_v12  ;;  %571 = vst.msk [vmem:[#allocation2 + $0x21] sm:$0xff] %vm7437_vm0, %v539_v13  ;;  %v794_v13 = vld [vmem:[#allocation2 + $0x12] ss:$2 sm:$0x1] }
 0x132   : > { %572 = vst.msk [vmem:[#allocation2 + $0x31] sm:$0xff] %vm7437_vm0, %v540_v14  ;;  %573 = vst.msk [vmem:[#allocation2 + $0x39] sm:$0xff] %vm7437_vm0, %v541_v15  ;;  %v798_v14 = vld [vmem:[#allocation2 + $0x2a] ss:$2 sm:$0x1]  ;;  %v867_v15 = vmax.f32 %v753_v60, %v792_v10 }
 0x133   : > { %574 = vst.msk [vmem:[#allocation2 + $0x49] sm:$0xff] %vm7437_vm0, %v542_v16  ;;  %575 = vst.msk [vmem:[#allocation2 + $0x51] sm:$0xff] %vm7437_vm0, %v543_v17  ;;  %v626_v22 = vld [vmem:[#allocation2 + $0x90] ss:$2 sm:$0xff]  ;;  %v702_v23 = vld [vmem:[#allocation2 + $0x91] ss:$2 sm:$0xff] }
 0x134   : > { %576 = vst.msk [vmem:[#allocation2 + $0x61] sm:$0xff] %vm7437_vm0, %v544_v18  ;;  %577 = vst.msk [vmem:[#allocation2 + $0x69] sm:$0xff] %vm7437_vm0, %v545_v19  ;;  %v816_v24 = vld [vmem:[#allocation2 + $0x92] ss:$2 sm:$0xff]  ;;  %v706_v27 = vld [vmem:[#allocation2 + $0xa9] ss:$2 sm:$0xff]  ;;  %v765_v28 = vmax.f32 %v626_v22, %v702_v23 }
 0x135   : > { %578 = vst.msk [vmem:[#allocation2 + $0x79] sm:$0xff] %vm7437_vm0, %v546_v20  ;;  %579 = vst.msk [vmem:[#allocation2 + $0x81] sm:$0xff] %vm7437_vm0, %v547_v21  ;;  %v630_v25 = vld [vmem:[#allocation2 + $0xa8] ss:$2 sm:$0xff]  ;;  %v710_v30 = vld [vmem:[#allocation2 + $0xc1] ss:$2 sm:$0xff]  ;;  %v868_v20 = vmax.f32 %v754_v63, %v794_v13 }
 0x136   : > { %v634_v26 = vld [vmem:[#allocation2 + $0xc0] ss:$2 sm:$0xff]  ;;  %v714_v31 = vld [vmem:[#allocation2 + $0xd9] ss:$2 sm:$0xff]  ;;  %v767_v32 = vmax.f32 %v630_v25, %v706_v27  ;;  %v879_v40 = vmax.f32 %v765_v28, %v816_v24  ;;  %590 = vst.msk [vmem:[#allocation2 + $0x109] sm:$0xff] %vm7437_vm0, %v558_v52  ;;  %591 = vst.msk [vmem:[#allocation2 + $0x111] sm:$0xff] %vm7437_vm0, %v559_v56 }
 0x137   : > { %v638_v29 = vld [vmem:[#allocation2 + $0xd8] ss:$2 sm:$0xff]  ;;  %v718_v36 = vld [vmem:[#allocation2 + $0xf1] ss:$2 sm:$0xff]  ;;  %v769_v37 = vmax.f32 %v634_v26, %v710_v30  ;;  %592 = vst.msk [vmem:[#allocation2 + $0x121] sm:$0xff] %vm7437_vm0, %v560_v1  ;;  %593 = vst.msk [vmem:[#allocation2 + $0x129] sm:$0xff] %vm7437_vm0, %v561_v6 }
 0x138   : > { %v642_v35 = vld [vmem:[#allocation2 + $0xf0] ss:$2 sm:$0xff]  ;;  %v771_v38 = vmax.f32 %v638_v29, %v714_v31  ;;  %917 = vst.msk [vmem:[#allocation3 + $0x60] sm:$0xff] %vm7437_vm0, %v879_v40  ;;  %v608_v51 = vld [vmem:[#allocation2 + $0x28] ss:$2 sm:$0x1] }
 0x139   : > { %v820_v39 = vld [vmem:[#allocation2 + $0xaa] ss:$2 sm:$0xff]  ;;  %v773_v43 = vmax.f32 %v642_v35, %v718_v36  ;;  %v828_v45 = vld [vmem:[#allocation2 + $0xda] ss:$2 sm:$0xff]  ;;  %v682_v59 = vld [vmem:[#allocation2 + $0x19] ss:$2 sm:$0xff]  ;;  %v756_v4 = vmax.f32 %v608_v51, %v684_v61 }
 0x13a   : > { %v824_v44 = vld [vmem:[#allocation2 + $0xc2] ss:$2 sm:$0xff]  ;;  %v832_v46 = vld [vmem:[#allocation2 + $0xf2] ss:$2 sm:$0xff]  ;;  %v881_v47 = vmax.f32 %v767_v32, %v820_v39  ;;  %v885_v49 = vmax.f32 %v771_v38, %v828_v45  ;;  %v686_v62 = vld [vmem:[#allocation2 + $0x31] ss:$2 sm:$0xff] }
 0x13b   : > { %v883_v48 = vmax.f32 %v769_v37, %v824_v44  ;;  %v606_v50 = vld [vmem:[#allocation2 + $0x18] ss:$2 sm:$0xff]  ;;  %v887_v53 = vmax.f32 %v773_v43, %v832_v46  ;;  %v614_v57 = vld [vmem:[#allocation2 + $0x48] ss:$2 sm:$0xff]  ;;  %v690_v3 = vld [vmem:[#allocation2 + $0x49] ss:$2 sm:$0xff]  ;;  %v870_v21 = vmax.f32 %v756_v4, %v798_v14 }
 0x13c   : > { %919 = vst.msk [vmem:[#allocation3 + $0x70] sm:$0xff] %vm7437_vm0, %v881_v47  ;;  %v610_v54 = vld [vmem:[#allocation2 + $0x30] ss:$2 sm:$0xff]  ;;  %v612_v55 = vld [vmem:[#allocation2 + $0x40] ss:$2 sm:$0x1]  ;;  %v755_v0 = vmax.f32 %v606_v50, %v682_v59  ;;  %v759_v9 = vmax.f32 %v614_v57, %v690_v3 }
 0x13d   : > { %921 = vst.msk [vmem:[#allocation3 + $0x80] sm:$0xff] %vm7437_vm0, %v883_v48  ;;  %923 = vst.msk [vmem:[#allocation3 + $0x90] sm:$0xff] %vm7437_vm0, %v885_v49  ;;  %v618_v58 = vld [vmem:[#allocation2 + $0x60] ss:$2 sm:$0xff]  ;;  %v757_v5 = vmax.f32 %v610_v54, %v686_v62  ;;  %v694_v7 = vld [vmem:[#allocation2 + $0x61] ss:$2 sm:$0xff]  ;;  %v758_v8 = vmax.f32 %v612_v55, %v688_v2 }
 0x13e   : > { %925 = vst.msk [vmem:[#allocation3 + $0xa0] sm:$0xff] %vm7437_vm0, %v887_v53  ;;  %v796_v11 = vld [vmem:[#allocation2 + $0x1a] ss:$2 sm:$0xff]  ;;  %v761_v12 = vmax.f32 %v618_v58, %v694_v7  ;;  %v804_v23 = vld [vmem:[#allocation2 + $0x4a] ss:$2 sm:$0xff]  ;;  %905 = vst.msk [vmem:[#allocation3] sm:$0xff] %vm7437_vm0, %v867_v15 }
 0x13f   : > { %v869_v16 = vmax.f32 %v755_v0, %v796_v11  ;;  %v5549_v17 = vld [vmem:[#allocation3 + $0x60] sm:$0xff]  ;;  %v800_v18 = vld [vmem:[#allocation2 + $0x32] ss:$2 sm:$0xff]  ;;  %v802_v19 = vld [vmem:[#allocation2 + $0x42] ss:$2 sm:$0x1]  ;;  %v873_v30 = vmax.f32 %v759_v9, %v804_v23 }
 0x140   : > { %v808_v24 = vld [vmem:[#allocation2 + $0x62] ss:$2 sm:$0xff]  ;;  %v871_v25 = vmax.f32 %v757_v5, %v800_v18  ;;  %v872_v26 = vmax.f32 %v758_v8, %v802_v19  ;;  %906 = vst.msk [vmem:[#allocation3 + $0x8] sm:$0x1] %vm7429_vm2, %v868_v20  ;;  %908 = vst.msk [vmem:[#allocation3 + $0x18] sm:$0x1] %vm7429_vm2, %v870_v21 }
 0x141   : > { %907 = vst.msk [vmem:[#allocation3 + $0x10] sm:$0xff] %vm7437_vm0, %v869_v16  ;;  %v875_v31 = vmax.f32 %v761_v12, %v808_v24  ;;  %v620_v32 = vld [vmem:[#allocation2 + $0x70] ss:$2 sm:$0x1]  ;;  %v622_v35 = vld [vmem:[#allocation2 + $0x78] ss:$2 sm:$0xff] }
 0x142   : > { %909 = vst.msk [vmem:[#allocation3 + $0x20] sm:$0xff] %vm7437_vm0, %v871_v25  ;;  %v624_v36 = vld [vmem:[#allocation2 + $0x88] ss:$2 sm:$0x1]  ;;  %911 = vst.msk [vmem:[#allocation3 + $0x30] sm:$0xff] %vm7437_vm0, %v873_v30  ;;  %v562_v44 = vld [vmem:[%s5397_s14 + $0xc0] sm:$0xff] }
 0x143   : > { %v968_v22 = vld [vmem:[#allocation3 + $0x70] sm:$0xff]  ;;  %910 = vst.msk [vmem:[#allocation3 + $0x28] sm:$0x1] %vm7429_vm2, %v872_v26  ;;  %v628_v38 = vld [vmem:[#allocation2 + $0xa0] ss:$2 sm:$0x1]  ;;  %v764_v47 = vmax.f32 %v624_v36, %v700_v42 }
 0x144   : > { %v951_v27 = vld [vmem:[#allocation3 + $0x80] sm:$0xff]  ;;  %v970_v28 = vld [vmem:[#allocation3 + $0x90] sm:$0xff]  ;;  %v986_v29 = vmax.f32 %v5549_v17, %v968_v22  ;;  %913 = vst.msk [vmem:[#allocation3 + $0x40] sm:$0xff] %vm7437_vm0, %v875_v31  ;;  %v696_v39 = vld [vmem:[#allocation2 + $0x71] ss:$2 sm:$0x1] }
 0x145   : > { %v988_v33 = vmax.f32 %v951_v27, %v970_v28  ;;  %v5556_v34 = vld [vmem:[#allocation3 + $0xa0] sm:$0xff]  ;;  %v698_v41 = vld [vmem:[#allocation2 + $0x79] ss:$2 sm:$0xff]  ;;  %v762_v43 = vmax.f32 %v620_v32, %v696_v39  ;;  %v810_v48 = vld [vmem:[#allocation2 + $0x72] ss:$2 sm:$0x1] }
 0x146   : > { %v1023_v37 = vmax.f32 %v986_v29, %v951_v27  ;;  %v704_v45 = vld [vmem:[#allocation2 + $0xa1] ss:$2 sm:$0x1]  ;;  %v763_v46 = vmax.f32 %v622_v35, %v698_v41  ;;  %594 = vst.msk [vmem:[#allocation2 + $0x139] sm:$0xff] %vm7437_vm0, %v562_v44  ;;  %v812_v50 = vld [vmem:[#allocation2 + $0x7a] ss:$2 sm:$0xff] }
 0x147   : > { %v1025_v40 = vmax.f32 %v988_v33, %v5556_v34  ;;  %v766_v49 = vmax.f32 %v628_v38, %v704_v45  ;;  %v814_v51 = vld [vmem:[#allocation2 + $0x8a] ss:$2 sm:$0x1]  ;;  %v876_v52 = vmax.f32 %v762_v43, %v810_v48  ;;  %v818_v56 = vld [vmem:[#allocation2 + $0xa2] ss:$2 sm:$0x1] }
 0x148   : > { %1041 = vst.msk [vmem:[#allocation4 + $0x30] sm:$0xff] %vm7437_vm0, %v1023_v37  ;;  %v563_v53 = vld [vmem:[%s5397_s14 + $0xc8] sm:$0xff]  ;;  %v962_v55 = vld [vmem:[#allocation3 + $0x10] sm:$0xff]  ;;  %v877_v57 = vmax.f32 %v763_v46, %v812_v50  ;;  %v878_v58 = vmax.f32 %v764_v47, %v814_v51  ;;  %v944_v59 = vld [vmem:[#allocation3 + $0x8] sm:$0x1] }
 0x149   : > { %1043 = vst.msk [vmem:[#allocation4 + $0x40] sm:$0xff] %vm7437_vm0, %v1025_v40  ;;  %v943_v54 = vld [vmem:[#allocation3] sm:$0xff]  ;;  %595 = vst.msk [vmem:[#allocation2 + $0x141] sm:$0xff] %vm7437_vm0, %v563_v53  ;;  %v963_v60 = vld [vmem:[#allocation3 + $0x18] sm:$0x1]  ;;  %v880_v62 = vmax.f32 %v766_v49, %v818_v56 }
 0x14a   : > { %v980_v61 = vmax.f32 %v943_v54, %v962_v55  ;;  %914 = vst.msk [vmem:[#allocation3 + $0x48] sm:$0x1] %vm7429_vm2, %v876_v52  ;;  %v945_v63 = vld [vmem:[#allocation3 + $0x20] sm:$0xff]  ;;  %v981_v0 = vmax.f32 %v944_v59, %v963_v60  ;;  %v1000_v1 = vld [vmem:[#allocation3 + $0x28] sm:$0x1]  ;;  %v964_v3 = vld [vmem:[#allocation3 + $0x30] sm:$0xff] }
 0x14b   : > { %915 = vst.msk [vmem:[#allocation3 + $0x50] sm:$0xff] %vm7437_vm0, %v877_v57  ;;  %v616_v2 = vld [vmem:[#allocation2 + $0x58] ss:$2 sm:$0x1]  ;;  %v1001_v4 = vld [vmem:[#allocation3 + $0x40] sm:$0xff]  ;;  %v982_v7 = vmax.f32 %v945_v63, %v964_v3  ;;  %v564_v11 = vld [vmem:[%s5397_s14 + $0xd0] sm:$0xff] }
 0x14c   : > { %916 = vst.msk [vmem:[#allocation3 + $0x58] sm:$0x1] %vm7429_vm2, %v878_v58  ;;  %v1017_v5 = vmax.f32 %v980_v61, %v945_v63  ;;  %918 = vst.msk [vmem:[#allocation3 + $0x68] sm:$0x1] %vm7429_vm2, %v880_v62  ;;  %v1018_v8 = vmax.f32 %v981_v0, %v1000_v1  ;;  %v646_v20 = vld [vmem:[#allocation2 + $0x108] ss:$2 sm:$0xff] }
 0x14d   : > { %v692_v6 = vld [vmem:[#allocation2 + $0x59] ss:$2 sm:$0x1]  ;;  %v806_v10 = vld [vmem:[#allocation2 + $0x5a] ss:$2 sm:$0x1]  ;;  %v1019_v16 = vmax.f32 %v982_v7, %v1001_v4 }
 0x14e   : > { %v760_v9 = vmax.f32 %v616_v2, %v692_v6  ;;  %1035 = vst.msk [vmem:[#allocation4] sm:$0xff] %vm7437_vm0, %v1017_v5  ;;  %v632_v13 = vld [vmem:[#allocation2 + $0xb8] ss:$2 sm:$0x1]  ;;  %596 = vst.msk [vmem:[#allocation2 + $0x151] sm:$0xff] %vm7437_vm0, %v564_v11  ;;  %v566_v29 = vld [vmem:[%s5397_s14 + $0xe0] sm:$0xff] }
 0x14f   : > { %v5574_v12 = vld [vmem:[#allocation4 + $0x30] sm:$0xff]  ;;  %1036 = vst.msk [vmem:[#allocation4 + $0x8] sm:$0x1] %vm7429_vm2, %v1018_v8  ;;  %v636_v19 = vld [vmem:[#allocation2 + $0xd0] ss:$2 sm:$0x1] }
 0x150   : > { %v1095_v14 = vrot.slane %v5574_v12, 7  ;;  %v5579_v15 = vld [vmem:[#allocation4 + $0x40] sm:$0xff]  ;;  %v874_v18 = vmax.f32 %v760_v9, %v806_v10  ;;  %v650_v24 = vld [vmem:[#allocation2 + $0x120] ss:$2 sm:$0xff]  ;;  %1037 = vst.msk [vmem:[#allocation4 + $0x10] sm:$0xff] %vm7437_vm0, %v1019_v16  ;;  %598 = vst.msk [vmem:[#allocation2 + $0x169] sm:$0xff] %vm7437_vm0, %v566_v29 }
 0x151   : > { %v565_v21 = vld [vmem:[%s5397_s14 + $0xd8] sm:$0xff]  ;;  %v1107_v22 = vrot.slane %v5579_v15, 7  ;;  %v948_v26 = vld [vmem:[#allocation3 + $0x48] sm:$0x1]  ;;  %v722_v28 = vld [vmem:[#allocation2 + $0x109] ss:$2 sm:$0xff] }
 0x152   : > { %v708_v23 = vld [vmem:[#allocation2 + $0xb9] ss:$2 sm:$0x1]  ;;  %597 = vst.msk [vmem:[#allocation2 + $0x159] sm:$0xff] %vm7437_vm0, %v565_v21  ;;  %v5588_v25 = vsel %vm7430_vm3, 0.0, %v1095_v14  ;;  %v567_v40 = vld [vmem:[%s5397_s14 + $0xe8] sm:$0xff]  ;;  %v775_v44 = vmax.f32 %v646_v20, %v722_v28 }
 0x153   : > { %912 = vst.msk [vmem:[#allocation3 + $0x38] sm:$0x1] %vm7429_vm2, %v874_v18  ;;  %v768_v27 = vmax.f32 %v632_v13, %v708_v23  ;;  %v5596_v30 = vsel %vm7430_vm3, 0.0, %v1107_v22  ;;  %v966_v31 = vld [vmem:[#allocation3 + $0x50] sm:$0xff]  ;;  %v967_v32 = vld [vmem:[#allocation3 + $0x58] sm:$0x1] }
 0x154   : > { %v726_v33 = vld [vmem:[#allocation2 + $0x121] ss:$2 sm:$0xff]  ;;  %v3990_v35 = vpack.i.bf16 %v5588_v25, %v5596_v30  ;;  %v984_v36 = vmax.f32 %v1001_v4, %v966_v31  ;;  %v985_v37 = vmax.f32 %v948_v26, %v967_v32  ;;  %v1004_v38 = vld [vmem:[#allocation3 + $0x68] sm:$0x1]  ;;  %599 = vst.msk [vmem:[#allocation2 + $0x171] sm:$0xff] %vm7437_vm0, %v567_v40 }
 0x155   : > { %v712_v39 = vld [vmem:[#allocation2 + $0xd1] ss:$2 sm:$0x1]  ;;  %v822_v42 = vld [vmem:[#allocation2 + $0xba] ss:$2 sm:$0x1]  ;;  %v777_v51 = vmax.f32 %v650_v24, %v726_v33 }
 0x156   : > { %v770_v41 = vmax.f32 %v636_v19, %v712_v39  ;;  %v826_v43 = vld [vmem:[#allocation2 + $0xd2] ss:$2 sm:$0x1]  ;;  %3991 = vrot.lane.b32.xlu1 %v3990_v35, %s5035_s16  ;;  %v5604_v45 = vld [vmem:[#allocation4] sm:$0xff]  ;;  %v1021_v46 = vmax.f32 %v984_v36, %v5549_v17  ;;  %v1022_v47 = vmax.f32 %v985_v37, %v1004_v38  ;;  %v946_v48 = vld [vmem:[#allocation3 + $0x28] sm:$0x1]  ;;  %v882_v49 = vmax.f32 %v768_v27, %v822_v42 }
 0x157   : > { %v644_v50 = vld [vmem:[#allocation2 + $0x100] ss:$2 sm:$0x1]  ;;  %v1058_v53 = vrot.slane %v5604_v45, 7  ;;  %v1002_v54 = vld [vmem:[#allocation3 + $0x48] sm:$0x1] }
 0x158   : > { %v1054_v52 = vld [vmem:[#allocation4 + $0x8] sm:$0x1]  ;;  %v884_v55 = vmax.f32 %v770_v41, %v826_v43  ;;  %v648_v56 = vld [vmem:[#allocation2 + $0x118] ss:$2 sm:$0x1]  ;;  %1039 = vst.msk [vmem:[#allocation4 + $0x20] sm:$0xff] %vm7437_vm0, %v1021_v46 }
 0x159   : > { %v1059_v57 = vrot.slane %v1054_v52, 7  ;;  %1040 = vst.msk [vmem:[#allocation4 + $0x28] sm:$0x1] %vm7429_vm2, %v1022_v47  ;;  %920 = vst.msk [vmem:[#allocation3 + $0x78] sm:$0x1] %vm7429_vm2, %v882_v49  ;;  %v5611_v59 = vld [vmem:[#allocation4 + $0x10] sm:$0xff] }
 0x15a   : > { %v652_v58 = vld [vmem:[#allocation2 + $0x130] ss:$2 sm:$0x1]  ;;  %v965_v60 = vld [vmem:[#allocation3 + $0x38] sm:$0x1]  ;;  %v1071_v0 = vrot.slane %v5611_v59, 7 }
 0x15b   : > { %v836_v17 = vld [vmem:[#allocation2 + $0x10a] ss:$2 sm:$0xff]  ;;  %922 = vst.msk [vmem:[#allocation3 + $0x88] sm:$0x1] %vm7429_vm2, %v884_v55  ;;  %v1060_v63 = vsel %vm7430_vm3, %v1058_v53, %v1059_v57  ;;  %v983_v1 = vmax.f32 %v946_v48, %v965_v60  ;;  %v730_v16 = vld [vmem:[#allocation2 + $0x139] ss:$2 sm:$0xff] }
 0x15c   : > { %v840_v61 = vld [vmem:[#allocation2 + $0x122] ss:$2 sm:$0xff]  ;;  %v889_v62 = vmax.f32 %v775_v44, %v836_v17  ;;  %v720_v2 = vld [vmem:[#allocation2 + $0x101] ss:$2 sm:$0x1]  ;;  %v5619_v4 = vsel %vm7436_vm4, %v1060_v63, 0.0 }
 0x15d   : > { %v891_v3 = vmax.f32 %v777_v51, %v840_v61  ;;  %v950_v5 = vld [vmem:[#allocation3 + $0x68] sm:$0x1]  ;;  %v724_v6 = vld [vmem:[#allocation2 + $0x119] ss:$2 sm:$0x1]  ;;  %v774_v7 = vmax.f32 %v644_v50, %v720_v2  ;;  %v5625_v8 = vsel %vm7430_vm3, 0.0, %v1071_v0  ;;  %v1020_v9 = vmax.f32 %v983_v1, %v1002_v54 }
 0x15e   : > { %927 = vst.msk [vmem:[#allocation3 + $0xb0] sm:$0xff] %vm7437_vm0, %v889_v62  ;;  %v728_v10 = vld [vmem:[#allocation2 + $0x131] ss:$2 sm:$0x1]  ;;  %v776_v11 = vmax.f32 %v648_v56, %v724_v6  ;;  %v654_v13 = vld [vmem:[#allocation2 + $0x138] ss:$2 sm:$0xff]  ;;  %v4005_v18 = vpack.i.bf16 %v5625_v8, %v5619_v4 }
 0x15f   : > { %929 = vst.msk [vmem:[#allocation3 + $0xc0] sm:$0xff] %vm7437_vm0, %v891_v3  ;;  %v778_v19 = vmax.f32 %v652_v58, %v728_v10  ;;  %v834_v20 = vld [vmem:[#allocation2 + $0x102] ss:$2 sm:$0x1]  ;;  %v658_v23 = vld [vmem:[#allocation2 + $0x150] ss:$2 sm:$0xff]  ;;  %v779_v42 = vmax.f32 %v654_v13, %v730_v16 }
 0x160   : > { %v838_v21 = vld [vmem:[#allocation2 + $0x11a] ss:$2 sm:$0x1]  ;;  %1038 = vst.msk [vmem:[#allocation4 + $0x18] sm:$0x1] %vm7429_vm2, %v1020_v9  ;;  %v888_v26 = vmax.f32 %v774_v7, %v834_v20  ;;  %4006 = vrot.lane.b32.xlu0 %v4005_v18, %s5035_s16 }
 0x161   : > { %v842_v24 = vld [vmem:[#allocation2 + $0x132] ss:$2 sm:$0x1]  ;;  %v890_v27 = vmax.f32 %v776_v11, %v838_v21  ;;  %v640_v28 = vld [vmem:[#allocation2 + $0xe8] ss:$2 sm:$0x1] }
 0x162   : > { %v1079_v29 = vld [vmem:[#allocation4 + $0x20] sm:$0xff]  ;;  %v1080_v31 = vld [vmem:[#allocation4 + $0x28] sm:$0x1]  ;;  %v892_v33 = vmax.f32 %v778_v19, %v842_v24  ;;  %v1006_v38 = vld [vmem:[#allocation3 + $0x88] sm:$0x1] }
 0x163   : > { %v969_v32 = vld [vmem:[#allocation3 + $0x78] sm:$0x1]  ;;  %v1083_v35 = vrot.slane %v1079_v29, 7  ;;  %v1084_v36 = vrot.slane %v1080_v31, 7  ;;  %926 = vst.msk [vmem:[#allocation3 + $0xa8] sm:$0x1] %vm7429_vm2, %v888_v26 }
 0x164   : > { %v987_v37 = vmax.f32 %v950_v5, %v969_v32  ;;  %928 = vst.msk [vmem:[#allocation3 + $0xb8] sm:$0x1] %vm7429_vm2, %v890_v27  ;;  %v734_v39 = vld [vmem:[#allocation2 + $0x151] ss:$2 sm:$0xff]  ;;  %930 = vst.msk [vmem:[#allocation3 + $0xc8] sm:$0x1] %vm7429_vm2, %v892_v33 }
 0x165   : > { %v656_v40 = vld [vmem:[#allocation2 + $0x148] ss:$2 sm:$0x1]  ;;  %v660_v41 = vld [vmem:[#allocation2 + $0x160] ss:$2 sm:$0x1]  ;;  %v1085_v43 = vsel %vm7430_vm3, %v1083_v35, %v1084_v36  ;;  %v781_v49 = vmax.f32 %v658_v23, %v734_v39 }
 0x166   : > { %v5637_v44 = vsel %vm7430_vm3, 0.0, %v1083_v35  ;;  %v1024_v46 = vmax.f32 %v987_v37, %v1006_v38  ;;  %v972_v47 = vld [vmem:[#allocation3 + $0xb0] sm:$0xff]  ;;  %v716_v48 = vld [vmem:[#allocation2 + $0xe9] ss:$2 sm:$0x1]  ;;  %v5640_v50 = vsel %vm7436_vm4, %v1085_v43, 0.0 }
 0x167   : > { %v990_v51 = vmax.f32 %v5556_v34, %v972_v47  ;;  %v5643_v52 = vld [vmem:[#allocation3 + $0xc0] sm:$0xff]  ;;  %v772_v55 = vmax.f32 %v640_v28, %v716_v48  ;;  %v3995_v56 = vpack.i.bf16 %v5640_v50, %v5637_v44  ;;  %v736_v57 = vld [vmem:[#allocation2 + $0x161] ss:$2 sm:$0x1]  ;;  %v1068_v60 = vld [vmem:[#allocation4 + $0x18] sm:$0x1] }
 0x168   : > { %v732_v54 = vld [vmem:[#allocation2 + $0x149] ss:$2 sm:$0x1]  ;;  %1042 = vst.msk [vmem:[#allocation4 + $0x38] sm:$0x1] %vm7429_vm2, %v1024_v46  ;;  %v782_v62 = vmax.f32 %v660_v41, %v736_v57  ;;  %v1072_v34 = vrot.slane %v1068_v60, 7 }
 0x169   : > { %v780_v58 = vmax.f32 %v656_v40, %v732_v54  ;;  %v830_v17 = vld [vmem:[#allocation2 + $0xea] ss:$2 sm:$0x1]  ;;  %v1027_v61 = vmax.f32 %v990_v51, %v5643_v52  ;;  %v844_v63 = vld [vmem:[#allocation2 + $0x13a] ss:$2 sm:$0xff]  ;;  %3996 = vrot.lane.b32.xlu1 %v3995_v56, %s5035_s16  ;;  %v568_v21 = vld [vmem:[%s5397_s14 + $0xf0] sm:$0xff] }
 0x16a   : > { %v848_v1 = vld [vmem:[#allocation2 + $0x152] ss:$2 sm:$0xff]  ;;  %v886_v2 = vmax.f32 %v772_v55, %v830_v17  ;;  %v846_v3 = vld [vmem:[#allocation2 + $0x14a] ss:$2 sm:$0x1]  ;;  %v893_v5 = vmax.f32 %v779_v42, %v844_v63  ;;  %v1073_v11 = vsel %vm7430_vm3, %v1071_v0, %v1072_v34  ;;  %600 = vst.msk [vmem:[#allocation2 + $0x181] sm:$0xff] %vm7437_vm0, %v568_v21 }
 0x16b   : > { %v895_v6 = vmax.f32 %v781_v49, %v848_v1  ;;  %v954_v7 = vld [vmem:[#allocation3 + $0xa8] sm:$0x1]  ;;  %v973_v9 = vld [vmem:[#allocation3 + $0xb8] sm:$0x1]  ;;  %1045 = vst.msk [vmem:[#allocation4 + $0x50] sm:$0xff] %vm7437_vm0, %v1027_v61  ;;  %v894_v10 = vmax.f32 %v780_v58, %v846_v3  ;;  %v5658_v19 = vsel %vm7436_vm4, %v1073_v11, 0.0 }
 0x16c   : > { %924 = vst.msk [vmem:[#allocation3 + $0x98] sm:$0x1] %vm7429_vm2, %v886_v2  ;;  %v991_v13 = vmax.f32 %v954_v7, %v973_v9  ;;  %v1010_v16 = vld [vmem:[#allocation3 + $0xc8] sm:$0x1]  ;;  %v4010_v23 = vpack.i.bf16 %v5637_v44, %v5658_v19  ;;  %v569_v24 = vld [vmem:[%s5397_s14 + $0xf8] sm:$0xff]  ;;  %v5683_v39 = vsel %vm7430_vm3, 0.0, %v1058_v53 }
 0x16d   : > { %v850_v18 = vld [vmem:[#allocation2 + $0x162] ss:$2 sm:$0x1]  ;;  %931 = vst.msk [vmem:[#allocation3 + $0xd0] sm:$0xff] %vm7437_vm0, %v893_v5  ;;  %933 = vst.msk [vmem:[#allocation3 + $0xe0] sm:$0xff] %vm7437_vm0, %v895_v6  ;;  %v1198_v43 = vrot.slane %v5625_v8, 1 }
 0x16e   : > { %v896_v20 = vmax.f32 %v782_v62, %v850_v18  ;;  %932 = vst.msk [vmem:[#allocation3 + $0xd8] sm:$0x1] %vm7429_vm2, %v894_v10  ;;  %v1028_v59 = vmax.f32 %v991_v13, %v1010_v16  ;;  %4011 = vrot.lane.b32.xlu0 %v4010_v23, %s5036_s22  ;;  %v952_v27 = vld [vmem:[#allocation3 + $0x88] sm:$0x1]  ;;  %v1207_v46 = vrot.slane %v5625_v8, 2  ;;  %v5697_v61 = vrot.slane %v5658_v19, 1 }
 0x16f   : > { %v1092_v0 = vld [vmem:[#allocation4 + $0x38] sm:$0x1]  ;;  %601 = vst.msk [vmem:[#allocation2 + $0x189] sm:$0xff] %vm7437_vm0, %v569_v24  ;;  %v664_v49 = vld [vmem:[#allocation2 + $0x178] ss:$2 sm:$0x1] }
 0x170   : > { %934 = vst.msk [vmem:[#allocation3 + $0xe8] sm:$0x1] %vm7429_vm2, %v896_v20  ;;  %v1096_v26 = vrot.slane %v1092_v0, 7  ;;  %1046 = vst.msk [vmem:[#allocation4 + $0x58] sm:$0x1] %vm7429_vm2, %v1028_v59  ;;  %v5712_v13 = vrot.slane %v5658_v19, 2  ;;  %v5717_v20 = vsel %vm7427_vm5, %v1198_v43, %v5697_v61 }
 0x171   : > { %v956_v29 = vld [vmem:[#allocation3 + $0xc8] sm:$0x1]  ;;  %v740_v51 = vld [vmem:[#allocation2 + $0x179] ss:$2 sm:$0x1]  ;;  %v1288_v16 = vrot.slane %v5637_v44, 1 }
 0x172   : > { %v1097_v28 = vsel %vm7430_vm3, %v1095_v14, %v1096_v26  ;;  %v1008_v32 = vld [vmem:[#allocation3 + $0xa8] sm:$0x1]  ;;  %v5676_v35 = vld [vmem:[#allocation4 + $0x50] sm:$0xff]  ;;  %v744_v54 = vld [vmem:[#allocation2 + $0x191] ss:$2 sm:$0x1]  ;;  %v784_v7 = vmax.f32 %v664_v49, %v740_v51  ;;  %v5753_v43 = vsel %vm7428_vm6, %v1207_v46, %v5712_v13 }
 0x173   : > { %v971_v31 = vld [vmem:[#allocation3 + $0x98] sm:$0x1]  ;;  %v5674_v33 = vsel %vm7436_vm4, %v1097_v28, 0.0  ;;  %v662_v47 = vld [vmem:[#allocation2 + $0x168] ss:$2 sm:$0xff]  ;;  %v1119_v45 = vrot.slane %v5676_v35, 7 }
 0x174   : > { %v974_v36 = vld [vmem:[#allocation3 + $0xd0] sm:$0xff]  ;;  %v989_v37 = vmax.f32 %v952_v27, %v971_v31  ;;  %v5678_v38 = vld [vmem:[#allocation3 + $0xe0] sm:$0xff]  ;;  %v4000_v12 = vpack.i.bf16 %v5674_v33, %v5588_v25  ;;  %v5703_v2 = vrot.slane %v5674_v33, 1  ;;  %v858_v5 = vld [vmem:[#allocation2 + $0x192] ss:$2 sm:$0x1] }
 0x175   : > { %v975_v14 = vld [vmem:[#allocation3 + $0xd8] sm:$0x1]  ;;  %v992_v40 = vmax.f32 %v5643_v52, %v974_v36  ;;  %v738_v57 = vld [vmem:[#allocation2 + $0x169] ss:$2 sm:$0xff]  ;;  %v852_v62 = vld [vmem:[#allocation2 + $0x16a] ss:$2 sm:$0xff] }
 0x176   : > { %v993_v41 = vmax.f32 %v956_v29, %v975_v14  ;;  %v1026_v42 = vmax.f32 %v989_v37, %v1008_v32  ;;  %4001 = vrot.lane.b32.xlu1 %v4000_v12, %s5036_s22  ;;  %v666_v56 = vld [vmem:[#allocation2 + $0x180] ss:$2 sm:$0xff]  ;;  %v668_v17 = vld [vmem:[#allocation2 + $0x190] ss:$2 sm:$0x1]  ;;  %v783_v34 = vmax.f32 %v662_v47, %v738_v57  ;;  %v5724_v26 = vrot.slane %v5674_v33, 2 }
 0x177   : > { %v1012_v53 = vld [vmem:[#allocation3 + $0xe8] sm:$0x1]  ;;  %v1029_v48 = vmax.f32 %v992_v40, %v5678_v38  ;;  %v742_v60 = vld [vmem:[#allocation2 + $0x181] ss:$2 sm:$0xff]  ;;  %v786_v10 = vmax.f32 %v668_v17, %v744_v54  ;;  %v5731_v31 = vrot.slane %v5640_v50, 1  ;;  %v1297_v32 = vrot.slane %v5637_v44, 2 }
 0x178   : > { %v1116_v52 = vld [vmem:[#allocation4 + $0x58] sm:$0x1]  ;;  %v1030_v55 = vmax.f32 %v993_v41, %v1012_v53  ;;  %1044 = vst.msk [vmem:[#allocation4 + $0x48] sm:$0x1] %vm7429_vm2, %v1026_v42  ;;  %v785_v9 = vmax.f32 %v666_v56, %v742_v60  ;;  %v897_v18 = vmax.f32 %v783_v34, %v852_v62  ;;  %v5735_v36 = vrot.slane %v5640_v50, 2 }
 0x179   : > { %v1120_v58 = vrot.slane %v1116_v52, 7  ;;  %1047 = vst.msk [vmem:[#allocation4 + $0x60] sm:$0xff] %vm7437_vm0, %v1029_v48  ;;  %v854_v63 = vld [vmem:[#allocation2 + $0x17a] ss:$2 sm:$0x1]  ;;  %v900_v59 = vmax.f32 %v786_v10, %v858_v5  ;;  %v4030_v14 = vpack.i.bf16 %v5697_v61, %v5717_v20  ;;  %v1391_v47 = vrot.slane %v5588_v25, 1 }
 0x17a   : > { %1048 = vst.msk [vmem:[#allocation4 + $0x68] sm:$0x1] %vm7429_vm2, %v1030_v55  ;;  %v856_v3 = vld [vmem:[#allocation2 + $0x182] ss:$2 sm:$0xff]  ;;  %v898_v21 = vmax.f32 %v784_v7, %v854_v63  ;;  %v5770_v46 = vsel %vm7428_vm6, %v1297_v32, %v5735_v36  ;;  %v746_v55 = vld [vmem:[#allocation2 + $0x199] ss:$2 sm:$0xff] }
 0x17b   : > { %v1121_v1 = vsel %vm7430_vm3, %v1119_v45, %v1120_v58  ;;  %v899_v23 = vmax.f32 %v785_v9, %v856_v3  ;;  %935 = vst.msk [vmem:[#allocation3 + $0xf0] sm:$0xff] %vm7437_vm0, %v897_v18  ;;  %v670_v51 = vld [vmem:[#allocation2 + $0x198] ss:$2 sm:$0xff]  ;;  %v958_v54 = vld [vmem:[#allocation3 + $0xe8] sm:$0x1]  ;;  %v5775_v58 = vsel %vm7427_vm5, %v1288_v16, %v5731_v31  ;;  %v5783_v34 = vrot.slane %v5619_v4, 1 }
 0x17c   : > { %v5706_v6 = vsel %vm7436_vm4, %v1121_v1, 0.0  ;;  %936 = vst.msk [vmem:[#allocation3 + $0xf8] sm:$0x1] %vm7429_vm2, %v898_v21  ;;  %938 = vst.msk [vmem:[#allocation3 + $0x108] sm:$0x1] %vm7429_vm2, %v900_v59  ;;  %v4045_v1 = vpack.i.bf16 %v5735_v36, %v5770_v46  ;;  %v1171_v3 = vrot.slane %v5683_v39, 1  ;;  %v787_v21 = vmax.f32 %v670_v51, %v746_v55 }
 0x17d   : > { %v5709_v11 = vrot.slane %v5706_v6, 1  ;;  %v5727_v27 = vrot.slane %v5706_v6, 2  ;;  %937 = vst.msk [vmem:[#allocation3 + $0x100] sm:$0xff] %vm7437_vm0, %v899_v23  ;;  %v672_v52 = vld [vmem:[#allocation2 + $0x1a8] ss:$2 sm:$0x1]  ;;  %v4040_v59 = vpack.i.bf16 %v5731_v31, %v5775_v58 }
 0x17e   : > { %v748_v57 = vld [vmem:[#allocation2 + $0x1a9] ss:$2 sm:$0x1]  ;;  %v674_v60 = vld [vmem:[#allocation2 + $0x1b0] ss:$2 sm:$0xff]  ;;  %v1400_v9 = vrot.slane %v5588_v25, 2 }
 0x17f   : > { %v5721_v24 = vpack.i.bf16 %v5709_v11, %v5703_v2  ;;  %v1104_v0 = vld [vmem:[#allocation4 + $0x48] sm:$0x1]  ;;  %v5746_v40 = vpack.i.bf16 %v5727_v27, %v5724_v26  ;;  %v750_v62 = vld [vmem:[#allocation2 + $0x1b1] ss:$2 sm:$0xff] }
 0x180   : > { %v1108_v28 = vrot.slane %v1104_v0, 7  ;;  %v1127_v29 = vld [vmem:[#allocation4 + $0x60] sm:$0xff]  ;;  %v676_v18 = vld [vmem:[#allocation2 + $0x1c0] ss:$2 sm:$0x1]  ;;  %v5797_v0 = vsel %vm7427_vm5, %v1391_v47, %v5703_v2  ;;  %v789_v32 = vmax.f32 %v674_v60, %v750_v62  ;;  %v5809_v47 = vrot.slane %v5619_v4, 2 }
 0x181   : > { %4021 = vrot.lane.b32.xlu0 %v5721_v24, %s5037_s13  ;;  %v1128_v37 = vld [vmem:[#allocation4 + $0x68] sm:$0x1]  ;;  %v1131_v12 = vrot.slane %v1127_v29, 7  ;;  %v788_v29 = vmax.f32 %v672_v52, %v748_v57  ;;  %v866_v51 = vld [vmem:[#allocation2 + $0x1c2] ss:$2 sm:$0x1]  ;;  %v4050_v55 = vpack.i.bf16 %v5703_v2, %v5797_v0  ;;  %v5824_v60 = vsel %vm7427_vm5, %v1171_v3, %v5783_v34 }
 0x182   : > { %v1109_v41 = vsel %vm7430_vm3, %v1107_v22, %v1108_v28  ;;  %v1132_v42 = vrot.slane %v1128_v37, 7  ;;  %v4035_v22 = vpack.i.bf16 %v5712_v13, %v5753_v43  ;;  %v976_v56 = vld [vmem:[#allocation3 + $0xf0] sm:$0xff]  ;;  %v752_v28 = vld [vmem:[#allocation2 + $0x1c1] ss:$2 sm:$0x1]  ;;  %v4060_v3 = vpack.i.bf16 %v5797_v0, %v5824_v60 }
 0x183   : > { %v5757_v53 = vsel %vm7436_vm4, %v1109_v41, 0.0  ;;  %v5760_v48 = vsel %vm7430_vm3, 0.0, %v1131_v12  ;;  %v977_v17 = vld [vmem:[#allocation3 + $0xf8] sm:$0x1]  ;;  %v1014_v7 = vld [vmem:[#allocation3 + $0x108] sm:$0x1]  ;;  %v994_v10 = vmax.f32 %v5678_v38, %v976_v56  ;;  %v1402_v56 = vsel %vm7428_vm6, %v1400_v9, %v5724_v26 }
 0x184   : > { %v4015_v49 = vpack.i.bf16 %v5757_v53, %v5760_v48  ;;  %v1133_v15 = vsel %vm7430_vm3, %v1131_v12, %v1132_v42  ;;  %v5786_v5 = vld [vmem:[#allocation3 + $0x100] sm:$0xff]  ;;  %v995_v16 = vmax.f32 %v958_v54, %v977_v17  ;;  %v5800_v38 = vrot.slane %v5757_v53, 1  ;;  %v864_v42 = vld [vmem:[#allocation2 + $0x1b2] ss:$2 sm:$0xff] }
 0x185   : > { %4031 = vrot.lane.b32.xlu0 %v4030_v14, %s5037_s13  ;;  %v5778_v63 = vsel %vm7436_vm4, %v1133_v15, 0.0  ;;  %v860_v23 = vld [vmem:[#allocation2 + $0x19a] ss:$2 sm:$0xff]  ;;  %v862_v37 = vld [vmem:[#allocation2 + $0x1aa] ss:$2 sm:$0x1]  ;;  %v1031_v14 = vmax.f32 %v994_v10, %v5786_v5  ;;  %v790_v54 = vmax.f32 %v676_v18, %v752_v28  ;;  %v903_v17 = vmax.f32 %v789_v32, %v864_v42 }
 0x186   : > { %4016 = vrot.lane.b32.xlu1 %v4015_v49, %s5035_s16  ;;  %v5803_v12 = vrot.slane %v5778_v63, 1  ;;  %v1032_v41 = vmax.f32 %v995_v16, %v1014_v7  ;;  %v4055_v49 = vpack.i.bf16 %v5717_v20, %v5783_v34  ;;  %v1181_v15 = vrot.slane %v5683_v39, 2 }
 0x187   : > { %1049 = vst.msk [vmem:[#allocation4 + $0x70] sm:$0xff] %vm7437_vm0, %v1031_v14  ;;  %v901_v52 = vmax.f32 %v787_v21, %v860_v23  ;;  %v902_v57 = vmax.f32 %v788_v29, %v862_v37  ;;  %v904_v62 = vmax.f32 %v790_v54, %v866_v51  ;;  %941 = vst.msk [vmem:[#allocation3 + $0x120] sm:$0xff] %vm7437_vm0, %v903_v17  ;;  %v1486_v9 = vrot.slane %v5596_v30, 1  ;;  %v960_v21 = vld [vmem:[#allocation3 + $0x108] sm:$0x1] }
 0x188   : > { %1050 = vst.msk [vmem:[#allocation4 + $0x78] sm:$0x1] %vm7429_vm2, %v1032_v41  ;;  %v4065_v2 = vpack.i.bf16 %v5724_v26, %v1402_v56  ;;  %v5842_v35 = vsel %vm7428_vm6, %v1181_v15, %v5809_v47  ;;  %v4070_v26 = vpack.i.bf16 %v5753_v43, %v5809_v47  ;;  %v4090_v29 = vpack.i.bf16 %v5775_v58, %v5697_v61 }
 0x189   : > { %4036 = vrot.lane.b32.xlu0 %v4035_v22, %s5038_s20  ;;  %v4275_v22 = vpack.i.bf16 %v5803_v12, %v5800_v38  ;;  %939 = vst.msk [vmem:[#allocation3 + $0x110] sm:$0xff] %vm7437_vm0, %v901_v52  ;;  %v4075_v7 = vpack.i.bf16 %v1402_v56, %v5842_v35  ;;  %v1488_v37 = vsel %vm7427_vm5, %v1486_v9, %v5800_v38  ;;  %v5871_v51 = vrot.slane %v5757_v53, 2 }
 0x18a   : > { %4026 = vrot.lane.b32.xlu1 %v5746_v40, %s5038_s20  ;;  %940 = vst.msk [vmem:[#allocation3 + $0x118] sm:$0x1] %vm7429_vm2, %v902_v57  ;;  %942 = vst.msk [vmem:[#allocation3 + $0x128] sm:$0x1] %vm7429_vm2, %v904_v62  ;;  %v1685_v52 = vrot.slane %v5760_v48, 1  ;;  %v4100_v57 = vpack.i.bf16 %v5770_v46, %v5712_v13 }
 0x18c   : > { %v5889_v17 = vsel %vm7427_vm5, %v1685_v52, %v5803_v12 }
 0x18d   : > { %4046 = vrot.lane.b32.xlu0 %v4045_v1, %s7463_s27  ;;  %v5830_v1 = vsel %vm7430_vm3, 0.0, %v1119_v45  ;;  %v4110_v62 = vpack.i.bf16 %v5800_v38, %v5889_v17 }
 0x18e   : > { %4041 = vrot.lane.b32.xlu1 %v4040_v59, %s5040_s18  ;;  %v1590_v45 = vrot.slane %v5830_v1, 1  ;;  %v1599_v18 = vrot.slane %v5830_v1, 2  ;;  %v1015_v28 = vld [vmem:[#allocation3 + $0x120] sm:$0xff] }
 0x190   : > { %v978_v10 = vld [vmem:[#allocation3 + $0x110] sm:$0xff]  ;;  %v5853_v16 = vsel %vm7427_vm5, %v1590_v45, %v5709_v11  ;;  %v1139_v45 = vld [vmem:[#allocation4 + $0x70] sm:$0xff] }
 0x191   : > { %4056 = vrot.lane.b32.xlu0 %v4055_v49, %s5040_s18  ;;  %v979_v23 = vld [vmem:[#allocation3 + $0x118] sm:$0x1]  ;;  %v996_v59 = vmax.f32 %v5786_v5, %v978_v10  ;;  %v4080_v32 = vpack.i.bf16 %v5853_v16, %v5775_v58  ;;  %v1016_v41 = vld [vmem:[#allocation3 + $0x128] sm:$0x1]  ;;  %v5867_v5 = vsel %vm7428_vm6, %v1599_v18, %v5727_v27  ;;  %v1495_v49 = vrot.slane %v5596_v30, 2 }
 0x192   : > { %4051 = vrot.lane.b32.xlu1 %v4050_v55, %s7465_s25  ;;  %v997_v14 = vmax.f32 %v960_v21, %v979_v23  ;;  %v4095_v58 = vpack.i.bf16 %v5797_v0, %v1488_v37  ;;  %v4085_v54 = vpack.i.bf16 %v5867_v5, %v5770_v46  ;;  %v5898_v46 = vrot.slane %v5778_v63, 2 }
 0x193   : > { %v1033_v42 = vmax.f32 %v996_v59, %v1015_v28  ;;  %v1497_v55 = vsel %vm7428_vm6, %v1495_v49, %v5871_v51  ;;  %v4125_v10 = vpack.i.bf16 %v5658_v19, %v5778_v63 }
 0x194   : > { %v1034_v15 = vmax.f32 %v997_v14, %v1016_v41  ;;  %v4105_v0 = vpack.i.bf16 %v1402_v56, %v1497_v55  ;;  %v1140_v56 = vld [vmem:[#allocation4 + $0x78] sm:$0x1]  ;;  %v4135_v23 = vpack.i.bf16 %v1497_v55, %v5809_v47 }
 0x195   : > { %4066 = vrot.lane.b32.xlu0 %v4065_v2, %s7461_s28  ;;  %1051 = vst.msk [vmem:[#allocation4 + $0x80] sm:$0xff] %vm7437_vm0, %v1033_v42  ;;  %v4115_v2 = vpack.i.bf16 %v1488_v37, %v5783_v34  ;;  %v1144_v9 = vrot.slane %v1140_v56, 7  ;;  %v4155_v42 = vpack.i.bf16 %v1497_v55, %v5867_v5 }
 0x196   : > { %4061 = vrot.lane.b32.xlu1 %v4060_v3, %s5037_s13  ;;  %1052 = vst.msk [vmem:[#allocation4 + $0x88] sm:$0x1] %vm7429_vm2, %v1034_v15  ;;  %v1694_v3 = vrot.slane %v5760_v48, 2 }
 0x198   : > { %v5908_v34 = vsel %vm7428_vm6, %v1694_v3, %v5898_v46 }
 0x199   : > { %4076 = vrot.lane.b32.xlu0 %v4075_v7, %s5038_s20  ;;  %v4120_v7 = vpack.i.bf16 %v5596_v30, %v5830_v1  ;;  %v4130_v18 = vpack.i.bf16 %v5871_v51, %v5908_v34 }
 0x19a   : > { %4071 = vrot.lane.b32.xlu1 %v4070_v26, %s7463_s27  ;;  %v1143_v26 = vrot.slane %v1139_v45, 7 }
 0x19c   : > { %v1145_v21 = vsel %vm7430_vm3, %v1143_v26, %v1144_v9  ;;  %v5917_v59 = vsel %vm7430_vm3, 0.0, %v1143_v26  ;;  %v1151_v3 = vld [vmem:[#allocation4 + $0x80] sm:$0xff] }
 0x19d   : > { %4091 = vrot.lane.b32.xlu0 %v4090_v29, %s7465_s25  ;;  %v5920_v28 = vsel %vm7436_vm4, %v1145_v21, 0.0  ;;  %v4140_v29 = vpack.i.bf16 %v1488_v37, %v5853_v16  ;;  %v1789_v14 = vrot.slane %v5917_v59, 1  ;;  %v4150_v47 = vpack.i.bf16 %v5706_v6, %v5917_v59  ;;  %v1152_v45 = vld [vmem:[#allocation4 + $0x88] sm:$0x1] }
 0x19e   : > { %4081 = vrot.lane.b32.xlu1 %v4080_v32, %s5037_s13  ;;  %v4145_v32 = vpack.i.bf16 %v5697_v61, %v5803_v12  ;;  %v1790_v41 = vrot.slane %v5920_v28, 1  ;;  %v1798_v49 = vrot.slane %v5917_v59, 2  ;;  %v4160_v61 = vpack.i.bf16 %v5712_v13, %v5898_v46 }
 0x19f   : > { %v4170_v52 = vpack.i.bf16 %v5640_v50, %v5920_v28  ;;  %v4180_v13 = vpack.i.bf16 %v5830_v1, %v5683_v39  ;;  %v4245_v56 = vpack.i.bf16 %v5920_v28, %v5917_v59  ;;  %v1155_v26 = vrot.slane %v1151_v3, 7 }
 0x1a0   : > { %v1791_v37 = vsel %vm7427_vm5, %v1789_v14, %v1790_v41  ;;  %v1156_v9 = vrot.slane %v1152_v45, 7  ;;  %v4265_v21 = vpack.i.bf16 %v5778_v63, %v5757_v53 }
 0x1a1   : > { %4096 = vrot.lane.b32.xlu0 %v4095_v58, %s5040_s18  ;;  %v1799_v58 = vrot.slane %v5920_v28, 2  ;;  %v4165_v15 = vpack.i.bf16 %v5709_v11, %v1791_v37  ;;  %v4185_v11 = vpack.i.bf16 %v5731_v31, %v1790_v41 }
 0x1a2   : > { %4086 = vrot.lane.b32.xlu1 %v4085_v54, %s5038_s20 }
 0x1a3   : > { %v1800_v54 = vsel %vm7428_vm6, %v1798_v49, %v1799_v58 }
 0x1a4   : > { %v4175_v55 = vpack.i.bf16 %v5727_v27, %v1800_v54  ;;  %v4200_v27 = vpack.i.bf16 %v5735_v36, %v1799_v58 }
 0x1a5   : > { %4101 = vrot.lane.b32.xlu0 %v4100_v57, %s7461_s28  ;;  %v4190_v57 = vpack.i.bf16 %v5853_v16, %v5824_v60  ;;  %v4215_v60 = vpack.i.bf16 %v5803_v12, %v5889_v17  ;;  %v4235_v16 = vpack.i.bf16 %v5889_v17, %v5717_v20  ;;  %v4250_v20 = vpack.i.bf16 %v5908_v34, %v5753_v43 }
 0x1a6   : > { %4106 = vrot.lane.b32.xlu1 %v4105_v0, %s7463_s27  ;;  %v4195_v0 = vpack.i.bf16 %v5800_v38, %v5731_v31  ;;  %v4220_v31 = vpack.i.bf16 %v5760_v48, %v5625_v8  ;;  %v1157_v17 = vsel %vm7430_vm3, %v1155_v26, %v1156_v9  ;;  %v1160_v43 = vsel %vm7430_vm3, 0.0, %v1155_v26 }
 0x1a9   : > { %4111 = vrot.lane.b32.xlu0 %v4110_v62, %s5040_s18  ;;  %v4205_v62 = vpack.i.bf16 %v5867_v5, %v5842_v35  ;;  %v4225_v35 = vpack.i.bf16 %v5706_v6, %v5674_v33  ;;  %v4660_v5 = vld [vmem:[#allocation10] sm:$0xff]  }
 0x1aa   : > { %4116 = vrot.lane.b32.xlu1 %v4115_v2, %s5037_s13  ;;  %v4210_v2 = vpack.i.bf16 %v5871_v51, %v5735_v36  ;;  %v4230_v36 = vpack.i.bf16 %v5898_v46, %v5908_v34  ;;  %3796 = vmatprep.subr.bf16.mxu0 %v4660_v5  ;;  %v1161_v34 = vsel %vm7436_vm4, %v1157_v17, 0.0 }
 0x1ab   : > { %3797 = vmatpush3.bf16.msra.mxu0 %v4660_v5 }
 0x1ad   : > { %4121 = vrot.lane.b32.xlu0 %v4120_v7, %s5036_s22  ;;  %v4661_v7 = vld [vmem:[#allocation10 + $0x8] sm:$0xff]  }
 0x1ae   : > { %4126 = vrot.lane.b32.xlu1 %v4125_v10, %s5035_s16  ;;  %3798 = vmatprep.subr.bf16.mxu0 %v4661_v7  ;;  %v4662_v10 = vld [vmem:[#allocation10 + $0x10] ss:$0 sps:$4 sm:$0x33]  }
 0x1af   : > { %3799 = vmatpush3.bf16.msra.mxu0 %v4661_v7 }
 0x1b0   : > { %3832 = vmatprep.subr.msk.bf16.mxu0 %vm7436_vm4, %v4662_v10 }
 0x1b1   : > { %4131 = vrot.lane.b32.xlu0 %v4130_v18, %s7463_s27  ;;  %v4260_v18 = vpack.i.bf16 %v1790_v41, %v1791_v37  ;;  %v1892_v41 = vrot.slane %v1160_v43, 2  ;;  %v4285_v37 = vpack.i.bf16 %v5898_v46, %v5871_v51 }
 0x1b2   : > { %4136 = vrot.lane.b32.xlu1 %v4135_v23, %s5038_s20  ;;  %v4270_v23 = vpack.i.bf16 %v1799_v58, %v1800_v54 }
 0x1b5   : > { %4141 = vrot.lane.b32.xlu0 %v4140_v29, %s7465_s25 }
 0x1b6   : > { %4146 = vrot.lane.b32.xlu1 %v4145_v32, %s5040_s18  ;;  %v1884_v32 = vrot.slane %v1161_v34, 1 }
 0x1b9   : > { %4151 = vrot.lane.b32.xlu0 %v4150_v47, %s5036_s22  ;;  %v1893_v47 = vrot.slane %v1161_v34, 2 }
 0x1ba   : > { %4156 = vrot.lane.b32.xlu1 %v4155_v42, %s7461_s28  ;;  %v4280_v42 = vpack.i.bf16 %v1161_v34, %v1160_v43 }
 0x1bb   : > { %v1894_v58 = vsel %vm7428_vm6, %v1892_v41, %v1893_v47  ;;  %vm6062_vm6 = vmor %vm7430_vm3, %vm1432_vm14  ;;  %vm7433_vm14 = vcmask 286720   ;;  %vm7434_vm3 = vsmask.f32 256 }
 0x1bd   : > { %4161 = vrot.lane.b32.xlu0 %v4160_v61, %s7463_s27 }
 0x1be   : > { %4166 = vrot.lane.b32.xlu1 %v4165_v15, %s7465_s25 }
 0x1c1   : > { %4171 = vrot.lane.b32.xlu0 %v4170_v52, %s5036_s22  ;;  %v4295_v52 = vpack.i.bf16 %v1893_v47, %v1894_v58 }
 0x1c2   : > { %4176 = vrot.lane.b32.xlu1 %v4175_v55, %s7461_s28 }
 0x1c5   : > { %4181 = vrot.lane.b32.xlu0 %v4180_v13, %s5035_s16 }
 0x1c6   : > { %4186 = vrot.lane.b32.xlu1 %v4185_v11, %s7465_s25 }
 0x1c8   : > { %v6003_v29 = vpop.permute.xlu1 %3991 }
 0x1c9   : > { %4191 = vrot.lane.b32.xlu0 %v4190_v57, %s5040_s18 }
 0x1ca   : > { %4196 = vrot.lane.b32.xlu1 %v4195_v0, %s5037_s13 }
 0x1cd   : > { %4201 = vrot.lane.b32.xlu0 %v4200_v27, %s7461_s28 }
 0x1ce   : > { %4206 = vrot.lane.b32.xlu1 %v4205_v62, %s7463_s27 }
 0x1d1   : > { %4211 = vrot.lane.b32.xlu0 %v4210_v2, %s5038_s20 }
 0x1d2   : > { %4216 = vrot.lane.b32.xlu1 %v4215_v60, %s5037_s13  ;;  %v6005_v14 = vpop.permute.xlu0 %4006 }
 0x1d5   : > { %4221 = vrot.lane.b32.xlu0 %v4220_v31, %s5036_s22 }
 0x1d6   : > { %4226 = vrot.lane.b32.xlu1 %v4225_v35, %s5035_s16 }
 0x1d9   : > { %4231 = vrot.lane.b32.xlu0 %v4230_v36, %s5038_s20 }
 0x1da   : > { %4236 = vrot.lane.b32.xlu1 %v4235_v16, %s7465_s25 }
 0x1db   : > { %v3997_v61 = vpop.permute.xlu1 %3996 }
 0x1dc   : > { %v3999_v2 = vunpack.i.h.bf16 %v3997_v61  ;;  %v3998_v60 = vunpack.i.l.bf16 %v3997_v61 }
 0x1dd   : > { %4241 = vrot.lane.b32.xlu0 %v5721_v24, %s5040_s18  ;;  %v2092_v24 = vsel %vm7436_vm4, %v4662_v10, 0  ;;  %vm7444_vm4 = vcmask 289795  }
 0x1de   : > { %4246 = vrot.lane.b32.xlu1 %v4245_v56, %s5035_s16  ;;  %3801 = vmatpush3.bf16.msra.mxu0 %v2092_v24 }
 0x1e0   : > { %v6017_v15 = vpop.permute.xlu0 %4011 }
 0x1e1   : > { %4251 = vrot.lane.b32.xlu0 %v4250_v20, %s7461_s28 }
 0x1e2   : > { %4256 = vrot.lane.b32.xlu1 %v5746_v40, %s7463_s27  ;;  %v1883_v40 = vrot.slane %v1160_v43, 1 }
 0x1e4   : > { %v1885_v49 = vsel %vm7427_vm5, %v1883_v40, %v1884_v32  ;;  %vm7432_vm5 = vsmask.f32 1280 }
 0x1e5   : > { %4261 = vrot.lane.b32.xlu0 %v4260_v18, %s5040_s18  ;;  %v4290_v54 = vpack.i.bf16 %v1884_v32, %v1885_v49  ;;  %vm6071_vm2 = vmand %vm7431_vm1, %vm7432_vm5  ;;  %vm7435_vm5 = vcmask 289792  }
 0x1e6   : > { %4266 = vrot.lane.b32.xlu1 %v4265_v21, %s5036_s22  ;;  %vm6100_vm1 = vmand %vm7433_vm14, %vm7434_vm3  ;;  %vm1346_vm14 = vsmask.f32 7938 }
 0x1e7   : > { %vm6124_vm3 = vmand %vm7435_vm5, %vm1346_vm14  ;;  %vm1545_vm14 = vsmask.f32 7942  ;;  %vm7439_vm5 = vcmask 289794  }
 0x1e8   : > { %v4002_v38 = vpop.permute.xlu1 %4001 }
 0x1e9   : > { %4271 = vrot.lane.b32.xlu0 %v4270_v23, %s7463_s27  ;;  %v4004_v20 = vunpack.i.h.bf16 %v4002_v38  ;;  %v4003_v17 = vunpack.i.l.bf16 %v4002_v38 }
 0x1ea   : > { %4276 = vrot.lane.b32.xlu1 %v4275_v22, %s7465_s25 }
 0x1ed   : > { %4281 = vrot.lane.b32.xlu0 %v4280_v42, %s5036_s22 }
 0x1ee   : > { %4286 = vrot.lane.b32.xlu1 %v4285_v37, %s7461_s28 }
 0x1f1   : > { %4291 = vrot.lane.b32.xlu0 %v4290_v54, %s7465_s25 }
 0x1f2   : > { %4296 = vrot.lane.b32.xlu1 %v4295_v52, %s7461_s28 }
 0x1f3   : > { %v6022_v12 = vpop.permute.xlu0 %4021 }
 0x1f5   : > { %4301 = vrot.lane.b32.xlu0 %v4260_v18, %s5037_s13 }
 0x1f6   : > { %4306 = vrot.lane.b32.xlu1 %v4270_v23, %s5038_s20 }
 0x1f7   : > { %v4032_v22 = vpop.permute.xlu0 %4031 }
 0x1f8   : > { %v6026_v51 = vpop.permute.xlu1 %4016  ;;  %v4034_v46 = vunpack.i.h.bf16 %v4032_v22  ;;  %v4033_v55 = vunpack.i.l.bf16 %v4032_v22 }
 0x1f9   : > { %4311 = vrot.lane.b32.xlu0 %v4280_v42, %s5035_s16 }
 0x1fa   : > { %4316 = vrot.lane.b32.xlu1 %v4290_v54, %s5040_s18  ;;  %v1410_v27 = vsel %vm7437_vm0, %v5658_v19, %v4034_v46  ;;  %v1409_v62 = vsel %vm7437_vm0, %v5625_v8, %v4033_v55 }
 0x1fb   : > { %v4037_v13 = vpop.permute.xlu0 %4036 }
 0x1fc   : > { %v6030_v11 = vpop.permute.xlu1 %4026  ;;  %v4039_v57 = vunpack.i.h.bf16 %v4037_v13  ;;  %v4038_v0 = vunpack.i.l.bf16 %v4037_v13  ;;  %v4009_v13 = vunpack.i.h.bf16 %v6005_v14 }
 0x1fd   : > { %4321 = vrot.lane.b32.xlu0 %v4295_v52, %s7463_s27 }
 0x1fe   : > { %v1411_v31 = vsel %vm7447_vm7, %v1409_v62, %v4038_v0  ;;  %v1412_v35 = vsel %vm7447_vm7, %v1410_v27, %v4039_v57  ;;  %v4008_v0 = vunpack.i.l.bf16 %v6005_v14 }
 0x1ff   : > { %v4047_v36 = vpop.permute.xlu0 %4046  ;;  %v1413_v5 = vsel %vm7446_vm8, %v1411_v31, %v3998_v60  ;;  %v1414_v3 = vsel %vm7446_vm8, %v1412_v35, %v3999_v2 }
 0x200   : > { %v4042_v16 = vpop.permute.xlu1 %4041  ;;  %v4049_v19 = vunpack.i.h.bf16 %v4047_v36  ;;  %v4048_v45 = vunpack.i.l.bf16 %v4047_v36 }
 0x201   : > { %v4044_v56 = vunpack.i.h.bf16 %v4042_v16  ;;  %v4043_v8 = vunpack.i.l.bf16 %v4042_v16  ;;  %v1445_v16 = vld [vmem:[#allocation5 + $0xc] sm:$0x3] }
 0x203   : > { %v1415_v7 = vsel %vm7438_vm9, %v1413_v5, %v4043_v8  ;;  %v1416_v26 = vsel %vm7438_vm9, %v1414_v3, %v4044_v56  ;;  %v4057_v9 = vpop.permute.xlu0 %4056 }
 0x204   : > { %v1417_v10 = vsel %vm7440_vm10, %v1415_v7, %v4048_v45  ;;  %v1418_v18 = vsel %vm7440_vm10, %v1416_v26, %v4049_v19  ;;  %v4052_v21 = vpop.permute.xlu1 %4051  ;;  %v4059_v27 = vunpack.i.h.bf16 %v4057_v9  ;;  %v4058_v5 = vunpack.i.l.bf16 %v4057_v9 }
 0x205   : > { %v4054_v24 = vunpack.i.h.bf16 %v4052_v21  ;;  %v4053_v43 = vunpack.i.l.bf16 %v4052_v21  ;;  %v1419_v34 = vsel %vm7449_vm11, %v1417_v10, %v4003_v17  ;;  %v1420_v23 = vsel %vm7449_vm11, %v1418_v18, %v4004_v20 }
 0x206   : > { %v1218_v7 = vsel %vm7446_vm8, 0.0, %v4008_v0  ;;  %v4014_v9 = vunpack.i.h.bf16 %v6017_v15 }
 0x207   : > { %v4067_v40 = vpop.permute.xlu0 %4066  ;;  %v1421_v42 = vsel %vm7452_vm12, %v1419_v34, %v4053_v43  ;;  %v1422_v37 = vsel %vm7452_vm12, %v1420_v23, %v4054_v24  ;;  %v1221_v17 = vsel %vm7438_vm9, %v1218_v7, %v4058_v5  ;;  %v4013_v43 = vunpack.i.l.bf16 %v6017_v15  ;;  %v1247_v15 = vld [vmem:[#allocation5 + $0x4] sm:$0x1] }
 0x208   : > { %v6047_v32 = vpop.permute.xlu1 %4061  ;;  %v4069_v41 = vunpack.i.h.bf16 %v4067_v40  ;;  %v4068_v47 = vunpack.i.l.bf16 %v4067_v40 }
 0x209   : > { %v4063_v49 = vunpack.i.l.bf16 %v6047_v32 }
 0x20a   : > { %v1424_v58 = vsel %vm7442_vm13, %v1422_v37, %v4069_v41  ;;  %v1423_v61 = vsel %vm7442_vm13, %v1421_v42, %v4068_v47 }
 0x20b   : > { %v1306_v54 = vsel %vm7437_vm0, %v5683_v39, %v4063_v49  ;;  %v3747_v52 = vpack.c.bf16 %v1424_v58, %v1424_v58  ;;  %v3746_v38 = vpack.c.bf16 %v1423_v61, %v1423_v61  ;;  %v6056_v22 = vpop.permute.xlu0 %4076 }
 0x20c   : > { %v4072_v46 = vpop.permute.xlu1 %4071  ;;  %v4078_v55 = vunpack.i.l.bf16 %v6056_v22 }
 0x20d   : > { %v1434_v57 = vrot.slane %v3746_v38, 7  ;;  %v1436_v2 = vrot.slane %v3747_v52, 7  ;;  %v4074_v31 = vunpack.i.h.bf16 %v4072_v46  ;;  %v4073_v56 = vunpack.i.l.bf16 %v4072_v46 }
 0x20e   : > { %v1309_v62 = vsel %vm7447_vm7, %v1306_v54, %v4078_v55 }
 0x20f   : > { %v1435_v60 = vrot.slane %v1434_v57, 4  ;;  %1441 = vst.msk [vmem:[#allocation5 + $0x8] sm:$0xe] %vm7441_vm15, %v1434_v57  ;;  %v1311_v35 = vsel %vm7446_vm8, %v1309_v62, %v4009_v13  ;;  %v4092_v36 = vpop.permute.xlu0 %4091  ;;  %v1224_v18 = vsel %vm7440_vm10, %v1221_v17, %v4073_v56 }
 0x210   : > { %v1313_v3 = vsel %vm7438_vm9, %v1311_v35, %v4059_v27  ;;  %v6076_v19 = vpop.permute.xlu1 %4081  ;;  %v4094_v21 = vunpack.i.h.bf16 %v4092_v36  ;;  %v4093_v24 = vunpack.i.l.bf16 %v4092_v36  ;;  %v1227_v40 = vsel %vm7449_vm11, %v1224_v18, %v4013_v43 }
 0x211   : > { %v1437_v45 = vsel %vm6062_vm6, %v1435_v60, %v1436_v2  ;;  %v1315_v26 = vsel %vm7440_vm10, %v1313_v3, %v4074_v31  ;;  %v4083_v55 = vunpack.i.l.bf16 %v6076_v19  ;;  %v4064_v2 = vunpack.i.h.bf16 %v6047_v32 }
 0x212   : > { %v1446_v8 = vsel %vm6071_vm2, %v1437_v45, %v1445_v16  ;;  %v1317_v34 = vsel %vm7449_vm11, %v1315_v26, %v4014_v9  ;;  %v1230_v37 = vsel %vm7452_vm12, %v1227_v40, %v4093_v24  ;;  %v4079_v16 = vunpack.i.h.bf16 %v6056_v22 }
 0x213   : > { %v6084_v20 = vpop.permute.xlu0 %4096  ;;  %1447 = vst [vmem:[#allocation5 + $0xc] sm:$0x3] %v1446_v8  ;;  %v1319_v49 = vsel %vm7452_vm12, %v1317_v34, %v4094_v21  ;;  %v1504_v60 = vsel %vm7437_vm0, %v5637_v44, %v4083_v55  ;;  %v3994_v32 = vunpack.i.h.bf16 %v6003_v29  ;;  %v4023_v44 = vunpack.i.l.bf16 %v6022_v12 }
 0x214   : > { %v6088_v10 = vpop.permute.xlu1 %4086  ;;  %v1608_v56 = vsel %vm7437_vm0, %v5588_v25, %v4064_v2  ;;  %v4099_v22 = vunpack.i.h.bf16 %v6084_v20  ;;  %v4028_v18 = vunpack.i.l.bf16 %v6030_v11  ;;  %v4084_v24 = vunpack.i.h.bf16 %v6076_v19 }
 0x215   : > { %v4088_v27 = vunpack.i.l.bf16 %v6088_v10  ;;  %v1610_v21 = vsel %vm7447_vm7, %v1608_v56, %v4079_v16  ;;  %v4098_v25 = vunpack.i.l.bf16 %v6084_v20  ;;  %v3993_v34 = vunpack.i.l.bf16 %v6003_v29 }
 0x216   : > { %v4089_v20 = vunpack.i.h.bf16 %v6088_v10  ;;  %v4024_v55 = vunpack.i.h.bf16 %v6022_v12 }
 0x217   : > { %v4102_v23 = vpop.permute.xlu0 %4101  ;;  %v1506_v5 = vsel %vm7447_vm7, %v1504_v60, %v4088_v27 }
 0x218   : > { %v6094_v41 = vpop.permute.xlu1 %4106  ;;  %v4104_v47 = vunpack.i.h.bf16 %v4102_v23  ;;  %v4103_v42 = vunpack.i.l.bf16 %v4102_v23  ;;  %v1508_v9 = vsel %vm7446_vm8, %v1506_v5, %v3994_v32  ;;  %v1609_v23 = vsel %vm7437_vm0, %v5674_v33, %v4023_v44 }
 0x219   : > { %v4109_v40 = vunpack.i.h.bf16 %v6094_v41  ;;  %v1611_v33 = vsel %vm7447_vm7, %v1609_v23, %v4028_v18 }
 0x21a   : > { %v1233_v61 = vsel %vm7442_vm13, %v1230_v37, %v4103_v42  ;;  %v1321_v54 = vsel %vm7442_vm13, %v1319_v49, %v4104_v47  ;;  %v4108_v47 = vunpack.i.l.bf16 %v6094_v41  ;;  %v4019_v37 = vunpack.i.h.bf16 %v6026_v51 }
 0x21b   : > { %v3743_v52 = vpack.c.bf16 %v1233_v61, %v1233_v61  ;;  %v3744_v38 = vpack.c.bf16 %v1321_v54, %v1321_v54  ;;  %v6106_v46 = vpop.permute.xlu0 %4111  ;;  %v1510_v49 = vsel %vm7438_vm9, %v1508_v9, %v4099_v22  ;;  %v1612_v61 = vsel %vm7446_vm8, %v1610_v21, %v3993_v34 }
 0x21c   : > { %v6109_v13 = vpop.permute.xlu1 %4116  ;;  %v1807_v41 = vsel %vm7437_vm0, %v5830_v1, %v4084_v24  ;;  %v1512_v10 = vsel %vm7440_vm10, %v1510_v49, %v4109_v40  ;;  %v1613_v16 = vsel %vm7446_vm8, %v1611_v33, %v4019_v37  ;;  %v4113_v32 = vunpack.i.l.bf16 %v6106_v46 }
 0x21d   : > { %v1248_v57 = vsel %vm6100_vm1, %v3743_v52, %v1247_v15  ;;  %v1332_v0 = vshrl.u32 %v3744_v38, 16  ;;  %v1335_v36 = vshll.u32 %v3744_v38, 16  ;;  %v1614_v52 = vsel %vm7438_vm9, %v1612_v61, %v4098_v25 }
 0x21e   : > { %1249 = vst [vmem:[#allocation5 + $0x4] sm:$0x1] %v1248_v57  ;;  %v4018_v57 = vunpack.i.l.bf16 %v6026_v51  ;;  %v1809_v1 = vsel %vm7447_vm7, %v1807_v41, %v4089_v20  ;;  %v4114_v51 = vunpack.i.h.bf16 %v6106_v46  ;;  %vm7443_vm0 = vcmask 288768  }
 0x21f   : > { %v4122_v62 = vpop.permute.xlu0 %4121  ;;  %v6117_v31 = vrot.slane %v1332_v0, 7  ;;  %v1616_v0 = vsel %vm7440_vm10, %v1614_v52, %v4108_v47  ;;  %v4118_v47 = vunpack.i.l.bf16 %v6109_v13 }
 0x220   : > { %v6119_v35 = vpop.permute.xlu1 %4126  ;;  %v4124_v19 = vunpack.i.h.bf16 %v4122_v62  ;;  %v4123_v15 = vunpack.i.l.bf16 %v4122_v62  ;;  %v1811_v21 = vsel %vm7446_vm8, %v1809_v1, %v4018_v57  ;;  %v1615_v37 = vsel %vm7438_vm9, %v1613_v16, %v4114_v51 }
 0x221   : > { %v1337_v8 = vor.u32 %v1335_v36, %v6117_v31  ;;  %v1813_v49 = vsel %vm7438_vm9, %v1811_v21, %v4113_v32  ;;  %vm6192_vm9 = vmand %vm7441_vm15, %vm1545_vm14  ;;  %vm7514_vm15 = vcmask 1041408  }
 0x222   : > { %v1514_v62 = vsel %vm7449_vm11, %v1512_v10, %v4124_v19  ;;  %v1618_v2 = vsel %vm7449_vm11, %v1616_v0, %v4123_v15 }
 0x223   : > { %v6128_v45 = vpop.permute.xlu0 %4131 }
 0x224   : > { %v6135_v7 = vpop.permute.xlu1 %4136  ;;  %v4134_v22 = vunpack.i.h.bf16 %v6128_v45 }
 0x225   : > { %v1348_v26 = vld [vmem:[#allocation5 + $0x4] sm:$0xf] }
 0x226   : > { %v1349_v17 = vsel %vm6124_vm3, %v1337_v8, %v1348_v26  ;;  %v4133_v26 = vunpack.i.l.bf16 %v6128_v45  ;;  %v4138_v45 = vunpack.i.l.bf16 %v6135_v7  ;;  %v1617_v15 = vsel %vm7440_vm10, %v1615_v37, %v4134_v22 }
 0x227   : > { %1350 = vst [vmem:[#allocation5 + $0x4] sm:$0xf] %v1349_v17  ;;  %v4142_v43 = vpop.permute.xlu0 %4141 }
 0x228   : > { %v6150_v42 = vpop.permute.xlu1 %4146  ;;  %v4144_v29 = vunpack.i.h.bf16 %v4142_v43  ;;  %v4143_v54 = vunpack.i.l.bf16 %v4142_v43  ;;  %v1815_v20 = vsel %vm7440_vm10, %v1813_v49, %v4133_v26  ;;  %vm7511_vm10 = vcmask 31744  }
 0x229   : > { %vm7512_vm14 = vmmov %vm7511_vm10  ;;  %v4148_v22 = vunpack.i.l.bf16 %v6150_v42 }
 0x22a   : > { %v1516_v5 = vsel %vm7452_vm12, %v1514_v62, %v4144_v29  ;;  %v1620_v12 = vsel %vm7452_vm12, %v1618_v2, %v4143_v54  ;;  %v1808_v62 = vsel %vm7511_vm10, %v5706_v6, %v4024_v55  ;;  %v4029_v2 = vunpack.i.h.bf16 %v6030_v11 }
 0x22b   : > { %v4152_v38 = vpop.permute.xlu0 %4151  ;;  %v1307_v16 = vsel %vm7512_vm14, %v5619_v4, %v4118_v47  ;;  %v4149_v11 = vunpack.i.h.bf16 %v6150_v42  ;;  %vm7513_vm10 = vcmask 1045508   ;;  %v7515_v55 = vmov 0 }
 0x22c   : > { %v4157_v27 = vpop.permute.xlu1 %4156  ;;  %v4154_v24 = vunpack.i.h.bf16 %v4152_v38  ;;  %v4153_v25 = vunpack.i.l.bf16 %v4152_v38  ;;  %v1310_v6 = vsel %vm7447_vm7, %v1307_v16, %v4138_v45  ;;  %v1810_v21 = vsel %vm7447_vm7, %v1808_v62, %v4029_v2 }
 0x22d   : > { %v4159_v60 = vunpack.i.h.bf16 %v4157_v27  ;;  %v4158_v36 = vunpack.i.l.bf16 %v4157_v27  ;;  %vm7523_vm7 = vcmask 261120  }
 0x22e   : > { %v1619_v33 = vsel %vm7449_vm11, %v1617_v15, %v4154_v24  ;;  %v1817_v41 = vsel %vm7449_vm11, %v1815_v20, %v4153_v25 }
 0x22f   : > { %v1518_v44 = vsel %vm7442_vm13, %v1516_v5, %v4159_v60  ;;  %v1622_v56 = vsel %vm7442_vm13, %v1620_v12, %v4158_v36  ;;  %v6174_v8 = vpop.permute.xlu0 %4161  ;;  %v4128_v5 = vunpack.i.l.bf16 %v6119_v35 }
 0x230   : > { %v3748_v9 = vpack.c.bf16 %v1518_v44, %v1518_v44  ;;  %v3750_v17 = vpack.c.bf16 %v1622_v56, %v1622_v56  ;;  %v4167_v18 = vpop.permute.xlu1 %4166  ;;  %v1547_v44 = vld [vmem:[#allocation5 + $0xc] sm:$0xe]  ;;  %v4129_v56 = vunpack.i.h.bf16 %v6119_v35  ;;  %v7517_v35 = vmov 0 }
 0x231   : > { %v4169_v43 = vunpack.i.h.bf16 %v4167_v18  ;;  %v4168_v40 = vunpack.i.l.bf16 %v4167_v18  ;;  %v1644_v18 = vld [vmem:[#allocation5 + $0x14] sm:$0x7]  ;;  %v4164_v24 = vunpack.i.h.bf16 %v6174_v8  ;;  %v4163_v25 = vunpack.i.l.bf16 %v6174_v8 }
 0x232   : > { %v1529_v46 = vshrl.u32 %v3748_v9, 16  ;;  %v1532_v34 = vshll.u32 %v3748_v9, 16  ;;  %v1633_v23 = vrot.slane %v3750_v17, 6  ;;  %v1812_v42 = vsel %vm7446_vm8, %v1810_v21, %v4128_v5 }
 0x233   : > { %v6183_v19 = vpop.permute.xlu0 %4171  ;;  %v1621_v0 = vsel %vm7452_vm12, %v1619_v33, %v4169_v43  ;;  %v1819_v27 = vsel %vm7452_vm12, %v1817_v41, %v4168_v40  ;;  %v1312_v47 = vsel %vm7446_vm8, %v1310_v6, %v4129_v56  ;;  %vm7451_vm8 = vsmask.f32 3328  ;;  %v1842_v56 = vld [vmem:[#allocation5 + $0x1c] sm:$0xf] }
 0x234   : > { %v1531_v61 = vrot.slane %v1529_v46, 6  ;;  %v1534_v29 = vrot.slane %v1532_v34, 7  ;;  %1640 = vst.msk [vmem:[#allocation5 + $0x10] sm:$0xc] %vm7439_vm5, %v1633_v23  ;;  %v4177_v54 = vpop.permute.xlu1 %4176  ;;  %vm7445_vm5 = vsmask.f32 2304  ;;  %v4174_v34 = vunpack.i.h.bf16 %v6183_v19 }
 0x235   : > { %v4179_v52 = vunpack.i.h.bf16 %v4177_v54  ;;  %v4178_v38 = vunpack.i.l.bf16 %v4177_v54  ;;  %v1634_v26 = vrot.slane %v1633_v23, 4  ;;  %vm6225_vm14 = vmand %vm7443_vm0, %vm7445_vm5  ;;  %v4173_v23 = vunpack.i.l.bf16 %v6183_v19 }
 0x236   : > { %v6196_v10 = vor.u32 %v1534_v29, %v1531_v61  ;;  %v7518_v35 = vsel %vm6225_vm14, 4294967295, %v7517_v35  ;;  %vm7521_vm0 = vcmask 162816   ;;  %vm1329_vm5 = vsmask.f32 4368 }
 0x237   : > { %v1623_v60 = vsel %vm7442_vm13, %v1621_v0, %v4179_v52  ;;  %v1821_v36 = vsel %vm7442_vm13, %v1819_v27, %v4178_v38  ;;  %v6205_v1 = vpop.permute.xlu0 %4181  ;;  %vm6215_vm13 = vmor %vm7514_vm15, %vm7513_vm10  ;;  %vm7519_vm15 = vcmask 130048   ;;  %v7528_v5 = vmov 0 }
 0x238   : > { %v3751_v12 = vpack.c.bf16 %v1623_v60, %v1623_v60  ;;  %v3754_v51 = vpack.c.bf16 %v1821_v36, %v1821_v36  ;;  %v4187_v32 = vpop.permute.xlu1 %4186  ;;  %v7516_v55 = vsel %vm6215_vm13, 4294967295, %v7515_v55  ;;  %v1548_v4 = vsel %vm6192_vm9, %v6196_v10, %v1547_v44  ;;  %vm7520_vm10 = vmmov %vm7519_vm15 }
 0x239   : > { %1549 = vst [vmem:[#allocation5 + $0xc] sm:$0xe] %v1548_v4  ;;  %v4189_v37 = vunpack.i.h.bf16 %v4187_v32  ;;  %v4188_v49 = vunpack.i.l.bf16 %v4187_v32  ;;  %v1314_v45 = vsel %vm7519_vm15, %v1312_v47, %v4149_v11  ;;  %v1814_v15 = vsel %vm7520_vm10, %v1812_v42, %v4148_v22 }
 0x23a   : > { %v1635_v9 = vrot.slane %v3751_v12, 6  ;;  %v1832_v17 = vrot.slane %v3754_v51, 5  ;;  %v1316_v20 = vsel %vm7521_vm0, %v1314_v45, %v4164_v24  ;;  %vm7450_vm15 = vcmask 1042432  }
 0x23b   : > { %v6232_v43 = vpop.permute.xlu0 %4191  ;;  %v1318_v29 = vsel %vm7449_vm11, %v1316_v20, %v4174_v34  ;;  %vm1830_vm10 = vcmask 1046532   ;;  %v1338_v51 = vrot.slane %v6117_v31, 4  ;;  %v7532_v44 = vmov 0 }
 0x23c   : > { %v1636_v46 = vsel %vm6215_vm13, %v1634_v26, %v1635_v9  ;;  %1839 = vst.msk [vmem:[#allocation5 + $0x18] sm:$0x8] %vm7444_vm4, %v1832_v17  ;;  %v6240_v40 = vpop.permute.xlu1 %4196  ;;  %vm7522_vm4 = vmmov %vm7521_vm0  ;;  %v1320_v38 = vsel %vm7452_vm12, %v1318_v29, %v4189_v37  ;;  %v1833_v32 = vrot.slane %v1832_v17, 4  ;;  %v4119_v17 = vunpack.i.h.bf16 %v6109_v13 }
 0x23d   : > { %v1645_v8 = vsel %vm6225_vm14, %v1636_v46, %v1644_v18  ;;  %v1816_v61 = vsel %vm7522_vm4, %v1814_v15, %v4163_v25  ;;  %vm7524_vm0 = vmmov %vm7523_vm7  ;;  %vm7525_vm4 = vsmask.f32 256  ;;  %v4139_v21 = vunpack.i.h.bf16 %v6135_v7 }
 0x23e   : > { %1646 = vst [vmem:[#allocation5 + $0x14] sm:$0x7] %v1645_v8  ;;  %v1818_v54 = vsel %vm7449_vm11, %v1816_v61, %v4173_v23  ;;  %vm6256_vm14 = vmor %vm7525_vm4, %vm1329_vm5  ;;  %v4183_v24 = vunpack.i.l.bf16 %v6205_v1  ;;  %v4184_v42 = vunpack.i.h.bf16 %v6205_v1  ;;  %v4193_v46 = vunpack.i.l.bf16 %v6232_v43 }
 0x23f   : > { %v4202_v19 = vpop.permute.xlu0 %4201  ;;  %v1820_v0 = vsel %vm7452_vm12, %v1818_v54, %v4188_v49  ;;  %vm6263_vm11 = vmor %vm7450_vm15, %vm1830_vm10  ;;  %vm7535_vm10 = vcmask 286720   ;;  %v4198_v34 = vunpack.i.l.bf16 %v6240_v40  ;;  %v4194_v23 = vunpack.i.h.bf16 %v6232_v43 }
 0x240   : > { %v4207_v33 = vpop.permute.xlu1 %4206  ;;  %v4204_v41 = vunpack.i.h.bf16 %v4202_v19  ;;  %v4203_v52 = vunpack.i.l.bf16 %v4202_v19  ;;  %v7529_v5 = vsel %vm6263_vm11, 4294967295, %v7528_v5  ;;  %vm7537_vm4 = vcmask 64512  }
 0x241   : > { %7530 = vst [vmem:[#allocation29_spill] sm:$0xff] %v7529_v5  ;;  %v4208_v47 = vunpack.i.l.bf16 %v4207_v33  ;;  %v4209_v13 = vunpack.i.h.bf16 %v4207_v33 }
 0x242   : > { %v1322_v27 = vsel %vm7523_vm7, %v1320_v38, %v4204_v41  ;;  %v1822_v62 = vsel %vm7524_vm0, %v1820_v0, %v4203_v52  ;;  %vm7531_vm7 = vcmask 289792   ;;  %vm7536_vm0 = vcmask 31744  }
 0x243   : > { %v3745_v60 = vpack.c.bf16 %v1322_v27, %v1322_v27  ;;  %v3755_v36 = vpack.c.bf16 %v1822_v62, %v1822_v62  ;;  %v6260_v16 = vpop.permute.xlu0 %4211  ;;  %vm6272_vm5 = vmand %vm7531_vm7, %vm7451_vm8  ;;  %v1703_v37 = vsel %vm7536_vm0, %v5596_v30, %v4119_v17  ;;  %vm7538_vm7 = vcmask 97280  }
 0x244   : > { %v6267_v12 = vpop.permute.xlu1 %4216  ;;  %v7533_v44 = vsel %vm6272_vm5, 4294967295, %v7532_v44  ;;  %v1705_v7 = vsel %vm7537_vm4, %v1703_v37, %v4139_v21  ;;  %v1217_v8 = vsel %vm7538_vm7, 0.0, %v4183_v24  ;;  %vm7539_vm15 = vmmov %vm7538_vm7  ;;  %vm7540_vm8 = vcmask 130048  }
 0x245   : > { %7534 = vst [vmem:[#allocation30_spill] sm:$0xff] %v7533_v44  ;;  %v1340_v6 = vshll.u32 %v3745_v60, 16  ;;  %v1834_v11 = vrot.slane %v3755_v36, 5  ;;  %v1707_v20 = vsel %vm7539_vm15, %v1705_v7, %v4184_v42  ;;  %v1220_v43 = vsel %vm7540_vm8, %v1217_v8, %v4193_v46  ;;  %vm7541_vm12 = vmmov %vm7540_vm8 }
 0x246   : > { %v4199_v30 = vunpack.i.h.bf16 %v6240_v40  ;;  %v1505_v29 = vsel %vm7536_vm0, %v5640_v50, %v4198_v34  ;;  %v1709_v54 = vsel %vm7541_vm12, %v1707_v20, %v4194_v23  ;;  %vm7542_vm4 = vcmask 162816  }
 0x247   : > { %v1342_v4 = vsel %vm6256_vm14, %v1338_v51, %v1340_v6  ;;  %v1835_v22 = vsel %vm6263_vm11, %v1833_v32, %v1834_v11  ;;  %v4222_v26 = vpop.permute.xlu0 %4221  ;;  %v1223_v33 = vsel %vm7542_vm4, %v1220_v43, %v4208_v47  ;;  %vm7543_vm7 = vmmov %vm7542_vm4  ;;  %v4218_v52 = vunpack.i.l.bf16 %v6267_v12 }
 0x248   : > { %1352 = vst.msk [vmem:[#allocation5 + $0x8] sm:$0x1] %vm7535_vm10, %v1342_v4  ;;  %v1843_v31 = vsel %vm6272_vm5, %v1835_v22, %v1842_v56  ;;  %v6283_v9 = vpop.permute.xlu1 %4226  ;;  %v4224_v45 = vunpack.i.h.bf16 %v4222_v26  ;;  %v4223_v15 = vunpack.i.l.bf16 %v4222_v26  ;;  %v1711_v41 = vsel %vm7543_vm7, %v1709_v54, %v4209_v13 }
 0x249   : > { %1844 = vst [vmem:[#allocation5 + $0x1c] sm:$0xf] %v1843_v31  ;;  %v4214_v38 = vunpack.i.h.bf16 %v6260_v16  ;;  %v4213_v0 = vunpack.i.l.bf16 %v6260_v16  ;;  %vm7544_vm8 = vcmask 195584   ;;  %v4219_v51 = vunpack.i.h.bf16 %v6267_v12 }
 0x24a   : > { %v1226_v62 = vsel %vm7544_vm8, %v1223_v33, %v4223_v15  ;;  %vm7545_vm15 = vmmov %vm7544_vm8  ;;  %v4229_v32 = vunpack.i.h.bf16 %v6283_v9  ;;  %vm7546_vm12 = vcmask 228352   ;;  %v4228_v11 = vunpack.i.l.bf16 %v6283_v9 }
 0x24b   : > { %v6286_v18 = vpop.permute.xlu0 %4231  ;;  %v1713_v40 = vsel %vm7545_vm15, %v1711_v41, %v4224_v45  ;;  %vm7547_vm0 = vmmov %vm7546_vm12  ;;  %vm7548_vm4 = vcmask 261120   ;;  %vm7550_vm8 = vcmask 31744   ;;  %vm7551_vm15 = vcmask 64512  }
 0x24c   : > { %v4237_v25 = vpop.permute.xlu1 %4236  ;;  %v4233_v16 = vunpack.i.l.bf16 %v6286_v18  ;;  %vm7549_vm7 = vmmov %vm7548_vm4  ;;  %v1704_v26 = vsel %vm7550_vm8, %v5757_v53, %v4199_v30  ;;  %v1507_v31 = vsel %vm7551_vm15, %v1505_v29, %v4213_v0  ;;  %vm7559_vm10 = vsmask.f32 7946 }
 0x24d   : > { %v4239_v61 = vunpack.i.h.bf16 %v4237_v25  ;;  %v4238_v19 = vunpack.i.l.bf16 %v4237_v25  ;;  %v4234_v25 = vunpack.i.h.bf16 %v6286_v18  ;;  %v7561_v20 = vmov 0 }
 0x24e   : > { %vm7567_vm11 = vcmask 162816  }
 0x24f   : > { %v6296_v49 = vpop.permute.xlu0 %4241  ;;  %v1229_v56 = vsel %vm7546_vm12, %v1226_v62, %v4238_v19  ;;  %v1715_v6 = vsel %vm7547_vm0, %v1713_v40, %v4239_v61  ;;  %vm7552_vm12 = vmmov %vm7550_vm8  ;;  %v1746_v62 = vld [vmem:[#allocation5 + $0x14] sm:$0xc] }
 0x250   : > { %v6300_v1 = vpop.permute.xlu1 %4246  ;;  %v1901_v24 = vsel %vm7552_vm12, %v5760_v48, %v4218_v52  ;;  %vm7553_vm0 = vmmov %vm7551_vm15  ;;  %v4243_v42 = vunpack.i.l.bf16 %v6296_v49  ;;  %v4244_v34 = vunpack.i.h.bf16 %v6296_v49 }
 0x251   : > { %v1706_v9 = vsel %vm7553_vm0, %v1704_v26, %v4214_v38  ;;  %vm7558_vm12 = vmmov %vm7553_vm0  ;;  %v4249_v18 = vunpack.i.h.bf16 %v6300_v1 }
 0x252   : > { %v1903_v7 = vsel %vm7558_vm12, %v1901_v24, %v4233_v16 }
 0x253   : > { %v4252_v27 = vpop.permute.xlu0 %4251 }
 0x254   : > { %v4257_v60 = vpop.permute.xlu1 %4256  ;;  %v4254_v36 = vunpack.i.h.bf16 %v4252_v27  ;;  %v4253_v50 = vunpack.i.l.bf16 %v4252_v27 }
 0x255   : > { %v4258_v23 = vunpack.i.l.bf16 %v4257_v60  ;;  %v4259_v8 = vunpack.i.h.bf16 %v4257_v60 }
 0x256   : > { %v1232_v4 = vsel %vm7548_vm4, %v1229_v56, %v4253_v50  ;;  %v1717_v22 = vsel %vm7549_vm7, %v1715_v6, %v4254_v36  ;;  %vm7554_vm4 = vcmask 289792   ;;  %vm7555_vm7 = vmmov %vm7550_vm8  ;;  %vm7556_vm8 = vcmask 97280  }
 0x257   : > { %v3742_v12 = vpack.c.bf16 %v1232_v4, %v1232_v4  ;;  %v3752_v17 = vpack.c.bf16 %v1717_v22, %v1717_v22  ;;  %v4262_v21 = vpop.permute.xlu0 %4261  ;;  %v1902_v37 = vsel %vm7555_vm7, %v5778_v63, %v4219_v51  ;;  %v1509_v13 = vsel %vm7556_vm8, %v1507_v31, %v4228_v11  ;;  %vm7557_vm15 = vmmov %vm7556_vm8 }
 0x258   : > { %v4267_v46 = vpop.permute.xlu1 %4266  ;;  %v1708_v48 = vsel %vm7557_vm15, %v1706_v9, %v4229_v32  ;;  %v4248_v63 = vunpack.i.l.bf16 %v6300_v1  ;;  %vm7564_vm7 = vcmask 130048   ;;  %vm7565_vm15 = vmmov %vm7553_vm0  ;;  %v4264_v52 = vunpack.i.h.bf16 %v4262_v21 }
 0x259   : > { %1243 = vst.msk [vmem:[#allocation5] sm:$0xf] %vm7554_vm4, %v3742_v12  ;;  %v1728_v53 = vshrl.u32 %v3752_v17, 16  ;;  %v1731_v47 = vshll.u32 %v3752_v17, 16  ;;  %vm7560_vm4 = vcmask 289794   ;;  %v1511_v43 = vsel %vm7564_vm7, %v1509_v13, %v4243_v42  ;;  %vm7566_vm12 = vmmov %vm7564_vm7  ;;  %v4664_v12 = vld [vmem:[#allocation5 + $0x8] sm:$0xff]  }
 0x25a   : > { %vm6341_vm5 = vmand %vm7560_vm4, %vm7559_vm10  ;;  %v4269_v61 = vunpack.i.h.bf16 %v4267_v46  ;;  %v4268_v19 = vunpack.i.l.bf16 %v4267_v46  ;;  %v1904_v29 = vsel %vm7565_vm15, %v1902_v37, %v4234_v25  ;;  %v1710_v54 = vsel %vm7566_vm12, %v1708_v48, %v4244_v34 }
 0x25b   : > { %v1730_v45 = vrot.slane %v1728_v53, 5  ;;  %v1733_v15 = vrot.slane %v1731_v47, 6  ;;  %v4272_v49 = vpop.permute.xlu0 %4271  ;;  %v7562_v20 = vsel %vm6341_vm5, 4294967295, %v7561_v20  ;;  %v1513_v33 = vsel %vm7567_vm11, %v1511_v43, %v4258_v23  ;;  %vm7568_vm10 = vmmov %vm7567_vm11 }
 0x25c   : > { %7563 = vst [vmem:[#allocation31_spill] sm:$0xff] %v7562_v20  ;;  %v4277_v30 = vpop.permute.xlu1 %4276  ;;  %v4263_v38 = vunpack.i.l.bf16 %v4262_v21  ;;  %v1712_v1 = vsel %vm7568_vm10, %v1710_v54, %v4259_v8  ;;  %v4274_v40 = vunpack.i.h.bf16 %v4272_v49  ;;  %v4273_v60 = vunpack.i.l.bf16 %v4272_v49  ;;  %vm7569_vm4 = vmmov %vm7556_vm8 }
 0x25d   : > { %v6350_v41 = vor.u32 %v1733_v15, %v1730_v45  ;;  %v4279_v0 = vunpack.i.h.bf16 %v4277_v30  ;;  %v4278_v27 = vunpack.i.l.bf16 %v4277_v30  ;;  %v1905_v51 = vsel %vm7569_vm4, %v1903_v7, %v4248_v63  ;;  %vm7570_vm7 = vmmov %vm7569_vm4 }
 0x25e   : > { %v1906_v32 = vsel %vm7570_vm7, %v1904_v29, %v4249_v18  ;;  %vm7571_vm11 = vcmask 195584   ;;  %vm7573_vm10 = vmmov %vm7566_vm12  ;;  %vm7575_vm4 = vcmask 228352   ;;  %vm7580_vm12 = vcmask 261120  }
 0x25f   : > { %v4282_v36 = vpop.permute.xlu0 %4281  ;;  %v1747_v50 = vsel %vm6341_vm5, %v6350_v41, %v1746_v62  ;;  %v1515_v56 = vsel %vm7571_vm11, %v1513_v33, %v4268_v19  ;;  %vm7572_vm15 = vmmov %vm7571_vm11  ;;  %v1907_v17 = vsel %vm7573_vm10, %v1905_v51, %v4263_v38  ;;  %vm7577_vm11 = vcmask 293888  }
 0x260   : > { %v1714_v6 = vsel %vm7572_vm15, %v1712_v1, %v4269_v61  ;;  %v4287_v11 = vpop.permute.xlu1 %4286  ;;  %v4663_v16 = vld [vmem:[#allocation5] sm:$0xff]   ;;  %1748 = vst [vmem:[#allocation5 + $0x14] sm:$0xc] %v1747_v50  ;;  %v4284_v26 = vunpack.i.h.bf16 %v4282_v36  ;;  %v4283_v31 = vunpack.i.l.bf16 %v4282_v36  ;;  %vm7574_vm8 = vmmov %vm7573_vm10  ;;  %v1517_v24 = vsel %vm7575_vm4, %v1515_v56, %v4278_v27 }
 0x261   : > { %v4289_v4 = vunpack.i.h.bf16 %v4287_v11  ;;  %v4288_v22 = vunpack.i.l.bf16 %v4287_v11  ;;  %v1908_v21 = vsel %vm7574_vm8, %v1906_v32, %v4264_v52  ;;  %vm7576_vm7 = vmmov %vm7575_vm4  ;;  %3802 = vmatprep.mubr.msk.bf16.mxu0 %vm7577_vm11, %v4663_v16  ;;  %vm7578_vm15 = vcmask 162816  }
 0x262   : > { %v1716_v9 = vsel %vm7576_vm7, %v1714_v6, %v4279_v0  ;;  %v1909_v25 = vsel %vm7578_vm15, %v1907_v17, %v4273_v60  ;;  %vm7579_vm0 = vmmov %vm7578_vm15  ;;  %vm7583_vm8 = vcmask 195584   ;;  %vm7585_vm4 = vsmask.f32 5392 }
 0x263   : > { %v1910_v42 = vsel %vm7579_vm0, %v1908_v21, %v4274_v40  ;;  %v1519_v46 = vsel %vm7580_vm12, %v1517_v24, %v4288_v22  ;;  %vm7581_vm5 = vmmov %vm7580_vm12  ;;  %v4292_v23 = vpop.permute.xlu0 %4291  ;;  %v1911_v7 = vsel %vm7583_vm8, %v1909_v25, %v4283_v31  ;;  %vm7586_vm0 = vsmask.f32 1280 }
 0x264   : > { %v1718_v34 = vsel %vm7581_vm5, %v1716_v9, %v4289_v4  ;;  %vm7582_vm13 = vmmov %vm7577_vm11  ;;  %v3749_v53 = vpack.c.bf16 %v1519_v46, %v1519_v46  ;;  %v4294_v37 = vunpack.i.h.bf16 %v4292_v23  ;;  %v4293_v13 = vunpack.i.l.bf16 %v4292_v23  ;;  %v4297_v48 = vpop.permute.xlu1 %4296 }
 0x265   : > { %3803 = vmatmul.mubr.msk.bf16.vlgmr.msra.gmra.mrb[0].mxu0 %vm7582_vm13, %v4664_v12  ;;  %v3753_v47 = vpack.c.bf16 %v1718_v34, %v1718_v34  ;;  %vm7584_vm10 = vmmov %vm7583_vm8  ;;  %v4299_v8 = vunpack.i.h.bf16 %v4297_v48  ;;  %v4298_v45 = vunpack.i.l.bf16 %v4297_v48  ;;  %v7587_v15 = vmov 0  ;;  %v1944_v12 = vld [vmem:[#allocation5 + $0x1c] sm:$0x8] }
 0x266   : > { %v1912_v18 = vsel %vm7584_vm10, %v1910_v42, %v4284_v26  ;;  %vm6374_vm7 = vmor %vm7586_vm0, %vm7585_vm4  ;;  %v1538_v49 = vshll.u32 %v3749_v53, 16  ;;  %vm7590_vm13 = vcmask 228352   ;;  %v1536_v19 = vrot.slane %v6196_v10, 4 }
 0x267   : > { %v7588_v15 = vsel %vm6374_vm7, 4294967295, %v7587_v15  ;;  %v1737_v63 = vshll.u32 %v3753_v47, 16  ;;  %v1913_v43 = vsel %vm7590_vm13, %v1911_v7, %v4293_v13  ;;  %vm7591_vm5 = vmmov %vm7590_vm13  ;;  %v1735_v30 = vrot.slane %v6350_v41, 4  ;;  %v4302_v52 = vpop.permute.xlu0 %4301 }
 0x268   : > { %7589 = vst [vmem:[#allocation32_spill] sm:$0xff] %v7588_v15  ;;  %v1914_v61 = vsel %vm7591_vm5, %v1912_v18, %v4294_v37  ;;  %vm7592_vm12 = vsmask.f32 6416  ;;  %vm7593_vm11 = vsmask.f32 2304  ;;  %v7594_v29 = vmov 0  ;;  %v4307_v1 = vpop.permute.xlu1 %4306 }
 0x269   : > { %vm6384_vm15 = vmor %vm7593_vm11, %vm7592_vm12  ;;  %vm7597_vm8 = vcmask 261120   ;;  %v1540_v38 = vrot.slane %v1538_v49, 7  ;;  %v1739_v0 = vrot.slane %v1737_v63, 6  ;;  %v4304_v40 = vunpack.i.h.bf16 %v4302_v52 }
 0x26a   : > { %v7595_v29 = vsel %vm6384_vm15, 4294967295, %v7594_v29  ;;  %v1915_v54 = vsel %vm7597_vm8, %v1913_v43, %v4298_v45  ;;  %vm7598_vm10 = vmmov %vm7597_vm8  ;;  %v4303_v10 = vunpack.i.l.bf16 %v4302_v52  ;;  %v4309_v60 = vunpack.i.h.bf16 %v4307_v1 }
 0x26b   : > { %7596 = vst [vmem:[#allocation33_spill] sm:$0xff] %v7595_v29  ;;  %v1916_v33 = vsel %vm7598_vm10, %v1914_v61, %v4299_v8  ;;  %v3756_v27 = vpack.c.bf16 %v1915_v54, %v1915_v54  ;;  %v4308_v41 = vunpack.i.l.bf16 %v4307_v1  ;;  %v1541_v36 = vsel %vm6374_vm7, %v1536_v19, %v1540_v38  ;;  %v4312_v16 = vpop.permute.xlu0 %4311 }
 0x26c   : > { %v3757_v62 = vpack.c.bf16 %v1916_v33, %v1916_v33  ;;  %v1740_v50 = vsel %vm6384_vm15, %v1735_v30, %v1739_v0  ;;  %vm7599_vm4 = vcmask 287744   ;;  %vm7600_vm0 = vcmask 288768   ;;  %v4317_v31 = vpop.permute.xlu1 %4316  ;;  %v2003_v30 = vld [vmem:[#allocation5 + $0x28] sm:$0x1] }
 0x26d   : > { %v1926_v51 = vshll.u32 %v3756_v27, 16  ;;  %v1929_v32 = vshrl.u32 %v3756_v27, 16  ;;  %1551 = vst.msk [vmem:[#allocation5 + $0x10] sm:$0x3] %vm7599_vm4, %v1541_v36  ;;  %vm7601_vm13 = vsmask.f32 7950  ;;  %v4314_v21 = vunpack.i.h.bf16 %v4312_v16 }
 0x26e   : > { %1750 = vst.msk [vmem:[#allocation5 + $0x18] sm:$0x7] %vm7600_vm0, %v1740_v50  ;;  %vm7602_vm5 = vcmask 289795   ;;  %v7603_v56 = vmov 0  ;;  %vm7606_vm11 = vcmask 31744   ;;  %v1935_v26 = vshll.u32 %v3757_v62, 16 }
 0x26f   : > { %vm6398_vm12 = vmand %vm7602_vm5, %vm7601_vm13  ;;  %v1979_v6 = vsel %vm7606_vm11, %v5920_v28, %v4304_v40  ;;  %vm1923_vm10 = vsmask.f32 7440  ;;  %v1928_v4 = vrot.slane %v1926_v51, 5  ;;  %v1931_v22 = vrot.slane %v1929_v32, 4  ;;  %v4322_v53 = vpop.permute.xlu0 %4321  ;;  %v6437_v50 = vld [vmem:[#allocation12] ss:$0 sm:$0xff] }
 0x270   : > { %v7604_v56 = vsel %vm6398_vm12, 4294967295, %v7603_v56  ;;  %vm7607_vm8 = vmmov %vm7606_vm11  ;;  %vm7608_vm4 = vcmask 64512   ;;  %v4313_v24 = vunpack.i.l.bf16 %v4312_v16  ;;  %v4319_v9 = vunpack.i.h.bf16 %v4317_v31 }
 0x271   : > { %7605 = vst [vmem:[#allocation34_spill] sm:$0xff] %v7604_v56  ;;  %v1978_v11 = vsel %vm7607_vm8, %v5917_v59, %v4303_v10  ;;  %v1981_v17 = vsel %vm7608_vm4, %v1979_v6, %v4309_v60  ;;  %v1932_v25 = vor.u32 %v1931_v22, %v1928_v4  ;;  %v1945_v42 = vsel %vm6398_vm12, %v1928_v4, %v1944_v12  ;;  %vm7609_vm0 = vmmov %vm7608_vm4 }
 0x272   : > { %v1980_v28 = vsel %vm7609_vm0, %v1978_v11, %v4308_v41  ;;  %v4318_v46 = vunpack.i.l.bf16 %v4317_v31  ;;  %vm7610_vm13 = vsmask.f32 3328  ;;  %v7611_v59 = vmov 0  ;;  %1946 = vst [vmem:[#allocation5 + $0x1c] sm:$0x8] %v1945_v42 }
 0x273   : > { %vm6411_vm5 = vmor %vm7610_vm13, %vm1923_vm10  ;;  %vm7614_vm11 = vcmask 97280   ;;  %v1933_v47 = vrot.slane %v1932_v25, 4  ;;  %v1937_v37 = vrot.slane %v1935_v26, 5  ;;  %v4324_v13 = vunpack.i.h.bf16 %v4322_v53 }
 0x274   : > { %v7612_v59 = vsel %vm6411_vm5, 4294967295, %v7611_v59  ;;  %v1982_v34 = vsel %vm7614_vm11, %v1980_v28, %v4313_v24  ;;  %vm7615_vm8 = vmmov %vm7614_vm11  ;;  %vm7616_vm4 = vcmask 130048   ;;  %v4323_v7 = vunpack.i.l.bf16 %v4322_v53  ;;  %v4665_v49 = vld [vmem:[#allocation5 + $0x10] sm:$0xff]  }
 0x275   : > { %7613 = vst [vmem:[#allocation35_spill] sm:$0xff] %v7612_v59  ;;  %v1983_v23 = vsel %vm7615_vm8, %v1981_v17, %v4314_v21  ;;  %v1938_v18 = vsel %vm6411_vm5, %v1933_v47, %v1937_v37  ;;  %vm7617_vm0 = vmmov %vm7616_vm4  ;;  %vm7618_vm10 = vcmask 162816   ;;  %vm7619_vm13 = vcmask 289792  }
 0x276   : > { %v1985_v48 = vsel %vm7616_vm4, %v1983_v23, %v4319_v9  ;;  %v1984_v8 = vsel %vm7617_vm0, %v1982_v34, %v4318_v46  ;;  %1947 = vst.msk [vmem:[#allocation5 + $0x20] sm:$0xf] %vm7619_vm13, %v1938_v18  ;;  %vm7620_vm11 = vmmov %vm7618_vm10  ;;  %vm7621_vm8 = vcmask 195584   ;;  %vm7623_vm15 = vcmask 228352  }
 0x277   : > { %v1987_v45 = vsel %vm7618_vm10, %v1985_v48, %v4324_v13  ;;  %v1986_v63 = vsel %vm7620_vm11, %v1984_v8, %v4323_v7  ;;  %vm7622_vm12 = vmmov %vm7621_vm8  ;;  %vm7624_vm4 = vcmask 293888   ;;  %vm7626_vm5 = vcmask 261120  }
 0x278   : > { %v1989_v43 = vsel %vm7621_vm8, %v1987_v45, 0.0  ;;  %v1988_v61 = vsel %vm7622_vm12, %v1986_v63, 0.0  ;;  %3806 = vmatprep.mubr.msk.bf16.mxu0 %vm7624_vm4, %v4665_v49  ;;  %vm7625_vm7 = vmmov %vm7623_vm15 }
 0x279   : > { %v1991_v19 = vsel %vm7623_vm15, %v1989_v43, 0.0  ;;  %v1990_v54 = vsel %vm7625_vm7, %v1988_v61, 0.0  ;;  %vm7627_vm0 = vmmov %vm7626_vm5  ;;  %v4666_v0 = vld [vmem:[#allocation5 + $0x18] sm:$0xff]  }
 0x27a   : > { %v1993_v33 = vsel %vm7626_vm5, %v1991_v19, 0.0  ;;  %v1992_v52 = vsel %vm7627_vm0, %v1990_v54, 0.0  ;;  %vm7628_vm10 = vmmov %vm7624_vm4  ;;  %vm7632_vm5 = vcmask 31744  }
 0x27b   : > { %v3759_v38 = vpack.c.bf16 %v1993_v33, %v1993_v33  ;;  %v3758_v27 = vpack.c.bf16 %v1992_v52, %v1992_v52  ;;  %3807 = vmatmul.mubr.msk.bf16.gmra.mrb[4].mxu0 %vm7628_vm10, %v4666_v0  ;;  %vm7629_vm12 = vmmov %vm7619_vm13 }
 0x27c   : > { %vm7630_vm15 = vmmov %vm7624_vm4 }
 0x27d   : > { %v2004_v62 = vsel %vm6100_vm1, %v3759_v38, %v2003_v30  ;;  %2002 = vst.msk [vmem:[#allocation5 + $0x24] sm:$0xf] %vm7629_vm12, %v3758_v27  ;;  %vm7631_vm7 = vmmov %vm7624_vm4 }
 0x27e   : > { %2005 = vst [vmem:[#allocation5 + $0x28] sm:$0x1] %v2004_v62  ;;  %vm7633_vm13 = vmmov %vm7632_vm5 }
 0x27f   : > { %vm7634_vm11 = vmmov %vm7632_vm5 }
 0x280   : > { %vm7635_vm8 = vmmov %vm7632_vm5 }
 0x281   : > { %vm7636_vm4 = vmmov %vm7632_vm5 }
 0x282   : > { %vm7637_vm0 = vmmov %vm7636_vm4 }
 0x283   : > { %vm7638_vm10 = vmmov %vm7637_vm0 }
 0x284   : > { %v4667_v1 = vld [vmem:[#allocation5 + $0x20] sm:$0xff]   ;;  %vm7639_vm12 = vmmov %vm7637_vm0 }
 0x285   : > { %v4668_v40 = vld [vmem:[#allocation5 + $0x28] ss:$0 sps:$4 sm:$0x11]   ;;  %3810 = vmatprep.mubr.msk.bf16.mxu0 %vm7630_vm15, %v4667_v1  ;;  %vm7640_vm15 = vmmov %vm7637_vm0 }
 0x286   : > { %3811 = vmatmul.mubr.msk.bf16.gmra.mrb[8].mxu0 %vm7631_vm7, %v4668_v40  ;;  %vm7641_vm7 = vmmov %vm7637_vm0 }
 0x338   : > { %v3804_v10 = vpop.f32.mrb[0].mxu0 }
 0x339   : > { %v2128_v60 = vpop.f32.mrb[1].mxu0  ;;  %v2137_v11 = vadd.f32 %v3804_v10, %v6437_v50 }
 0x33a   : > { %v3805_v41 = vpop.f32.mrb[2].mxu0  ;;  %v2129_v32 = vadd.f32 %v6437_v50, %v2128_v60 }
 0x33b   : > { %v2131_v36 = vpop.f32.mrb[3].mxu0  ;;  %v6448_v22 = vmax.f32 %v2137_v11, 0.0  ;;  %v2140_v31 = vadd.f32 %v3805_v41, %v6437_v50 }
 0x33c   : > { %v2132_v51 = vadd.f32 %v6437_v50, %v2131_v36  ;;  %v6444_v16 = vmax.f32 %v2129_v32, 0.0 }
 0x33d   : > { %v2220_v9 = vmul.f32 %v6448_v22, %v6448_v22  ;;  %v6461_v42 = vmax.f32 %v2140_v31, 0.0  ;;  %v2188_v46 = vsel %vm7636_vm4, %v6448_v22, 0.0  ;;  %vm7646_vm4 = vmmov %vm7637_vm0 }
 0x33e   : > { %v6441_v6 = vmax.f32 %v2132_v51, 0.0  ;;  %v2218_v26 = vmul.f32 %v6444_v16, %v6444_v16  ;;  %v2185_v17 = vsel %vm7633_vm13, %v6444_v16, 0.0  ;;  %vm7643_vm13 = vmmov %vm7637_vm0 }
 0x33f   : > { %v2232_v37 = vsel %vm7637_vm0, %v2220_v9, 0.0  ;;  %v2221_v13 = vmul.f32 %v6461_v42, %v6461_v42  ;;  %v2190_v45 = vsel %vm7638_vm10, %v6461_v42, 0.0  ;;  %vm7647_vm10 = vmmov %vm7637_vm0 }
 0x340   : > { %v2219_v4 = vmul.f32 %v6441_v6, %v6441_v6  ;;  %v2186_v12 = vsel %vm7632_vm5, %v6441_v6, 0.0  ;;  %v2229_v25 = vsel %vm7635_vm8, %v2218_v26, 0.0  ;;  %vm7642_vm5 = vmmov %vm7637_vm0 }
 0x341   : > { %v2187_v24 = vadd.f32 %v2186_v12, %v2185_v17  ;;  %v2234_v30 = vsel %vm7639_vm12, %v2221_v13, 0.0  ;;  %vm7645_vm8 = vmmov %vm7637_vm0 }
 0x342   : > { %v2230_v21 = vsel %vm7634_vm11, %v2219_v4, 0.0  ;;  %vm7644_vm11 = vmmov %vm7637_vm0 }
 0x343   : > { %v2231_v28 = vadd.f32 %v2230_v21, %v2229_v25  ;;  %v2189_v23 = vadd.f32 %v2188_v46, %v2187_v24  ;;  %vm7648_vm12 = vmmov %vm7637_vm0 }
 0x345   : > { %v2233_v18 = vadd.f32 %v2232_v37, %v2231_v28  ;;  %v2191_v61 = vadd.f32 %v2190_v45, %v2189_v23 }
 0x347   : > { %v2235_v0 = vadd.f32 %v2234_v30, %v2233_v18 }
 0x34e   : > { %v3808_v34 = vpop.f32.mrb[4].mxu0 }
 0x34f   : > { %v2153_v53 = vadd.f32 %v3808_v34, %v6437_v50  ;;  %v2144_v47 = vpop.f32.mrb[5].mxu0 }
 0x350   : > { %v2145_v48 = vadd.f32 %v6437_v50, %v2144_v47  ;;  %v3809_v7 = vpop.f32.mrb[6].mxu0 }
 0x351   : > { %v2147_v8 = vpop.f32.mrb[7].mxu0  ;;  %v6475_v43 = vmax.f32 %v2153_v53, 0.0  ;;  %v2156_v19 = vadd.f32 %v3809_v7, %v6437_v50 }
 0x352   : > { %v6472_v49 = vmax.f32 %v2145_v48, 0.0  ;;  %v2148_v63 = vadd.f32 %v6437_v50, %v2147_v8 }
 0x353   : > { %v2224_v40 = vmul.f32 %v6475_v43, %v6475_v43  ;;  %v6492_v60 = vmax.f32 %v2156_v19, 0.0  ;;  %v2196_v51 = vsel %vm7644_vm11, %v6475_v43, 0.0  ;;  %vm7654_vm11 = vcmask 1041408  }
 0x354   : > { %v2192_v54 = vsel %vm7640_vm15, %v6472_v49, 0.0  ;;  %v2222_v33 = vmul.f32 %v6472_v49, %v6472_v49  ;;  %v6483_v52 = vmax.f32 %v2148_v63, 0.0  ;;  %vm7649_vm15 = vmmov %vm7637_vm0 }
 0x355   : > { %v2193_v38 = vadd.f32 %v2192_v54, %v2191_v61  ;;  %v2240_v12 = vsel %vm7645_vm8, %v2224_v40, 0.0  ;;  %v2225_v17 = vmul.f32 %v6492_v60, %v6492_v60  ;;  %v2198_v28 = vsel %vm7646_vm4, %v6492_v60, 0.0  ;;  %vm7656_vm4 = vmmov %vm7654_vm11 }
 0x356   : > { %v2236_v27 = vsel %vm7641_vm7, %v2222_v33, 0.0  ;;  %v2194_v62 = vsel %vm7642_vm5, %v6483_v52, 0.0  ;;  %v2223_v1 = vmul.f32 %v6483_v52, %v6483_v52  ;;  %vm7650_vm7 = vcmask 24576   ;;  %vm7651_vm5 = vmmov %vm7637_vm0 }
 0x357   : > { %v2237_v10 = vadd.f32 %v2236_v27, %v2235_v0  ;;  %v2195_v41 = vadd.f32 %v2194_v62, %v2193_v38  ;;  %v2242_v47 = vsel %vm7637_vm0, %v2225_v17, 0.0  ;;  %vm7655_vm8 = vcmask 1040384   ;;  %vm7657_vm0 = vmmov %vm7656_vm4 }
 0x358   : > { %v2238_v36 = vsel %vm7643_vm13, %v2223_v1, 0.0  ;;  %vm7652_vm13 = vmmov %vm7650_vm7 }
 0x359   : > { %v2239_v32 = vadd.f32 %v2238_v36, %v2237_v10  ;;  %v3812_v11 = vpop.f32.mrb[8].mxu0  ;;  %v2197_v4 = vadd.f32 %v2196_v51, %v2195_v41 }
 0x35a   : > { %v2169_v26 = vadd.f32 %v3812_v11, %v6437_v50  ;;  %v2160_v31 = vpop.f32.mrb[9].mxu0 }
 0x35b   : > { %v2161_v21 = vadd.f32 %v6437_v50, %v2160_v31  ;;  %v3813_v24 = vpop.f32.mrb[10].mxu0  ;;  %v2241_v25 = vadd.f32 %v2240_v12, %v2239_v32  ;;  %v2199_v53 = vadd.f32 %v2198_v28, %v2197_v4  ;;  %v2268_v28 = vld [vmem:[#allocation13] sm:$0x1] }
 0x35c   : > { %v2163_v9 = vpop.f32.mrb[11].mxu0  ;;  %v6504_v46 = vmax.f32 %v2169_v26, 0.0 }
 0x35d   : > { %v6506_v34 = vmax.f32 %v2161_v21, 0.0  ;;  %v2164_v23 = vadd.f32 %v6437_v50, %v2163_v9  ;;  %v2243_v18 = vadd.f32 %v2242_v47, %v2241_v25  ;;  %v2276_v9 = vlaneseq }
 0x35e   : > { %v2228_v50 = vmul.f32 %v6504_v46, %v6504_v46  ;;  %v2204_v30 = vsel %vm7650_vm7, %v6504_v46, 0.0  ;;  %vm7663_vm7 = vmmov %vm7657_vm0 }
 0x35f   : > { %v2200_v37 = vsel %vm7647_vm10, %v6506_v34, 0.0  ;;  %v2226_v13 = vmul.f32 %v6506_v34, %v6506_v34  ;;  %v6514_v48 = vmax.f32 %v2164_v23, 0.0  ;;  %v2277_v25 = vshrl.u32 %v2276_v9, 7  ;;  %vm7659_vm10 = vmmov %vm7657_vm0 }
 0x360   : > { %v2201_v7 = vadd.f32 %v2200_v37, %v2199_v53  ;;  %v2248_v0 = vsel %vm7652_vm13, %v2228_v50, 0.0  ;;  %vm7665_vm13 = vmmov %vm7655_vm8 }
 0x361   : > { %v2227_v8 = vmul.f32 %v6514_v48, %v6514_v48  ;;  %v2202_v45 = vsel %vm7648_vm12, %v6514_v48, 0.0  ;;  %v2244_v63 = vsel %vm7649_vm15, %v2226_v13, 0.0  ;;  %v6527_v23 = vsub.s32 0, %v2277_v25  ;;  %v2271_v13 = vld [vmem:[#allocation15] sm:$0x1]  ;;  %vm7662_vm15 = vmmov %vm7657_vm0 }
 0x362   : > { %v2203_v61 = vadd.f32 %v2202_v45, %v2201_v7  ;;  %v2245_v19 = vadd.f32 %v2244_v63, %v2243_v18  ;;  %vm7661_vm12 = vcmask 1045504  }
 0x363   : > { %v2246_v54 = vsel %vm7651_vm5, %v2227_v8, 0.0  ;;  %7653 = vst [vmem:[#allocation36_spill] sm:$0xff] %v6527_v23  ;;  %vm7664_vm5 = vcmask 1046528  }
 0x364   : > { %v2205_v33 = vadd.f32 %v2204_v30, %v2203_v61  ;;  %v2247_v38 = vadd.f32 %v2246_v54, %v2245_v19 }
 0x366   : > { %2206 = vadd.xlane.f32.xlu1 %v2205_v33  ;;  %v2249_v27 = vadd.f32 %v2248_v0, %v2247_v38 }
 0x368   : > { %2250 = vadd.xlane.f32.xlu0 %v2249_v27 }
 0x3f3   : > { %v2207_v62 = vpop.xlane.xlu1 %2206 }
 0x3f4   : > { %v2208_v1 = vrot.slane %v2207_v62, 4 }
 0x3f5   : > { %v2251_v40 = vpop.xlane.xlu0 %2250 }
 0x3f6   : > { %v2209_v10 = vadd.f32 %v2208_v1, %v2207_v62  ;;  %v2252_v41 = vrot.slane %v2251_v40, 4 }
 0x3f8   : > { %v2210_v36 = vrot.slane %v2209_v10, 2  ;;  %v2253_v51 = vadd.f32 %v2252_v41, %v2251_v40 }
 0x3fa   : > { %v2254_v32 = vrot.slane %v2253_v51, 2  ;;  %v2211_v11 = vadd.f32 %v2210_v36, %v2209_v10 }
 0x3fc   : > { %v2212_v4 = vrot.slane %v2211_v11, 1  ;;  %v2255_v26 = vadd.f32 %v2254_v32, %v2253_v51 }
 0x3fe   : > { %v2213_v31 = vadd.f32 %v2212_v4, %v2211_v11  ;;  %v2256_v12 = vrot.slane %v2255_v26, 1 }
 0x400   : > { %3835 = vpush %v2213_v31  ;;  %v2257_v17 = vadd.f32 %v2256_v12, %v2255_v26 }
 0x402   : > { %3837 = vpush %v2257_v17 }
 0x431   : > { %s3836_s26 = spop %3835 }
 0x432   : > { %s2217_s21 = smul.f32 0.0030864198, %s3836_s26 }
 0x433   : > { %s3838_s1 = spop %3837 }
 0x434   : > { %s2262_s17 = smul.f32 %s2217_s21, %s2217_s21  ;;  %v2272_v37 = vstv %s2217_s21 }
 0x435   : > { %s2261_s14 = smul.f32 0.0030864198, %s3838_s1 }
 0x437   : > { %s2263_s28 = ssub.f32 %s2261_s14, %s2262_s17  ;;  %s3834_s14 = smul.u32 88, %s5393_s29 }
 0x439   : > { %s2264_s27 = sadd.f32 1e-05, %s2263_s28 }
 0x43b   : > { %v2265_v21 = vstv %s2264_s27  ;;  %s7685_s27 = smov 28  }
 0x43c   : > { %4678 = vrsqrt.f32 %v2265_v21 }
 0x446   : > { %v4679_v24 = vpop.eup %4678 }
 0x447   : > { %3839 = vpush %v4679_v24 }
 0x478   : > { %s3840_s25 = spop %3839 }
 0x479   : > { %v2269_v53 = vstv %s3840_s25  ;;  %s7687_s25 = smov 32  }
 0x47a   : > { %v2270_v47 = vmul.f32 %v2269_v53, %v2268_v28 }
 0x47c   : > { %v2273_v7 = vmul.f32 %v2272_v37, %v2270_v47  ;;  %v6530_v18 = vrot.slane %v2270_v47, %v6527_v23 }
 0x47e   : > { %v2274_v8 = vsub.f32 %v2271_v13, %v2273_v7  ;;  %v2304_v45 = vmul.f32 %v6530_v18, %v6461_v42  ;;  %v2358_v63 = vmul.f32 %v6530_v18, %v6506_v34  ;;  %v2300_v61 = vmul.f32 %v6530_v18, %v6448_v22 }
 0x47f   : > { %v2347_v19 = vmul.f32 %v6530_v18, %v6492_v60  ;;  %v2315_v30 = vmul.f32 %v6530_v18, %v6472_v49  ;;  %v2336_v54 = vmul.f32 %v6530_v18, %v6475_v43  ;;  %v2282_v42 = vmul.f32 %v6530_v18, %v6441_v6 }
 0x480   : > { %v6535_v50 = vrot.slane %v2274_v8, %v6527_v23  ;;  %v2325_v33 = vmul.f32 %v6530_v18, %v6483_v52  ;;  %v2281_v21 = vmul.f32 %v6530_v18, %v6444_v16 }
 0x482   : > { %v2305_v34 = vadd.f32 %v2304_v45, %v6535_v50  ;;  %v6553_v38 = vadd.f32 %v2358_v63, %v6535_v50  ;;  %v2301_v22 = vadd.f32 %v2300_v61, %v6535_v50  ;;  %v6557_v60 = vadd.f32 %v2347_v19, %v6535_v50 }
 0x483   : > { %v2316_v49 = vadd.f32 %v2315_v30, %v6535_v50  ;;  %v6561_v43 = vadd.f32 %v2336_v54, %v6535_v50  ;;  %v2290_v6 = vadd.f32 %v6535_v50, %v2282_v42  ;;  %v2326_v0 = vadd.f32 %v2325_v33, %v6535_v50 }
 0x484   : > { %v2309_v52 = vrot.slane %v2305_v34, 1  ;;  %v2362_v27 = vrot.slane %v6553_v38, 6  ;;  %v6567_v62 = vsel %vm7654_vm11, %v2301_v22, 0.0  ;;  %v2308_v1 = vrot.slane %v2301_v22, 1  ;;  %vm7666_vm11 = vmmov %vm7657_vm0 }
 0x485   : > { %v2352_v40 = vrot.slane %v6557_v60, 5  ;;  %v2319_v10 = vrot.slane %v2316_v49, 2  ;;  %v2341_v41 = vrot.slane %v6561_v43, 4  ;;  %v6572_v36 = vsel %vm7655_vm8, 0.0, %v2290_v6 }
 0x486   : > { %v6575_v51 = vsel %vm7656_vm4, %v2309_v52, 0.0  ;;  %v6578_v32 = vsel %vm7657_vm0, %v2362_v27, 0.0  ;;  %v2424_v11 = vrot.slane %v6572_v36, 2  ;;  %v6582_v4 = vrot.slane %v6567_v62, 2  ;;  %vm7667_vm4 = vmmov %vm7657_vm0 }
 0x487   : > { %7658 = vst [vmem:[#allocation37_spill] sm:$0xff] %v6578_v32  ;;  %v4330_v26 = vpack.i.bf16 %v6575_v51, %v6578_v32  ;;  %v6587_v31 = vsel %vm7659_vm10, %v2352_v40, 0.0  ;;  %v6599_v24 = vsel %vm7662_vm15, %v2319_v10, 0.0  ;;  %v6602_v9 = vsel %vm7663_vm7, %v2341_v41, 0.0  ;;  %vm7668_vm0 = vmmov %vm7664_vm5 }
 0x488   : > { %7660 = vst [vmem:[#allocation38_spill] sm:$0xff] %v6587_v31  ;;  %v4325_v12 = vpack.i.bf16 %v6567_v62, %v6587_v31  ;;  %v6593_v17 = vsel %vm7661_vm12, %v2424_v11, %v6582_v4  ;;  %v2330_v25 = vrot.slane %v2326_v0, 3  ;;  %v2310_v28 = vsel %vm7664_vm5, %v2308_v1, %v2309_v52  ;;  %vm7669_vm10 = vmmov %vm7661_vm12 }
 0x489   : > { %4331 = vrot.lane.b32.xlu1 %v4330_v26, %s5036_s22  ;;  %v2289_v53 = vadd.f32 %v6535_v50, %v2281_v21  ;;  %v2294_v47 = vrot.slane %v2290_v6, 7  ;;  %v4350_v37 = vpack.i.bf16 %v6582_v4, %v6593_v17  ;;  %v4335_v16 = vpack.i.bf16 %v6602_v9, %v6599_v24  ;;  %vm7670_vm7 = vmmov %vm7655_vm8 }
 0x48a   : > { %4326 = vrot.lane.b32.xlu0 %v4325_v12, %s5035_s16  ;;  %v6612_v13 = vsel %vm7665_vm13, 0.0, %v2310_v28  ;;  %v6616_v8 = vsel %vm7666_vm11, %v2330_v25, 0.0  ;;  %v2415_v45 = vrot.slane %v6572_v36, 1  ;;  %v6620_v63 = vrot.slane %v6567_v62, 1  ;;  %vm7671_vm5 = vmmov %vm7670_vm7 }
 0x48b   : > { %v2293_v7 = vrot.slane %v2289_v53, 7  ;;  %v2318_v19 = vrot.slane %v2305_v34, 2  ;;  %v4355_v30 = vpack.i.bf16 %v6575_v51, %v6612_v13  ;;  %v4340_v54 = vpack.i.bf16 %v6587_v31, %v6616_v8  ;;  %vm7672_vm13 = vmmov %vm7671_vm5 }
 0x48c   : > { %v6634_v33 = vsel %vm7668_vm0, %v2415_v45, %v6620_v63  ;;  %v2329_v38 = vrot.slane %v2316_v49, 3  ;;  %v2340_v22 = vrot.slane %v2326_v0, 4  ;;  %vm2328_vm12 = vcmask 1044480   ;;  %vm7673_vm11 = vmmov %vm7667_vm4 }
 0x48d   : > { %4351 = vrot.lane.b32.xlu1 %v4350_v37, %s5038_s20  ;;  %v2295_v61 = vsel %vm7655_vm8, %v2293_v7, %v2294_v47  ;;  %v2320_v34 = vsel %vm7669_vm10, %v2318_v19, %v2319_v10  ;;  %vm2339_vm15 = vcmask 1043456   ;;  %v4345_v52 = vpack.i.bf16 %v6620_v63, %v6634_v33 }
 0x48e   : > { %4336 = vrot.lane.b32.xlu0 %v4335_v16, %s5035_s16  ;;  %v6629_v42 = vsel %vm7667_vm4, %v2295_v61, 0.0  ;;  %v6644_v1 = vsel %vm7670_vm7, 0.0, %v2320_v34  ;;  %v2331_v11 = vsel %vm2328_vm12, %v2329_v38, %v2330_v25  ;;  %v2342_v49 = vsel %vm2339_vm15, %v2340_v22, %v2341_v41  ;;  %vm7675_vm4 = vmmov %vm7671_vm5 }
 0x48f   : > { %v4365_v6 = vpack.i.bf16 %v6572_v36, %v6629_v42  ;;  %v2361_v0 = vrot.slane %v6557_v60, 6  ;;  %v2351_v10 = vrot.slane %v6561_v43, 5  ;;  %v4370_v26 = vpack.i.bf16 %v6612_v13, %v6567_v62  ;;  %vm7677_vm0 = vmmov %vm7675_vm4 }
 0x490   : > { %v4360_v12 = vpack.i.bf16 %v6599_v24, %v6644_v1  ;;  %v6654_v21 = vsel %vm7671_vm5, 0.0, %v2331_v11  ;;  %v6657_v28 = vsel %vm7672_vm13, 0.0, %v2342_v49  ;;  %v2368_v41 = vmul.f32 %v6530_v18, %v6514_v48  ;;  %vm7679_vm10 = vmmov %vm7677_vm0 }
 0x491   : > { %4356 = vrot.lane.b32.xlu1 %v4355_v30, %s5035_s16  ;;  %v2363_v60 = vsel %vm7673_vm11, %v2361_v0, %v2362_v27  ;;  %v2369_v43 = vmul.f32 %v6530_v18, %v6504_v46  ;;  %vm7674_vm8 = vcmask 1042432   ;;  %v4385_v53 = vpack.i.bf16 %v6654_v21, %v6657_v28  ;;  %vm7680_vm12 = vmmov %vm7677_vm0 }
 0x492   : > { %4341 = vrot.lane.b32.xlu0 %v4340_v54, %s5036_s22  ;;  %v2353_v25 = vsel %vm7674_vm8, %v2351_v10, %v2352_v40  ;;  %v2370_v47 = vadd.f32 %v2368_v41, %v6535_v50  ;;  %v4375_v27 = vpack.i.bf16 %v6644_v1, %v6654_v21  ;;  %v6674_v16 = vsel %vm7675_vm4, 0.0, %v2363_v60  ;;  %vm7681_vm15 = vmmov %vm7677_vm0 }
 0x493   : > { %v2371_v37 = vadd.f32 %v2369_v43, %v6535_v50  ;;  %7676 = vst [vmem:[#allocation39_spill] sm:$0xff] %v6674_v16  ;;  %v6678_v46 = vsel %vm7677_vm0, 0.0, %v2353_v25  ;;  %v4390_v48 = vpack.i.bf16 %v6602_v9, %v6674_v16  ;;  %v6686_v45 = vsel %vm7679_vm10, 0.0, %v2293_v7  ;;  %vm7682_vm7 = vmmov %vm7673_vm11 }
 0x494   : > { %7678 = vst [vmem:[#allocation40_spill] sm:$0xff] %v6678_v46  ;;  %v2374_v18 = vrot.slane %v2370_v47, 7  ;;  %v4380_v50 = vpack.i.bf16 %v6616_v8, %v6678_v46  ;;  %v4395_v61 = vpack.i.bf16 %v6657_v28, %v6686_v45  ;;  %v4405_v30 = vpack.i.bf16 %v6578_v32, %v6674_v16 }
 0x495   : > { %4366 = vrot.lane.b32.xlu1 %v4365_v6, %s5035_s16  ;;  %v2375_v40 = vrot.slane %v2371_v37, 7  ;;  %v6696_v54 = vrot.slane %v6599_v24, 2  ;;  %v6699_v38 = vrot.slane %v6602_v9, 2  ;;  %v6704_v22 = vrot.slane %v6587_v31, 2 }
 0x496   : > { %4346 = vrot.lane.b32.xlu0 %v4345_v52, %s5037_s13  ;;  %v2379_v7 = vsel %vm7681_vm15, 0.0, %v2374_v18  ;;  %v6707_v34 = vrot.slane %v6616_v8, 2  ;;  %v4400_v52 = vpack.i.bf16 %v6678_v46, %v6572_v36  ;;  %v6716_v0 = vrot.slane %v6587_v31, 1 }
 0x497   : > { %v2376_v19 = vsel %vm7680_vm12, %v2374_v18, %v2375_v40  ;;  %v3051_v11 = vrot.slane %v2379_v7, 1  ;;  %v4420_v49 = vpack.i.bf16 %v6699_v38, %v6696_v54  ;;  %v3060_v10 = vrot.slane %v2379_v7, 2 }
 0x498   : > { %v2380_v6 = vsel %vm7682_vm7, %v2376_v19, 0.0  ;;  %v2496_v60 = vrot.slane %v6575_v51, 1  ;;  %v2592_v41 = vrot.slane %v6599_v24, 1  ;;  %v6725_v43 = vrot.slane %v6602_v9, 1 }
 0x499   : > { %4371 = vrot.lane.b32.xlu1 %v4370_v26, %s5036_s22  ;;  %v6727_v25 = vpack.i.bf16 %v2380_v6, %v2379_v7  ;;  %vm7683_vm5 = vcmask 1046528   ;;  %v3061_v47 = vrot.slane %v2380_v6, 2  ;;  %v4425_v37 = vpack.i.bf16 %v6620_v63, %v6716_v0 }
 0x49a   : > { %4361 = vrot.lane.b32.xlu0 %v4360_v12, %s5036_s22  ;;  %v3052_v12 = vrot.slane %v2380_v6, 1  ;;  %vm7684_vm13 = vcmask 1045504   ;;  %v6746_v19 = vrot.slane %v6616_v8, 1  ;;  %v2505_v7 = vrot.slane %v6575_v51, 2  ;;  %vm7688_vm11 = vmmov %vm7683_vm5 }
 0x49b   : > { %v3062_v18 = vsel %vm7684_vm13, %v3060_v10, %v3061_v47  ;;  %v6754_v6 = vrot.slane %v6578_v32, 2  ;;  %vm7689_vm8 = vmmov %vm7684_vm13  ;;  %v2389_v26 = vrot.slane %v6686_v45, 1 }
 0x49c   : > { %v6741_v40 = vpack.i.bf16 %v3061_v47, %v3062_v18  ;;  %v4450_v10 = vpack.i.bf16 %v6707_v34, %v2505_v7  ;;  %v2495_v47 = vrot.slane %v6612_v13, 1  ;;  %vm7690_vm4 = vmmov %vm7683_vm5 }
 0x49d   : > { %4386 = vrot.lane.b32.xlu1 %v4385_v53, %s5036_s22  ;;  %v3053_v53 = vsel %vm7683_vm5, %v3051_v11, %v3052_v12  ;;  %v4445_v11 = vpack.i.bf16 %v2505_v7, %v6754_v6  ;;  %vm7691_vm0 = vmmov %vm7689_vm8 }
 0x49e   : > { %4376 = vrot.lane.b32.xlu0 %v4375_v27, %s5035_s16  ;;  %v6733_v27 = vrot.slane %v6578_v32, 1  ;;  %vm7692_vm10 = vmmov %vm7690_vm4 }
 0x49f   : > { %vm7693_vm12 = vmmov %vm7691_vm0 }
 0x4a0   : > { %vm7694_vm15 = vmmov %vm7690_vm4 }
 0x4a1   : > { %4391 = vrot.lane.b32.xlu1 %v4390_v48, %s5036_s22  ;;  %v6735_v48 = vpack.i.bf16 %v3052_v12, %v3053_v53  ;;  %v4465_v12 = vpack.i.bf16 %v6716_v0, %v6746_v19  ;;  %v6766_v53 = vrot.slane %v6629_v42, 2  ;;  %vm7695_vm7 = vmmov %vm7691_vm0 }
 0x4a2   : > { %4381 = vrot.lane.b32.xlu0 %v4380_v50, %s5035_s16  ;;  %v4415_v50 = vpack.i.bf16 %v6725_v43, %v2592_v41  ;;  %vm7696_vm5 = vmmov %vm7690_vm4 }
 0x4a3   : > { %v4475_v18 = vpack.i.bf16 %v6593_v17, %v6766_v53  ;;  %vm7697_vm13 = vmmov %vm7691_vm0 }
 0x4a5   : > { %4396 = vrot.lane.b32.xlu1 %v4395_v61, %s5035_s16  ;;  %v4435_v61 = vpack.i.bf16 %v2496_v60, %v6733_v27 }
 0x4a6   : > { %4406 = vrot.lane.b32.xlu0 %v4405_v30, %s5035_s16  ;;  %v4430_v30 = vpack.i.bf16 %v6582_v4, %v6704_v22 }
 0x4a9   : > { %4401 = vrot.lane.b32.xlu1 %v4400_v52, %s5036_s22  ;;  %v4440_v52 = vpack.i.bf16 %v6746_v19, %v2496_v60 }
 0x4aa   : > { %4421 = vrot.lane.b32.xlu0 %v4420_v49, %s5038_s20 }
 0x4ad   : > { %4411 = vrot.lane.b32.xlu1 %v6727_v25, %s5036_s22  ;;  %s7686_s22 = smov 20  }
 0x4ae   : > { %4426 = vrot.lane.b32.xlu0 %v4425_v37, %s5040_s18  ;;  %v2390_v37 = vrot.slane %v6629_v42, 1 }
 0x4b1   : > { %4416 = vrot.lane.b32.xlu1 %v4415_v50, %s5037_s13 }
 0x4b2   : > { %4436 = vrot.lane.b32.xlu0 %v4435_v61, %s7685_s27  ;;  %v2497_v61 = vsel %vm7688_vm11, %v2495_v47, %v2496_v60  ;;  %v2398_v47 = vrot.slane %v6686_v45, 2  ;;  %vm7698_vm11 = vmmov %vm7690_vm4 }
 0x4b5   : > { %4431 = vrot.lane.b32.xlu1 %v4430_v30, %s7686_s22  ;;  %v2591_v30 = vrot.slane %v6644_v1, 1 }
 0x4b6   : > { %4441 = vrot.lane.b32.xlu0 %v4440_v52, %s5037_s13  ;;  %v4470_v52 = vpack.i.bf16 %v6634_v33, %v2390_v37 }
 0x4b7   : > { %v2593_v23 = vsel %vm7690_vm4, %v2591_v30, %v2592_v41 }
 0x4b8   : > { %v4490_v59 = vpack.i.bf16 %v2592_v41, %v2593_v23 }
 0x4b9   : > { %4446 = vrot.lane.b32.xlu1 %v4445_v11, %s7687_s25  ;;  %v4480_v11 = vpack.i.bf16 %v2496_v60, %v2497_v61  ;;  %v2391_v60 = vsel %vm7692_vm10, %v2389_v26, %v2390_v37  ;;  %vm7701_vm10 = vcmask 1041408  }
 0x4ba   : > { %4461 = vrot.lane.b32.xlu0 %v4420_v49, %s7686_s22  ;;  %v2504_v49 = vrot.slane %v6612_v13, 2  ;;  %v4495_v30 = vpack.i.bf16 %v2593_v23, %v2391_v60 }
 0x4bd   : > { %4451 = vrot.lane.b32.xlu1 %v4450_v10, %s5038_s20  ;;  %v2506_v10 = vsel %vm7689_vm8, %v2504_v49, %v2505_v7  ;;  %v2777_v49 = vrot.slane %v6657_v28, 1  ;;  %vm7699_vm8 = vmmov %vm7691_vm0 }
 0x4be   : > { %4466 = vrot.lane.b32.xlu0 %v4465_v12, %s7685_s27  ;;  %v2600_v12 = vrot.slane %v6644_v1, 2 }
 0x4bf   : > { %v2779_v41 = vsel %vm7694_vm15, %v2777_v49, %v6725_v43  ;;  %vm7703_vm15 = vcmask 31744  }
 0x4c1   : > { %4456 = vrot.lane.b32.xlu1 %v4415_v50, %s5040_s18  ;;  %v4485_v50 = vpack.i.bf16 %v2505_v7, %v2506_v10  ;;  %v2400_v7 = vsel %vm7693_vm12, %v2398_v47, %v6766_v53  ;;  %v4520_v47 = vpack.i.bf16 %v2497_v61, %v6620_v63  ;;  %v4530_v63 = vpack.i.bf16 %v2506_v10, %v6582_v4  ;;  %vm7702_vm12 = vmmov %vm7701_vm10 }
 0x4c2   : > { %4476 = vrot.lane.b32.xlu0 %v4475_v18, %s7686_s22  ;;  %v2602_v18 = vsel %vm7691_vm0, %v2600_v12, %v6696_v54  ;;  %v4510_v12 = vpack.i.bf16 %v2779_v41, %v2497_v61 }
 0x4c3   : > { %v4505_v26 = vpack.i.bf16 %v2602_v18, %v2400_v7 }
 0x4c5   : > { %4471 = vrot.lane.b32.xlu1 %v4470_v52, %s5040_s18  ;;  %v4500_v52 = vpack.i.bf16 %v6696_v54, %v2602_v18  ;;  %v2688_v54 = vrot.slane %v6654_v21, 2 }
 0x4c6   : > { %4481 = vrot.lane.b32.xlu0 %v4480_v11, %s5040_s18  ;;  %v2786_v11 = vrot.slane %v6657_v28, 2 }
 0x4c9   : > { %4486 = vrot.lane.b32.xlu1 %v4485_v50, %s7686_s22  ;;  %v2679_v50 = vrot.slane %v6654_v21, 1 }
 0x4ca   : > { %4491 = vrot.lane.b32.xlu0 %v4490_v59, %s7685_s27  ;;  %v2788_v59 = vsel %vm7695_vm7, %v2786_v11, %v6699_v38  ;;  %v2865_v11 = vrot.slane %v6678_v46, 1  ;;  %vm7704_vm7 = vcmask 64512  }
 0x4cb   : > { %v4515_v49 = vpack.i.bf16 %v2788_v59, %v2506_v10 }
 0x4cd   : > { %4501 = vrot.lane.b32.xlu1 %v4500_v52, %s7687_s25  ;;  %v2681_v52 = vsel %vm7696_vm5, %v2679_v50, %v6746_v19  ;;  %v2874_v50 = vrot.slane %v6678_v46, 2  ;;  %vm7705_vm5 = vcmask 97280  }
 0x4ce   : > { %4496 = vrot.lane.b32.xlu0 %v4495_v30, %s5037_s13  ;;  %v2690_v30 = vsel %vm7697_vm13, %v2688_v54, %v6707_v34  ;;  %v4545_v61 = vpack.i.bf16 %v2681_v52, %v2390_v37  ;;  %vm7706_vm13 = vcmask 130048  }
 0x4cf   : > { %v4535_v56 = vpack.i.bf16 %v2602_v18, %v2690_v30  ;;  %v4555_v18 = vpack.i.bf16 %v2690_v30, %v6766_v53  ;;  %v2876_v54 = vsel %vm7699_vm8, %v2874_v50, %v6704_v22  ;;  %v4565_v37 = vpack.i.bf16 %v2690_v30, %v2788_v59 }
 0x4d0   : > { %v4550_v4 = vpack.i.bf16 %v6707_v34, %v2876_v54  ;;  %v4560_v53 = vpack.i.bf16 %v2681_v52, %v2779_v41  ;;  %v4580_v30 = vpack.i.bf16 %v2779_v41, %v2391_v60  ;;  %vm7708_vm8 = vcmask 195584  }
 0x4d1   : > { %4506 = vrot.lane.b32.xlu1 %v4505_v26, %s5038_s20  ;;  %v4525_v26 = vpack.i.bf16 %v2593_v23, %v2681_v52 }
 0x4d2   : > { %4511 = vrot.lane.b32.xlu0 %v4510_v12, %s5037_s13  ;;  %v2867_v12 = vsel %vm7698_vm11, %v2865_v11, %v6716_v0  ;;  %v4595_v11 = vpack.i.bf16 %v6704_v22, %v2876_v54  ;;  %vm7707_vm11 = vcmask 162816  }
 0x4d3   : > { %v4540_v23 = vpack.i.bf16 %v6746_v19, %v2867_v12  ;;  %v2972_v19 = vrot.slane %v6674_v16, 2  ;;  %v4590_v52 = vpack.i.bf16 %v6716_v0, %v2867_v12  ;;  %v4600_v60 = vpack.i.bf16 %v2867_v12, %v6634_v33 }
 0x4d4   : > { %v7700_v0 = vpack.i.bf16 %v6704_v22, %v6707_v34  ;;  %v4670_v22 = vld [vmem:[#allocation16 + $0x8] sm:$0xff]   ;;  %v4671_v34 = vld [vmem:[#allocation16 + $0x10] ss:$0 sps:$4 sm:$0x33]  }
 0x4d5   : > { %4521 = vrot.lane.b32.xlu1 %v4520_v47, %s7685_s27 }
 0x4d6   : > { %4516 = vrot.lane.b32.xlu0 %v4515_v49, %s5038_s20  ;;  %v2974_v49 = vsel %vm7691_vm0, %v2972_v19, %v6754_v6 }
 0x4d7   : > { %v4620_v41 = vpack.i.bf16 %v6754_v6, %v2974_v49 }
 0x4d9   : > { %4526 = vrot.lane.b32.xlu1 %v4525_v26, %s5040_s18  ;;  %v4575_v26 = vpack.i.bf16 %v6699_v38, %v2974_v49 }
 0x4da   : > { %4536 = vrot.lane.b32.xlu0 %v4535_v56, %s7686_s22  ;;  %v2963_v56 = vrot.slane %v6674_v16, 1 }
 0x4dc   : > { %v2965_v10 = vsel %vm7690_vm4, %v2963_v56, %v6733_v27  ;;  %vm7709_vm4 = vmmov %vm7703_vm15 }
 0x4dd   : > { %4531 = vrot.lane.b32.xlu1 %v4530_v63, %s7687_s25  ;;  %v4570_v47 = vpack.i.bf16 %v6725_v43, %v2965_v10  ;;  %v4585_v63 = vpack.i.bf16 %v2788_v59, %v2400_v7  ;;  %v4610_v43 = vpack.i.bf16 %v2876_v54, %v6593_v17  ;;  %v4615_v38 = vpack.i.bf16 %v6733_v27, %v2965_v10  ;;  %v4669_v17 = vld [vmem:[#allocation16] sm:$0xff]   ;;  %vm7710_vm0 = vmmov %vm7709_vm4 }
 0x4de   : > { %4546 = vrot.lane.b32.xlu0 %v4545_v61, %s5037_s13  ;;  %3814 = vmatprep.subr.bf16.mxu1 %v4669_v17 }
 0x4df   : > { %3815 = vmatpush3.bf16.msra.mxu1 %v4669_v17 }
 0x4e0   : > { %3816 = vmatprep.subr.bf16.mxu1 %v4670_v22 }
 0x4e1   : > { %4541 = vrot.lane.b32.xlu1 %v4540_v23, %s5040_s18  ;;  %v3254_v23 = vsel %vm7702_vm12, %v4671_v34, 0  ;;  %vm7712_vm12 = vmmov %vm7704_vm7 }
 0x4e2   : > { %4556 = vrot.lane.b32.xlu0 %v4555_v18, %s5038_s20 }
 0x4e3   : > { %3817 = vmatpush3.bf16.msra.mxu1 %v4670_v22 }
 0x4e4   : > { %3833 = vmatprep.subr.msk.bf16.mxu1 %vm7701_vm10, %v4671_v34  ;;  %vm7711_vm10 = vmmov %vm7704_vm7 }
 0x4e5   : > { %4551 = vrot.lane.b32.xlu1 %v4550_v4, %s7686_s22 }
 0x4e6   : > { %4566 = vrot.lane.b32.xlu0 %v4565_v37, %s7687_s25 }
 0x4e7   : > { %3819 = vmatpush3.bf16.msra.mxu1 %v3254_v23 }
 0x4e9   : > { %4561 = vrot.lane.b32.xlu1 %v4560_v53, %s7685_s27 }
 0x4ea   : > { %4571 = vrot.lane.b32.xlu0 %v4570_v47, %s7685_s27 }
 0x4ed   : > { %4581 = vrot.lane.b32.xlu1 %v4580_v30, %s5040_s18 }
 0x4ee   : > { %4576 = vrot.lane.b32.xlu0 %v4575_v26, %s7687_s25 }
 0x4f1   : > { %4596 = vrot.lane.b32.xlu1 %v4595_v11, %s5038_s20 }
 0x4f2   : > { %4586 = vrot.lane.b32.xlu0 %v4585_v63, %s7686_s22 }
 0x4f5   : > { %4611 = vrot.lane.b32.xlu1 %v4610_v43, %s7687_s25 }
 0x4f6   : > { %4591 = vrot.lane.b32.xlu0 %v4590_v52, %s5037_s13 }
 0x4f9   : > { %4616 = vrot.lane.b32.xlu1 %v4615_v38, %s5040_s18 }
 0x4fa   : > { %4601 = vrot.lane.b32.xlu0 %v4600_v60, %s7685_s27 }
 0x4fb   : > { %v6855_v7 = vpop.permute.xlu1 %4331 }
 0x4fc   : > { %v6858_v59 = vpop.permute.xlu0 %4326  ;;  %v4333_v22 = vunpack.i.l.bf16 %v6855_v7 }
 0x4fd   : > { %4621 = vrot.lane.b32.xlu1 %v4620_v41, %s7686_s22  ;;  %v4328_v63 = vunpack.i.l.bf16 %v6858_v59 }
 0x4fe   : > { %4606 = vrot.lane.b32.xlu0 %v7700_v0, %s7687_s25 }
 0x4ff   : > { %v6865_v33 = vpop.permute.xlu1 %4351 }
 0x500   : > { %v6867_v27 = vpop.permute.xlu0 %4336  ;;  %v4354_v46 = vunpack.i.h.bf16 %v6865_v33 }
 0x501   : > { %4626 = vrot.lane.b32.xlu1 %v6735_v48, %s7685_s27  ;;  %v4339_v29 = vunpack.i.h.bf16 %v6867_v27  ;;  %s3847_s27 = smul.u32 1408, %s5116_s15 }
 0x502   : > { %4636 = vrot.lane.b32.xlu0 %v6741_v40, %s7687_s25 }
 0x503   : > { %v6873_v6 = vpop.permute.xlu1 %4356 }
 0x504   : > { %v6875_v61 = vpop.permute.xlu0 %4341 }
 0x505   : > { %4631 = vrot.lane.b32.xlu1 %v6727_v25, %s5035_s16 }
 0x506   : > { %4646 = vrot.lane.b32.xlu0 %v4620_v41, %s5038_s20 }
 0x507   : > { %v6880_v12 = vpop.permute.xlu1 %4366 }
 0x508   : > { %v6882_v50 = vpop.permute.xlu0 %4346 }
 0x509   : > { %4641 = vrot.lane.b32.xlu1 %v4615_v38, %s5037_s13  ;;  %v4349_v15 = vunpack.i.h.bf16 %v6882_v50 }
 0x50a   : > { %4651 = vrot.lane.b32.xlu0 %v6735_v48, %s5040_s18 }
 0x50b   : > { %v6889_v25 = vpop.permute.xlu1 %4371 }
 0x50c   : > { %v6891_v18 = vpop.permute.xlu0 %4361 }
 0x50d   : > { %4656 = vrot.lane.b32.xlu1 %v6741_v40, %s7686_s22  ;;  %s454_s22 = scalar_lea.vmem [#allocation22], %s3834_s14 }
 0x50e   : > { %s3497_s25 = sshll.u32 %s454_s22, 4  ;;  %s7352_s25 = int_to_ptr.vmem [resolvable:$true] %s3497_s25 }
 0x50f   : > { %v6895_v54 = vpop.permute.xlu1 %4386 }
 0x510   : > { %v6897_v56 = vpop.permute.xlu0 %4376 }
 0x513   : > { %v6899_v4 = vpop.permute.xlu1 %4391 }
 0x514   : > { %v6901_v37 = vpop.permute.xlu0 %4381 }
 0x517   : > { %v6903_v10 = vpop.permute.xlu1 %4396 }
 0x518   : > { %v6905_v19 = vpop.permute.xlu0 %4406 }
 0x51b   : > { %v6907_v48 = vpop.permute.xlu1 %4401 }
 0x51c   : > { %v6909_v53 = vpop.permute.xlu0 %4421 }
 0x51d   : > { %v4424_v11 = vunpack.i.h.bf16 %v6909_v53 }
 0x51f   : > { %v6911_v47 = vpop.permute.xlu1 %4411 }
 0x520   : > { %v6913_v49 = vpop.permute.xlu0 %4426 }
 0x521   : > { %v4428_v52 = vunpack.i.l.bf16 %v6913_v49 }
 0x523   : > { %v6915_v40 = vpop.permute.xlu1 %4416 }
 0x524   : > { %v6917_v30 = vpop.permute.xlu0 %4436  ;;  %v4419_v26 = vunpack.i.h.bf16 %v6915_v40 }
 0x526   : > { %v2982_v43 = vsel %vm7703_vm15, %v6602_v9, %v4419_v26  ;;  %vm7713_vm15 = vmmov %vm7705_vm5 }
 0x527   : > { %v2984_v38 = vsel %vm7704_vm7, %v2982_v43, %v4424_v11  ;;  %v6926_v60 = vpop.permute.xlu1 %4431  ;;  %vm7714_vm7 = vmmov %vm7705_vm5 }
 0x528   : > { %v4442_v41 = vpop.permute.xlu0 %4441  ;;  %v4433_v17 = vunpack.i.l.bf16 %v6926_v60  ;;  %v2986_v0 = vsel %vm7705_vm5, %v2984_v38, %v4328_v63  ;;  %vm7715_vm5 = vmmov %vm7710_vm0 }
 0x529   : > { %v2988_v34 = vsel %vm7706_vm13, %v2986_v0, %v4428_v52  ;;  %v4444_v11 = vunpack.i.h.bf16 %v4442_v41  ;;  %v4443_v43 = vunpack.i.l.bf16 %v4442_v41  ;;  %v4338_v52 = vunpack.i.l.bf16 %v6867_v27  ;;  %vm7716_vm13 = vmmov %vm7710_vm0 }
 0x52a   : > { %v2990_v23 = vsel %vm7707_vm11, %v2988_v34, %v4433_v17  ;;  %v4348_v17 = vunpack.i.l.bf16 %v6882_v50  ;;  %v4368_v41 = vunpack.i.l.bf16 %v6880_v12  ;;  %vm7717_vm11 = vmmov %vm7714_vm7 }
 0x52b   : > { %v6934_v16 = vsel %vm7708_vm8, %v2990_v23, %v4333_v22  ;;  %v6936_v9 = vpop.permute.xlu1 %4446  ;;  %v2884_v0 = vsel %vm7709_vm4, %v6616_v8, %v4444_v11  ;;  %v2698_v22 = vsel %vm7710_vm0, %v6575_v51, %v4443_v43  ;;  %v4358_v8 = vunpack.i.l.bf16 %v6873_v6  ;;  %vm7720_vm0 = vmmov %vm7711_vm10 }
 0x52c   : > { %v4462_v26 = vpop.permute.xlu0 %4461  ;;  %v2610_v51 = vsel %vm7715_vm5, %v6567_v62, %v4349_v15  ;;  %vm7718_vm8 = vcmask 130048  }
 0x52d   : > { %vm7719_vm4 = vmmov %vm7718_vm8  ;;  %v2612_v15 = vsel %vm7720_vm0, %v2610_v51, %v4354_v46 }
 0x52f   : > { %v4452_v32 = vpop.permute.xlu1 %4451 }
 0x530   : > { %v6940_v63 = vpop.permute.xlu0 %4466  ;;  %v4454_v38 = vunpack.i.h.bf16 %v4452_v32  ;;  %v4453_v20 = vunpack.i.l.bf16 %v4452_v32  ;;  %v4353_v32 = vunpack.i.l.bf16 %v6865_v33  ;;  %v4464_v33 = vunpack.i.h.bf16 %v4462_v26 }
 0x531   : > { %v4469_v62 = vunpack.i.h.bf16 %v6940_v63 }
 0x532   : > { %v2886_v34 = vsel %vm7711_vm10, %v2884_v0, %v4454_v38  ;;  %v2700_v23 = vsel %vm7712_vm12, %v2698_v22, %v4453_v20  ;;  %v4344_v20 = vunpack.i.h.bf16 %v6875_v61  ;;  %v2609_v38 = vsel %vm7716_vm13, %v6572_v36, %v4348_v17 }
 0x533   : > { %v4457_v31 = vpop.permute.xlu1 %4456  ;;  %v2702_v27 = vsel %vm7713_vm15, %v2700_v23, %v4338_v52  ;;  %v2888_v50 = vsel %vm7714_vm7, %v2886_v34, %v4339_v29  ;;  %v4463_v0 = vunpack.i.l.bf16 %v4462_v26  ;;  %v4343_v52 = vunpack.i.l.bf16 %v6875_v61  ;;  %vm7723_vm15 = vmmov %vm7720_vm0 }
 0x534   : > { %v4459_v11 = vunpack.i.h.bf16 %v4457_v31  ;;  %v4458_v43 = vunpack.i.l.bf16 %v4457_v31  ;;  %v6958_v44 = vpop.permute.xlu0 %4476  ;;  %v2434_v29 = vsel %vm7717_vm11, 0.0, %v4368_v41  ;;  %vm7721_vm10 = vcmask 162816   ;;  %vm7727_vm11 = vmmov %vm7719_vm4 }
 0x535   : > { %vm7722_vm12 = vmmov %vm7721_vm10  ;;  %v2611_v36 = vsel %vm7723_vm15, %v2609_v38, %v4353_v32  ;;  %vm7724_vm7 = vcmask 195584   ;;  %v4478_v46 = vunpack.i.l.bf16 %v6958_v44  ;;  %vm7726_vm13 = vcmask 228352  }
 0x536   : > { %v2704_v22 = vsel %vm7718_vm8, %v2702_v27, %v4458_v43  ;;  %v2890_v34 = vsel %vm7719_vm4, %v2888_v50, %v4459_v11  ;;  %vm7725_vm5 = vmmov %vm7724_vm7  ;;  %v4359_v11 = vunpack.i.h.bf16 %v6873_v6  ;;  %v4373_v43 = vunpack.i.l.bf16 %v6889_v25 }
 0x537   : > { %v2706_v31 = vsel %vm7721_vm10, %v2704_v22, %v4463_v0  ;;  %v2892_v23 = vsel %vm7722_vm12, %v2890_v34, %v4464_v33  ;;  %v6971_v5 = vpop.permute.xlu1 %4471  ;;  %vm7728_vm8 = vcmask 97280   ;;  %vm7729_vm4 = vmmov %vm7721_vm10  ;;  %v4363_v6 = vunpack.i.l.bf16 %v6891_v18 }
 0x538   : > { %v4482_v26 = vpop.permute.xlu0 %4481  ;;  %v4473_v61 = vunpack.i.l.bf16 %v6971_v5  ;;  %v6976_v17 = vsel %vm7724_vm7, %v2706_v31, %v4343_v52  ;;  %v2894_v41 = vsel %vm7725_vm5, %v2892_v23, %v4344_v20  ;;  %v2613_v38 = vsel %vm7728_vm8, %v2611_v36, %v4358_v8  ;;  %vm7730_vm0 = vmmov %vm7728_vm8 }
 0x539   : > { %v4484_v27 = vunpack.i.h.bf16 %v4482_v26  ;;  %v4483_v50 = vunpack.i.l.bf16 %v4482_v26  ;;  %v6981_v51 = vsel %vm7726_vm13, %v2894_v41, %v4469_v62  ;;  %v2614_v20 = vsel %vm7730_vm0, %v2612_v15, %v4359_v11  ;;  %vm7731_vm10 = vmmov %vm7725_vm5 }
 0x53a   : > { %v2436_v32 = vsel %vm7727_vm11, %v2434_v29, %v4473_v61  ;;  %v4364_v62 = vunpack.i.h.bf16 %v6891_v18  ;;  %vm7732_vm12 = vmmov %vm7727_vm11  ;;  %vm7738_vm8 = vcmask 228352   ;;  %vm7740_vm0 = vcmask 261120  }
 0x53b   : > { %v2438_v33 = vsel %vm7729_vm4, %v2436_v32, %v4478_v46  ;;  %v4487_v0 = vpop.permute.xlu1 %4486  ;;  %v2616_v23 = vsel %vm7732_vm12, %v2614_v20, %v4484_v27  ;;  %vm7733_vm15 = vmmov %vm7727_vm11  ;;  %v4389_v20 = vunpack.i.h.bf16 %v6895_v54  ;;  %vm7742_vm12 = vcmask 31744  }
 0x53c   : > { %v4492_v52 = vpop.permute.xlu0 %4491  ;;  %v4489_v22 = vunpack.i.h.bf16 %v4487_v0  ;;  %v4488_v34 = vunpack.i.l.bf16 %v4487_v0  ;;  %v6990_v31 = vsel %vm7731_vm10, %v2438_v33, %v4373_v43  ;;  %v2615_v29 = vsel %vm7733_vm15, %v2613_v38, %v4483_v50  ;;  %vm7734_vm7 = vmmov %vm7729_vm4 }
 0x53d   : > { %v4494_v8 = vunpack.i.h.bf16 %v4492_v52  ;;  %v4493_v36 = vunpack.i.l.bf16 %v4492_v52  ;;  %vm7735_vm5 = vmmov %vm7729_vm4  ;;  %v4369_v33 = vunpack.i.h.bf16 %v6880_v12  ;;  %v4374_v0 = vunpack.i.h.bf16 %v6889_v25 }
 0x53e   : > { %v2618_v26 = vsel %vm7734_vm7, %v2616_v23, %v4489_v22  ;;  %v2617_v15 = vsel %vm7735_vm5, %v2615_v29, %v4488_v34  ;;  %vm7736_vm13 = vmmov %vm7731_vm10  ;;  %v4379_v22 = vunpack.i.h.bf16 %v6897_v56  ;;  %v4388_v34 = vunpack.i.l.bf16 %v6895_v54 }
 0x53f   : > { %v2620_v46 = vsel %vm7736_vm13, %v2618_v26, %v4364_v62  ;;  %vm7737_vm11 = vmmov %vm7731_vm10  ;;  %v4502_v43 = vpop.permute.xlu1 %4501  ;;  %v4378_v23 = vunpack.i.l.bf16 %v6897_v56  ;;  %v4384_v25 = vunpack.i.h.bf16 %v6901_v37  ;;  %vm7743_vm15 = vcmask 64512  }
 0x540   : > { %v2619_v11 = vsel %vm7737_vm11, %v2617_v15, %v4363_v6  ;;  %v4504_v18 = vunpack.i.h.bf16 %v4502_v43  ;;  %v4503_v32 = vunpack.i.l.bf16 %v4502_v43  ;;  %vm7739_vm4 = vmmov %vm7738_vm8  ;;  %v4497_v38 = vpop.permute.xlu0 %4496  ;;  %v4398_v43 = vunpack.i.l.bf16 %v6903_v10  ;;  %v2638_v15 = vld [vmem:[#allocation6 + $0xc] sm:$0x3] }
 0x541   : > { %v2621_v27 = vsel %vm7738_vm8, %v2619_v11, %v4493_v36  ;;  %v2622_v50 = vsel %vm7739_vm4, %v2620_v46, %v4494_v8  ;;  %v4498_v52 = vunpack.i.l.bf16 %v4497_v38  ;;  %vm7741_vm10 = vmmov %vm7740_vm0  ;;  %v4479_v61 = vunpack.i.h.bf16 %v6958_v44 }
 0x542   : > { %v2623_v62 = vsel %vm7740_vm0, %v2621_v27, %v4503_v32  ;;  %v2624_v6 = vsel %vm7741_vm10, %v2622_v50, %v4504_v18  ;;  %v4499_v18 = vunpack.i.h.bf16 %v4497_v38  ;;  %v4474_v27 = vunpack.i.h.bf16 %v6971_v5  ;;  %vm7747_vm11 = vmmov %vm7742_vm12 }
 0x543   : > { %v3764_v8 = vpack.c.bf16 %v2623_v62, %v2623_v62  ;;  %v3765_v36 = vpack.c.bf16 %v2624_v6, %v2624_v6  ;;  %v4507_v12 = vpop.permute.xlu1 %4506  ;;  %v2513_v56 = vsel %vm7742_vm12, %v6686_v45, %v4498_v52  ;;  %vm7744_vm7 = vcmask 289793   ;;  %vm7749_vm4 = vmmov %vm7743_vm15 }
 0x544   : > { %v4508_v46 = vunpack.i.l.bf16 %v4507_v12  ;;  %v7016_v11 = vpop.permute.xlu0 %4511  ;;  %v4509_v50 = vunpack.i.h.bf16 %v4507_v12  ;;  %vm7745_vm5 = vcmask 97280   ;;  %v4409_v26 = vunpack.i.h.bf16 %v6905_v19  ;;  %vm7750_vm0 = vmmov %vm7747_vm11 }
 0x545   : > { %v2631_v32 = vrot.slane %v3764_v8, 7  ;;  %v4513_v6 = vunpack.i.l.bf16 %v7016_v11  ;;  %v2633_v41 = vrot.slane %v3765_v36, 7  ;;  %v4399_v45 = vunpack.i.h.bf16 %v6903_v10  ;;  %vm7752_vm12 = vmmov %vm7745_vm5 }
 0x546   : > { %v2515_v62 = vsel %vm7743_vm15, %v2513_v56, %v4508_v46  ;;  %v4418_v5 = vunpack.i.l.bf16 %v6915_v40  ;;  %vm7746_vm13 = vcmask 130048   ;;  %v2795_v36 = vsel %vm7747_vm11, %v6644_v1, %v4499_v18 }
 0x547   : > { %v2632_v29 = vrot.slane %v2631_v32, 4  ;;  %2637 = vst.msk [vmem:[#allocation6 + $0x8] sm:$0xe] %vm7744_vm7, %v2631_v32  ;;  %v2517_v8 = vsel %vm7745_vm5, %v2515_v62, %v4369_v33  ;;  %v4522_v38 = vpop.permute.xlu1 %4521  ;;  %vm7748_vm8 = vcmask 162816   ;;  %v2797_v56 = vsel %vm7749_vm4, %v2795_v36, %v4509_v50  ;;  %vm7756_vm7 = vmmov %vm7750_vm0 }
 0x548   : > { %v2519_v52 = vsel %vm7746_vm13, %v2517_v8, %v4474_v27  ;;  %v4517_v12 = vpop.permute.xlu0 %4516  ;;  %v2697_v40 = vsel %vm7750_vm0, %v6612_v13, %v4513_v6  ;;  %vm7751_vm10 = vcmask 195584   ;;  %v4408_v62 = vunpack.i.l.bf16 %v6905_v19  ;;  %vm7759_vm11 = vmmov %vm7748_vm8 }
 0x549   : > { %v2634_v44 = vsel %vm6062_vm6, %v2632_v29, %v2633_v41  ;;  %v2521_v46 = vsel %vm7748_vm8, %v2519_v52, %v4479_v61  ;;  %v4518_v32 = vunpack.i.l.bf16 %v4517_v12  ;;  %v7044_v39 = vsel %vm7752_vm12, 0.0, %v4398_v43  ;;  %vm7753_vm6 = vmmov %vm7749_vm4 }
 0x54a   : > { %v2639_v33 = vsel %vm6071_vm2, %v2634_v44, %v2638_v15  ;;  %v2523_v27 = vsel %vm7751_vm10, %v2521_v46, %v4374_v0  ;;  %v4404_v1 = vunpack.i.h.bf16 %v6907_v48  ;;  %v4524_v14 = vunpack.i.h.bf16 %v4522_v38  ;;  %vm7754_vm2 = vmmov %vm7745_vm5 }
 0x54b   : > { %2640 = vst [vmem:[#allocation6 + $0xc] sm:$0x3] %v2639_v33  ;;  %v2699_v61 = vsel %vm7753_vm6, %v2697_v40, %v4518_v32  ;;  %v4527_v41 = vpop.permute.xlu1 %4526  ;;  %v4523_v29 = vunpack.i.l.bf16 %v4522_v38  ;;  %vm7755_vm15 = vmmov %vm7754_vm2  ;;  %v4423_v43 = vunpack.i.l.bf16 %v6909_v53  ;;  %v2796_v52 = vsel %vm7756_vm7, %v6599_v24, %v4418_v5 }
 0x54c   : > { %v4529_v15 = vunpack.i.h.bf16 %v4527_v41  ;;  %v4528_v18 = vunpack.i.l.bf16 %v4527_v41  ;;  %v4537_v50 = vpop.permute.xlu0 %4536  ;;  %v2701_v13 = vsel %vm7754_vm2, %v2699_v61, %v4379_v22  ;;  %v2799_v0 = vsel %vm7755_vm15, %v2797_v56, %v4378_v23  ;;  %vm7757_vm5 = vmmov %vm7746_vm13 }
 0x54d   : > { %v4539_v6 = vunpack.i.h.bf16 %v4537_v50  ;;  %v4538_v8 = vunpack.i.l.bf16 %v4537_v50  ;;  %vm7758_vm13 = vmmov %vm7757_vm5  ;;  %v4514_v38 = vunpack.i.h.bf16 %v7016_v11  ;;  %v4519_v46 = vunpack.i.h.bf16 %v4517_v12 }
 0x54e   : > { %v2703_v44 = vsel %vm7757_vm5, %v2701_v13, %v4529_v15  ;;  %v2801_v36 = vsel %vm7758_vm13, %v2799_v0, %v4528_v18  ;;  %vm7760_vm4 = vmmov %vm7751_vm10  ;;  %v4429_v11 = vunpack.i.h.bf16 %v6913_v49  ;;  %v4438_v5 = vunpack.i.l.bf16 %v6917_v30 }
 0x54f   : > { %v2705_v32 = vsel %vm7759_vm11, %v2703_v44, %v4539_v6  ;;  %v2803_v22 = vsel %vm7748_vm8, %v2801_v36, %v4538_v8  ;;  %v4532_v33 = vpop.permute.xlu1 %4531  ;;  %vm7761_vm0 = vmmov %vm7760_vm4  ;;  %vm7762_vm10 = vcmask 228352   ;;  %v2798_v41 = vsel %vm7753_vm6, %v2796_v52, %v4423_v43 }
 0x550   : > { %v4534_v23 = vunpack.i.h.bf16 %v4532_v33  ;;  %v4533_v56 = vunpack.i.l.bf16 %v4532_v33  ;;  %v4547_v40 = vpop.permute.xlu0 %4546  ;;  %v7061_v53 = vsel %vm7760_vm4, %v2705_v32, %v4389_v20  ;;  %v7066_v24 = vsel %vm7761_vm0, %v2803_v22, %v4388_v34  ;;  %vm7763_vm12 = vmmov %vm7762_vm10  ;;  %v2454_v20 = vld [vmem:[#allocation6 + $0x4] sm:$0x1] }
 0x551   : > { %v2442_v12 = vsel %vm7762_vm10, %v6990_v31, %v4523_v29  ;;  %v2525_v61 = vsel %vm7763_vm12, %v2523_v27, %v4524_v14  ;;  %v4448_v15 = vunpack.i.l.bf16 %v6936_v9  ;;  %vm7764_vm2 = vcmask 261120   ;;  %vm7766_vm5 = vmmov %vm7762_vm10 }
 0x552   : > { %v2444_v18 = vsel %vm7764_vm2, %v2442_v12, %v4533_v56  ;;  %vm7765_vm15 = vmmov %vm7764_vm2  ;;  %v2981_v34 = vsel %vm7756_vm7, %v6657_v28, %v4514_v38  ;;  %v4548_v13 = vunpack.i.l.bf16 %v4547_v40  ;;  %v4439_v31 = vunpack.i.h.bf16 %v6917_v30 }
 0x553   : > { %v2527_v54 = vsel %vm7765_vm15, %v2525_v61, %v4534_v23  ;;  %v3761_v49 = vpack.c.bf16 %v2444_v18, %v2444_v18  ;;  %v4542_v0 = vpop.permute.xlu1 %4541  ;;  %v2994_v27 = vsel %vm7766_vm5, %v6934_v16, %v4438_v5  ;;  %vm7767_vm13 = vmmov %vm7753_vm6  ;;  %v4549_v29 = vunpack.i.h.bf16 %v4547_v40 }
 0x554   : > { %v3762_v50 = vpack.c.bf16 %v2527_v54, %v2527_v54  ;;  %v2983_v14 = vsel %vm7767_vm13, %v2981_v34, %v4519_v46  ;;  %v4557_v6 = vpop.permute.xlu0 %4556  ;;  %v4544_v52 = vunpack.i.h.bf16 %v4542_v0  ;;  %v4543_v44 = vunpack.i.l.bf16 %v4542_v0  ;;  %vm7769_vm8 = vmmov %vm7764_vm2 }
 0x555   : > { %v2455_v8 = vsel %vm6100_vm1, %v3761_v49, %v2454_v20  ;;  %v4434_v28 = vunpack.i.h.bf16 %v6926_v60  ;;  %v4449_v36 = vunpack.i.h.bf16 %v6936_v9  ;;  %vm7768_vm11 = vcmask 97280   ;;  %vm7770_vm4 = vmmov %vm7756_vm7 }
 0x556   : > { %v2536_v43 = vshrl.u32 %v3762_v50, 16  ;;  %2456 = vst [vmem:[#allocation6 + $0x4] sm:$0x1] %v2455_v8  ;;  %v2800_v30 = vsel %vm7768_vm11, %v2798_v41, %v4384_v25  ;;  %v4558_v16 = vunpack.i.l.bf16 %v4557_v6  ;;  %v7091_v38 = vsel %vm7769_vm8, %v2994_v27, %v4448_v15  ;;  %vm7772_vm0 = vmmov %vm7768_vm11 }
 0x557   : > { %v2514_v32 = vsel %vm7770_vm4, %v6629_v42, %v4548_v13  ;;  %v7771_v22 = vunpack.i.l.bf16 %v6901_v37  ;;  %v4552_v60 = vpop.permute.xlu1 %4551  ;;  %vm7773_vm10 = vmmov %vm7770_vm4  ;;  %v2539_v5 = vshll.u32 %v3762_v50, 16  ;;  %v7777_v42 = vunpack.i.h.bf16 %v6858_v59 }
 0x558   : > { %v2538_v46 = vrot.slane %v2536_v43, 7  ;;  %v2883_v9 = vsel %vm7773_vm10, %v6654_v21, %v4549_v29  ;;  %vm7774_vm12 = vmmov %vm7753_vm6  ;;  %v4554_v56 = vunpack.i.h.bf16 %v4552_v60  ;;  %v4553_v25 = vunpack.i.l.bf16 %v4552_v60  ;;  %v4567_v40 = vpop.permute.xlu0 %4566 }
 0x559   : > { %v2985_v33 = vsel %vm7772_vm0, %v2983_v14, %v7771_v22  ;;  %v2516_v23 = vsel %vm7774_vm12, %v2514_v32, %v4558_v16  ;;  %vm7775_vm6 = vcmask 130048   ;;  %vm7778_vm15 = vmmov %vm7772_vm0  ;;  %v4559_v41 = vunpack.i.h.bf16 %v4557_v6 }
 0x55a   : > { %v2802_v12 = vsel %vm7775_vm6, %v2800_v30, %v4544_v52  ;;  %vm7776_vm2 = vmmov %vm7775_vm6  ;;  %v2518_v37 = vsel %vm7778_vm15, %v2516_v23, %v7777_v42  ;;  %vm7780_vm5 = vcmask 162816   ;;  %v2541_v18 = vor.u32 %v2539_v5, %v2538_v46 }
 0x55b   : > { %v2987_v61 = vsel %vm7776_vm2, %v2985_v33, %v4543_v44  ;;  %vm7779_vm7 = vmmov %vm7776_vm2  ;;  %v2804_v20 = vsel %vm7780_vm5, %v2802_v12, %v4554_v56  ;;  %v4562_v34 = vpop.permute.xlu1 %4561  ;;  %v7783_v49 = vunpack.i.h.bf16 %v6899_v4  ;;  %vm7784_vm8 = vcmask 195584  }
 0x55c   : > { %v2520_v15 = vsel %vm7779_vm7, %v2518_v37, %v4429_v11  ;;  %vm7781_vm13 = vmmov %vm7780_vm5  ;;  %v7785_v13 = vunpack.i.l.bf16 %v6899_v4  ;;  %v7787_v0 = vunpack.i.h.bf16 %v6855_v7  ;;  %v4569_v27 = vunpack.i.h.bf16 %v4567_v40  ;;  %v4572_v6 = vpop.permute.xlu0 %4571 }
 0x55d   : > { %v2989_v21 = vsel %vm7781_vm13, %v2987_v61, %v4553_v25  ;;  %vm7782_vm11 = vmmov %vm7780_vm5  ;;  %v2806_v50 = vsel %vm7784_vm8, %v2804_v20, %v7783_v49  ;;  %v4564_v14 = vunpack.i.h.bf16 %v4562_v34  ;;  %v4563_v29 = vunpack.i.l.bf16 %v4562_v34  ;;  %v2549_v8 = vld [vmem:[#allocation6 + $0x4] sm:$0xf] }
 0x55e   : > { %v2522_v54 = vsel %vm7782_vm11, %v2520_v15, %v4434_v28  ;;  %vm7786_vm4 = vmmov %vm7784_vm8  ;;  %vm7789_vm10 = vcmask 228352   ;;  %v4568_v52 = vunpack.i.l.bf16 %v4567_v40  ;;  %v4574_v44 = vunpack.i.h.bf16 %v4572_v6 }
 0x55f   : > { %v2991_v59 = vsel %vm7786_vm4, %v2989_v21, %v7785_v13  ;;  %vm7788_vm0 = vmmov %vm7786_vm4  ;;  %v4573_v28 = vunpack.i.l.bf16 %v4572_v6  ;;  %v2550_v30 = vsel %vm6124_vm3, %v2541_v18, %v2549_v8  ;;  %vm7790_vm12 = vcmask 261120   ;;  %v4582_v60 = vpop.permute.xlu1 %4581  ;;  %v2735_v8 = vld [vmem:[#allocation6 + $0xc] sm:$0xe] }
 0x560   : > { %v2524_v11 = vsel %vm7788_vm0, %v2522_v54, %v7787_v0  ;;  %vm7791_vm6 = vmmov %vm7789_vm10  ;;  %2551 = vst [vmem:[#allocation6 + $0x4] sm:$0xf] %v2550_v30  ;;  %vm7793_vm15 = vcmask 64512   ;;  %v2542_v23 = vrot.slane %v2538_v46, 4  ;;  %v4577_v25 = vpop.permute.xlu0 %4576  ;;  %vm7800_vm4 = vcmask 286720  }
 0x561   : > { %v2526_v43 = vsel %vm7789_vm10, %v2524_v11, %v4439_v31  ;;  %v2709_v7 = vsel %vm7791_vm6, %v7061_v53, %v4564_v14  ;;  %vm7792_vm2 = vmmov %vm7791_vm6  ;;  %v2885_v22 = vsel %vm7793_vm15, %v2883_v9, %v4559_v41  ;;  %v4579_v5 = vunpack.i.h.bf16 %v4577_v25 }
 0x562   : > { %v2528_v4 = vsel %vm7790_vm12, %v2526_v43, %v4449_v36  ;;  %v2807_v16 = vsel %vm7792_vm2, %v7066_v24, %v4563_v29  ;;  %vm7794_vm7 = vmmov %vm7790_vm12  ;;  %v4578_v24 = vunpack.i.l.bf16 %v4577_v25  ;;  %v4584_v9 = vunpack.i.h.bf16 %v4582_v60  ;;  %v7814_v25 = vld [vmem:[#allocation30_spill] sm:$0xff] }
 0x563   : > { %v3763_v32 = vpack.c.bf16 %v2528_v4, %v2528_v4  ;;  %v2711_v31 = vsel %vm7794_vm7, %v2709_v7, %v4569_v27  ;;  %vm7795_vm5 = vmmov %vm7794_vm7  ;;  %v4583_v41 = vunpack.i.l.bf16 %v4582_v60  ;;  %v4597_v20 = vpop.permute.xlu1 %4596  ;;  %vm7801_vm0 = vcmask 289794   ;;  %v2824_v27 = vld [vmem:[#allocation6 + $0x14] sm:$0x7] }
 0x564   : > { %v2809_v33 = vsel %vm7795_vm5, %v2807_v16, %v4568_v52  ;;  %v3766_v3 = vpack.c.bf16 %v2711_v31, %v2711_v31  ;;  %vm7796_vm3 = vmmov %vm7792_vm2  ;;  %v4587_v49 = vpop.permute.xlu0 %4586  ;;  %vm7803_vm10 = vcmask 130048   ;;  %v4403_v6 = vunpack.i.l.bf16 %v6907_v48 }
 0x565   : > { %v3768_v56 = vpack.c.bf16 %v2809_v33, %v2809_v33  ;;  %v2808_v36 = vsel %vm7796_vm3, %v2806_v50, %v4574_v44  ;;  %v2544_v40 = vshll.u32 %v3763_v32, 16  ;;  %vm7797_vm13 = vmmov %vm7792_vm2  ;;  %v3773_v50 = vpack.c.bf16 %v7091_v38, %v7091_v38 }
 0x566   : > { %v2993_v53 = vsel %vm7797_vm13, %v2991_v59, %v4573_v28  ;;  %v2720_v12 = vshrl.u32 %v3766_v3, 16  ;;  %v2723_v61 = vshll.u32 %v3766_v3, 16  ;;  %vm7798_vm11 = vmmov %vm7795_vm5  ;;  %v4589_v59 = vunpack.i.h.bf16 %v4587_v49 }
 0x567   : > { %v2817_v42 = vrot.slane %v3768_v56, 6  ;;  %v2546_v37 = vsel %vm6256_vm14, %v2542_v23, %v2544_v40  ;;  %v2810_v46 = vsel %vm7798_vm11, %v2808_v36, %v4579_v5  ;;  %vm7799_vm8 = vmmov %vm7795_vm5  ;;  %vm7802_vm14 = vcmask 97280   ;;  %v4612_v52 = vpop.permute.xlu1 %4611  ;;  %v7812_v23 = vld [vmem:[#allocation29_spill] sm:$0xff] }
 0x568   : > { %v2995_v15 = vsel %vm7799_vm8, %v2993_v53, %v4578_v24  ;;  %2552 = vst.msk [vmem:[#allocation6 + $0x8] sm:$0x1] %vm7800_vm4, %v2546_v37  ;;  %v2722_v21 = vrot.slane %v2720_v12, 6  ;;  %v2725_v18 = vrot.slane %v2723_v61, 7  ;;  %v3769_v34 = vpack.c.bf16 %v2810_v46, %v2810_v46  ;;  %vm7804_vm12 = vmmov %vm7803_vm10  ;;  %v4592_v4 = vpop.permute.xlu0 %4591  ;;  %v7816_v53 = vld [vmem:[#allocation38_spill] sm:$0xff]  ;;  %v7818_v24 = vld [vmem:[#allocation40_spill] sm:$0xff] }
 0x569   : > { %v2818_v54 = vrot.slane %v2817_v42, 4  ;;  %2823 = vst.msk [vmem:[#allocation6 + $0x10] sm:$0xc] %vm7801_vm0, %v2817_v42  ;;  %v2887_v2 = vsel %vm7802_vm14, %v2885_v22, %v4399_v45  ;;  %v3772_v13 = vpack.c.bf16 %v2995_v15, %v2995_v15  ;;  %v4588_v29 = vunpack.i.l.bf16 %v4587_v49 }
 0x56a   : > { %v7143_v0 = vor.u32 %v2725_v18, %v2722_v21  ;;  %v2889_v11 = vsel %vm7803_vm10, %v2887_v2, %v4584_v9  ;;  %v2819_v14 = vrot.slane %v3769_v34, 6  ;;  %v2435_v43 = vsel %vm7804_vm12, %v7044_v39, %v4583_v41  ;;  %v3010_v39 = vld [vmem:[#allocation6 + $0x1c] sm:$0xf] }
 0x56b   : > { %v3003_v38 = vrot.slane %v3772_v13, 5  ;;  %vm7805_vm6 = vcmask 162816   ;;  %v4414_v45 = vunpack.i.h.bf16 %v6911_v47  ;;  %vm7806_vm2 = vnez %v7516_v55  ;;  %v4617_v36 = vpop.permute.xlu1 %4616 }
 0x56c   : > { %v2891_v10 = vsel %vm7805_vm6, %v2889_v11, %v4589_v59  ;;  %v2736_v44 = vsel %vm6192_vm9, %v7143_v0, %v2735_v8  ;;  %v2820_v28 = vsel %vm7806_vm2, %v2818_v54, %v2819_v14  ;;  %vm7807_vm15 = vmmov %vm7805_vm6  ;;  %v4413_v7 = vunpack.i.l.bf16 %v6911_v47  ;;  %v4602_v61 = vpop.permute.xlu0 %4601  ;;  %v7840_v47 = vld [vmem:[#allocation31_spill] sm:$0xff] }
 0x56d   : > { %v2437_v30 = vsel %vm7807_vm15, %v2435_v43, %v4588_v29  ;;  %v3005_v16 = vrot.slane %v3773_v50, 5  ;;  %2737 = vst [vmem:[#allocation6 + $0xc] sm:$0xe] %v2736_v44  ;;  %vm7808_vm7 = vnez %v7518_v35  ;;  %v3004_v22 = vrot.slane %v3003_v38, 4 }
 0x56e   : > { %v2825_v32 = vsel %vm7808_vm7, %v2820_v28, %v2824_v27  ;;  %vm7809_vm5 = vcmask 289795   ;;  %v4594_v57 = vunpack.i.h.bf16 %v4592_v4  ;;  %v4593_v31 = vunpack.i.l.bf16 %v4592_v4 }
 0x56f   : > { %3009 = vst.msk [vmem:[#allocation6 + $0x18] sm:$0x8] %vm7809_vm5, %v3003_v38  ;;  %2826 = vst [vmem:[#allocation6 + $0x14] sm:$0x7] %v2825_v32  ;;  %vm7810_vm9 = vcmask 195584   ;;  %v4468_v60 = vunpack.i.l.bf16 %v6940_v63  ;;  %vm7813_vm13 = vnez %v7812_v23  ;;  %v4599_v56 = vunpack.i.h.bf16 %v4597_v20  ;;  %v4622_v34 = vpop.permute.xlu1 %4621 }
 0x570   : > { %v2439_v55 = vsel %vm7810_vm9, %v2437_v30, %v4403_v6  ;;  %vm7811_vm3 = vmmov %vm7810_vm9  ;;  %v3006_v3 = vsel %vm7813_vm13, %v3004_v22, %v3005_v16  ;;  %v4598_v35 = vunpack.i.l.bf16 %v4597_v20  ;;  %vm7815_vm11 = vnez %v7814_v25 }
 0x571   : > { %v2893_v33 = vsel %vm7811_vm3, %v2891_v10, %v4404_v1  ;;  %v3011_v40 = vsel %vm7815_vm11, %v3006_v3, %v3010_v39  ;;  %vm7817_vm8 = vcmask 31744   ;;  %v4619_v48 = vunpack.i.h.bf16 %v4617_v36 }
 0x572   : > { %v3070_v5 = vsel %vm7817_vm8, %v7816_v53, %v4594_v57  ;;  %vm7819_vm4 = vmmov %vm7817_vm8  ;;  %3012 = vst [vmem:[#allocation6 + $0x1c] sm:$0xf] %v3011_v40  ;;  %vm7820_vm0 = vcmask 64512   ;;  %v4618_v42 = vunpack.i.l.bf16 %v4617_v36  ;;  %v4604_v9 = vunpack.i.h.bf16 %v4602_v61 }
 0x573   : > { %v3069_v12 = vsel %vm7819_vm4, %v7818_v24, %v4593_v31  ;;  %v3072_v63 = vsel %vm7820_vm0, %v3070_v5, %v4599_v56  ;;  %vm7821_vm14 = vmmov %vm7820_vm0  ;;  %v4614_v37 = vunpack.i.h.bf16 %v4612_v52  ;;  %vm7822_vm10 = vcmask 97280   ;;  %v7844_v24 = vld [vmem:[#allocation32_spill] sm:$0xff] }
 0x574   : > { %v3071_v1 = vsel %vm7821_vm14, %v3069_v12, %v4598_v35  ;;  %vm7823_vm12 = vmmov %vm7822_vm10  ;;  %v4603_v15 = vunpack.i.l.bf16 %v4602_v61  ;;  %v4613_v20 = vunpack.i.l.bf16 %v4612_v52  ;;  %vm7824_vm6 = vcmask 130048   ;;  %v4627_v52 = vpop.permute.xlu1 %4626 }
 0x575   : > { %v3073_v41 = vsel %vm7822_vm10, %v3071_v1, %v4408_v62  ;;  %v3074_v46 = vsel %vm7823_vm12, %v3072_v63, %v4409_v26  ;;  %vm7825_vm2 = vmmov %vm7824_vm6  ;;  %vm7826_vm15 = vcmask 228352   ;;  %vm7828_vm5 = vcmask 261120   ;;  %v4607_v62 = vpop.permute.xlu0 %4606 }
 0x576   : > { %v3075_v21 = vsel %vm7824_vm6, %v3073_v41, %v4618_v42  ;;  %v3076_v18 = vsel %vm7825_vm2, %v3074_v46, %v4619_v48  ;;  %v2895_v54 = vsel %vm7826_vm15, %v2893_v33, %v4604_v9  ;;  %vm7827_vm7 = vmmov %vm7826_vm15  ;;  %v4624_v2 = vunpack.i.h.bf16 %v4622_v34  ;;  %v2921_v35 = vld [vmem:[#allocation6 + $0x14] sm:$0xc] }
 0x577   : > { %v2441_v49 = vsel %vm7827_vm7, %v2439_v55, %v4603_v15  ;;  %v2897_v50 = vsel %vm7828_vm5, %v2895_v54, %v4614_v37  ;;  %v4623_v13 = vunpack.i.l.bf16 %v4622_v34  ;;  %vm7829_vm9 = vmmov %vm7828_vm5  ;;  %v4609_v26 = vunpack.i.h.bf16 %v4607_v62 }
 0x578   : > { %v2443_v19 = vsel %vm7829_vm9, %v2441_v49, %v4613_v20  ;;  %v3770_v59 = vpack.c.bf16 %v2897_v50, %v2897_v50  ;;  %v4608_v11 = vunpack.i.l.bf16 %v4607_v62  ;;  %vm7830_vm3 = vcmask 162816   ;;  %vm7832_vm11 = vmmov %vm7827_vm7  ;;  %v4632_v3 = vpop.permute.xlu1 %4631  ;;  %v4673_v20 = vld [vmem:[#allocation6 + $0x8] sm:$0xff]  }
 0x579   : > { %v3760_v27 = vpack.c.bf16 %v2443_v19, %v2443_v19  ;;  %v3077_v14 = vsel %vm7830_vm3, %v3075_v21, %v4623_v13  ;;  %vm7831_vm13 = vmmov %vm7830_vm3  ;;  %v2710_v6 = vsel %vm7832_vm11, %v6976_v17, %v4468_v60  ;;  %vm7835_vm0 = vcmask 289792   ;;  %v4637_v16 = vpop.permute.xlu0 %4636  ;;  %v7851_v13 = vld [vmem:[#allocation37_spill] sm:$0xff]  ;;  %v3107_v19 = vld [vmem:[#allocation6 + $0x1c] sm:$0x8] }
 0x57a   : > { %v3078_v29 = vsel %vm7831_vm13, %v3076_v18, %v4624_v2  ;;  %v2906_v8 = vshrl.u32 %v3770_v59, 16  ;;  %v2909_v43 = vshll.u32 %v3770_v59, 16  ;;  %vm7833_vm8 = vmmov %vm7828_vm5  ;;  %v4629_v30 = vunpack.i.h.bf16 %v4627_v52  ;;  %v7854_v59 = vld [vmem:[#allocation39_spill] sm:$0xff] }
 0x57b   : > { %v2898_v38 = vsel %vm7833_vm8, %v6981_v51, %v4609_v26  ;;  %vm7834_vm4 = vmmov %vm7828_vm5  ;;  %2453 = vst.msk [vmem:[#allocation6] sm:$0xf] %vm7835_vm0, %v3760_v27  ;;  %v4628_v4 = vunpack.i.l.bf16 %v4627_v52  ;;  %vm7836_vm14 = vcmask 195584   ;;  %v4639_v60 = vunpack.i.h.bf16 %v4637_v16 }
 0x57c   : > { %v2712_v10 = vsel %vm7834_vm4, %v2710_v6, %v4608_v11  ;;  %v3771_v44 = vpack.c.bf16 %v2898_v38, %v2898_v38  ;;  %v2908_v39 = vrot.slane %v2906_v8, 5  ;;  %v2911_v32 = vrot.slane %v2909_v43, 6  ;;  %vm7837_vm10 = vmmov %vm7836_vm14  ;;  %v4642_v1 = vpop.permute.xlu1 %4641  ;;  %v7857_v8 = vld [vmem:[#allocation34_spill] sm:$0xff] }
 0x57d   : > { %v3767_v28 = vpack.c.bf16 %v2712_v10, %v2712_v10  ;;  %v3079_v17 = vsel %vm7836_vm14, %v3077_v14, %v4413_v7  ;;  %v3080_v51 = vsel %vm7837_vm10, %v3078_v29, %v4414_v45  ;;  %vm7838_vm12 = vmmov %vm7827_vm7  ;;  %v4638_v23 = vunpack.i.l.bf16 %v4637_v16  ;;  %v4647_v7 = vpop.permute.xlu0 %4646 }
 0x57e   : > { %v2915_v22 = vshll.u32 %v3771_v44, 16  ;;  %v3081_v31 = vsel %vm7838_vm12, %v3079_v17, %v4628_v4  ;;  %vm7839_vm6 = vmmov %vm7827_vm7  ;;  %v2912_v33 = vor.u32 %v2911_v32, %v2908_v39  ;;  %v2727_v56 = vrot.slane %v7143_v0, 4  ;;  %v7847_v0 = vld [vmem:[#allocation33_spill] sm:$0xff] }
 0x57f   : > { %v2729_v57 = vshll.u32 %v3767_v28, 16  ;;  %v3082_v55 = vsel %vm7839_vm6, %v3080_v51, %v4629_v30  ;;  %vm7841_vm2 = vnez %v7840_v47  ;;  %vm7842_vm15 = vmmov %vm7834_vm4  ;;  %vm7845_vm5 = vnez %v7844_v24 }
 0x580   : > { %v2917_v36 = vrot.slane %v2915_v22, 6  ;;  %v2913_v40 = vrot.slane %v2912_v33, 4  ;;  %v2922_v45 = vsel %vm7841_vm2, %v2912_v33, %v2921_v35  ;;  %v3083_v53 = vsel %vm7842_vm15, %v3081_v31, %v4638_v23  ;;  %vm7843_vm7 = vmmov %vm7834_vm4  ;;  %v4657_v29 = vpop.permute.xlu1 %4656  ;;  %v7866_v22 = vld [vmem:[#allocation35_spill] sm:$0xff]  ;;  %v3166_v23 = vld [vmem:[#allocation6 + $0x28] sm:$0x1] }
 0x581   : > { %v2731_v25 = vrot.slane %v2729_v57, 7  ;;  %v3084_v5 = vsel %vm7843_vm7, %v3082_v55, %v4639_v60  ;;  %2923 = vst [vmem:[#allocation6 + $0x14] sm:$0xc] %v2922_v45  ;;  %v3774_v48 = vpack.c.bf16 %v3083_v53, %v3083_v53  ;;  %vm7846_vm9 = vcmask 287744   ;;  %v4652_v15 = vpop.permute.xlu0 %4651  ;;  %v7247_v45 = vld [vmem:[#allocation18] ss:$0 sm:$0xff] }
 0x582   : > { %v3775_v61 = vpack.c.bf16 %v3084_v5, %v3084_v5  ;;  %vm7848_vm3 = vnez %v7847_v0  ;;  %v4672_v42 = vld [vmem:[#allocation6] sm:$0xff]   ;;  %vm7849_vm13 = vcmask 288768   ;;  %v4634_v41 = vunpack.i.h.bf16 %v4632_v3 }
 0x583   : > { %v2732_v12 = vsel %vm7845_vm5, %v2727_v56, %v2731_v25  ;;  %v2918_v63 = vsel %vm7848_vm3, %v2913_v40, %v2917_v36  ;;  %v3092_v9 = vshll.u32 %v3774_v48, 16  ;;  %v3095_v37 = vshrl.u32 %v3774_v48, 16 }
 0x584   : > { %2738 = vst.msk [vmem:[#allocation6 + $0x10] sm:$0x3] %vm7846_vm9, %v2732_v12  ;;  %v4644_v46 = vunpack.i.h.bf16 %v4642_v1  ;;  %v4633_v21 = vunpack.i.l.bf16 %v4632_v3  ;;  %v4649_v18 = vunpack.i.h.bf16 %v4647_v7  ;;  %v4648_v54 = vunpack.i.l.bf16 %v4647_v7 }
 0x585   : > { %2924 = vst.msk [vmem:[#allocation6 + $0x18] sm:$0x7] %vm7849_vm13, %v2918_v63  ;;  %v4643_v34 = vunpack.i.l.bf16 %v4642_v1  ;;  %vm7850_vm11 = vcmask 293888   ;;  %v3094_v49 = vrot.slane %v3092_v9, 5  ;;  %v3097_v50 = vrot.slane %v3095_v37, 4 }
 0x586   : > { %3820 = vmatprep.mubr.msk.bf16.mxu1 %vm7850_vm11, %v4672_v42  ;;  %v3101_v2 = vshll.u32 %v3775_v61, 16  ;;  %vm7852_vm8 = vcmask 31744   ;;  %vm7853_vm4 = vmmov %vm7850_vm11  ;;  %vm7856_vm14 = vcmask 64512   ;;  %v4654_v27 = vunpack.i.h.bf16 %v4652_v15 }
 0x587   : > { %v3142_v62 = vsel %vm7852_vm8, %v7851_v13, %v4644_v46  ;;  %3821 = vmatmul.mubr.msk.bf16.vlgmr.msra.gmra.mrb[0].mxu1 %vm7853_vm4, %v4673_v20  ;;  %vm7855_vm0 = vmmov %vm7852_vm8  ;;  %v4653_v14 = vunpack.i.l.bf16 %v4652_v15  ;;  %v3098_v6 = vor.u32 %v3097_v50, %v3094_v49  ;;  %vm7858_vm10 = vnez %v7857_v8 }
 0x588   : > { %v3141_v26 = vsel %vm7855_vm0, %v7854_v59, %v4643_v34  ;;  %v3144_v11 = vsel %vm7856_vm14, %v3142_v62, %v4649_v18  ;;  %v3108_v43 = vsel %vm7858_vm10, %v3094_v49, %v3107_v19  ;;  %vm7859_vm12 = vmmov %vm7856_vm14  ;;  %vm7860_vm6 = vcmask 97280  }
 0x589   : > { %v3143_v38 = vsel %vm7859_vm12, %v3141_v26, %v4648_v54  ;;  %v3146_v10 = vsel %vm7860_vm6, %v3144_v11, %v4634_v41  ;;  %3109 = vst [vmem:[#allocation6 + $0x1c] sm:$0x8] %v3108_v43  ;;  %vm7861_vm2 = vmmov %vm7860_vm6  ;;  %vm7862_vm15 = vcmask 130048   ;;  %v4659_v28 = vunpack.i.h.bf16 %v4657_v29 }
 0x58a   : > { %v3145_v52 = vsel %vm7861_vm2, %v3143_v38, %v4633_v21  ;;  %v3148_v44 = vsel %vm7862_vm15, %v3146_v10, %v4654_v27  ;;  %v4658_v30 = vunpack.i.l.bf16 %v4657_v29  ;;  %v3099_v4 = vrot.slane %v3098_v6, 4  ;;  %vm7863_vm7 = vmmov %vm7862_vm15 }
 0x58b   : > { %v3103_v16 = vrot.slane %v3101_v2, 5  ;;  %v3147_v39 = vsel %vm7863_vm7, %v3145_v52, %v4653_v14  ;;  %v4674_v32 = vld [vmem:[#allocation6 + $0x10] sm:$0xff]   ;;  %vm7864_vm5 = vcmask 162816   ;;  %vm7867_vm3 = vnez %v7866_v22  ;;  %vm7870_vm8 = vmmov %vm7853_vm4 }
 0x58c   : > { %v3149_v17 = vsel %vm7864_vm5, %v3147_v39, %v4658_v30  ;;  %vm7865_vm9 = vmmov %vm7864_vm5  ;;  %vm7868_vm13 = vcmask 195584   ;;  %3824 = vmatprep.mubr.msk.bf16.mxu1 %vm7870_vm8, %v4674_v32  ;;  %vm7871_vm4 = vcmask 289792   ;;  %vm7872_vm0 = vcmask 228352  }
 0x58d   : > { %v3150_v51 = vsel %vm7865_vm9, %v3148_v44, %v4659_v28  ;;  %v3104_v57 = vsel %vm7867_vm3, %v3099_v4, %v3103_v16  ;;  %v3151_v31 = vsel %vm7868_vm13, %v3149_v17, 0.0  ;;  %vm7869_vm11 = vmmov %vm7868_vm13  ;;  %vm7874_vm10 = vcmask 261120  }
 0x58e   : > { %v3152_v55 = vsel %vm7869_vm11, %v3150_v51, 0.0  ;;  %3110 = vst.msk [vmem:[#allocation6 + $0x20] sm:$0xf] %vm7871_vm4, %v3104_v57  ;;  %v3153_v33 = vsel %vm7872_vm0, %v3151_v31, 0.0  ;;  %vm7873_vm14 = vmmov %vm7872_vm0 }
 0x58f   : > { %v3154_v60 = vsel %vm7873_vm14, %v3152_v55, 0.0  ;;  %v3155_v3 = vsel %vm7874_vm10, %v3153_v33, 0.0  ;;  %vm7875_vm12 = vmmov %vm7874_vm10 }
 0x590   : > { %v3156_v56 = vsel %vm7875_vm12, %v3154_v60, 0.0  ;;  %v3776_v35 = vpack.c.bf16 %v3155_v3, %v3155_v3  ;;  %v4675_v25 = vld [vmem:[#allocation6 + $0x18] sm:$0xff]   ;;  %vm7876_vm6 = vmmov %vm7871_vm4 }
 0x591   : > { %v3777_v36 = vpack.c.bf16 %v3156_v56, %v3156_v56  ;;  %vm7877_vm2 = vmmov %vm7870_vm8 }
 0x592   : > { %3165 = vst.msk [vmem:[#allocation6 + $0x24] sm:$0xf] %vm7876_vm6, %v3776_v35  ;;  %3825 = vmatmul.mubr.msk.bf16.gmra.mrb[4].mxu1 %vm7877_vm2, %v4675_v25  ;;  %vm7878_vm15 = vmmov %vm7877_vm2 }
 0x593   : > { %v3167_v7 = vsel %vm6100_vm1, %v3777_v36, %v3166_v23  ;;  %vm7879_vm7 = vmmov %vm7877_vm2  ;;  %vm7880_vm1 = vcmask 64512  }
 0x594   : > { %3168 = vst [vmem:[#allocation6 + $0x28] sm:$0x1] %v3167_v7  ;;  %vm7881_vm5 = vmmov %vm7880_vm1 }
 0x595   : > { %vm7882_vm9 = vmmov %vm7880_vm1 }
 0x596   : > { %vm7883_vm3 = vmmov %vm7880_vm1 }
 0x597   : > { %vm7884_vm13 = vmmov %vm7880_vm1 }
 0x598   : > { %vm7885_vm11 = vmmov %vm7880_vm1 }
 0x599   : > { %v4676_v40 = vld [vmem:[#allocation6 + $0x20] sm:$0xff]   ;;  %vm7886_vm8 = vmmov %vm7880_vm1 }
 0x59a   : > { %3828 = vmatprep.mubr.msk.bf16.mxu1 %vm7878_vm15, %v4676_v40  ;;  %vm7887_vm4 = vmmov %vm7880_vm1 }
 0x59b   : > { %v4677_v47 = vld [vmem:[#allocation6 + $0x28] ss:$0 sps:$4 sm:$0x11]   ;;  %vm7888_vm0 = vmmov %vm7880_vm1 }
 0x59c   : > { %3829 = vmatmul.mubr.msk.bf16.gmra.mrb[8].mxu1 %vm7879_vm7, %v4677_v47  ;;  %vm7889_vm14 = vmmov %vm7888_vm0 }
 0x59d   : > { %vm7890_vm10 = vmmov %vm7888_vm0 }
 0x59e   : > { %vm7891_vm12 = vmmov %vm7888_vm0 }
 0x59f   : > { %vm7892_vm6 = vmmov %vm7888_vm0 }
 0x5a0   : > { %vm7893_vm2 = vmmov %vm7888_vm0 }
 0x5a1   : > { %vm7894_vm15 = vmmov %vm7888_vm0 }
 0x5a2   : > { %vm7895_vm7 = vmmov %vm7888_vm0 }
 0x65a   : > { %v3822_v53 = vpop.f32.mrb[0].mxu1 }
 0x65b   : > { %v3290_v5 = vpop.f32.mrb[1].mxu1  ;;  %v3299_v24 = vadd.f32 %v3822_v53, %v7247_v45 }
 0x65c   : > { %v3291_v12 = vadd.f32 %v7247_v45, %v3290_v5  ;;  %v3823_v48 = vpop.f32.mrb[2].mxu1 }
 0x65d   : > { %v3293_v58 = vpop.f32.mrb[3].mxu1  ;;  %v7254_v63 = vmax.f32 %v3299_v24, 0.0  ;;  %v3302_v42 = vadd.f32 %v3823_v48, %v7247_v45 }
 0x65e   : > { %v7251_v61 = vmax.f32 %v3291_v12, 0.0  ;;  %v3294_v0 = vadd.f32 %v7247_v45, %v3293_v58 }
 0x65f   : > { %v3383_v20 = vmul.f32 %v7254_v63, %v7254_v63  ;;  %v7270_v18 = vmax.f32 %v3302_v42, 0.0  ;;  %v3350_v49 = vsel %vm7884_vm13, %v7254_v63, 0.0  ;;  %vm7899_vm13 = vmmov %vm7888_vm0 }
 0x660   : > { %v3381_v1 = vmul.f32 %v7251_v61, %v7251_v61  ;;  %v7259_v9 = vmax.f32 %v3294_v0, 0.0  ;;  %v3347_v37 = vsel %vm7880_vm1, %v7251_v61, 0.0  ;;  %vm7896_vm1 = vmmov %vm7888_vm0 }
 0x661   : > { %v3395_v19 = vsel %vm7885_vm11, %v3383_v20, 0.0  ;;  %v3384_v59 = vmul.f32 %v7270_v18, %v7270_v18  ;;  %v3352_v6 = vsel %vm7886_vm8, %v7270_v18, 0.0  ;;  %vm7901_vm11 = vmmov %vm7888_vm0 }
 0x662   : > { %v3348_v41 = vsel %vm7881_vm5, %v7259_v9, 0.0  ;;  %v3382_v46 = vmul.f32 %v7259_v9, %v7259_v9  ;;  %v3392_v21 = vsel %vm7882_vm9, %v3381_v1, 0.0  ;;  %vm3366_vm5 = vcmask 57344   ;;  %vm7897_vm9 = vmmov %vm7888_vm0 }
 0x663   : > { %v3349_v15 = vadd.f32 %v3348_v41, %v3347_v37  ;;  %v3397_v52 = vsel %vm7887_vm4, %v3384_v59, 0.0  ;;  %vm7902_vm8 = vmmov %vm7888_vm0 }
 0x664   : > { %v3393_v54 = vsel %vm7883_vm3, %v3382_v46, 0.0  ;;  %vm7898_vm3 = vmmov %vm7888_vm0 }
 0x665   : > { %v3394_v34 = vadd.f32 %v3393_v54, %v3392_v21  ;;  %v3826_v50 = vpop.f32.mrb[4].mxu1  ;;  %v3351_v2 = vadd.f32 %v3350_v49, %v3349_v15  ;;  %vm7903_vm4 = vmmov %vm7888_vm0 }
 0x666   : > { %v3315_v13 = vadd.f32 %v3826_v50, %v7247_v45  ;;  %v3306_v62 = vpop.f32.mrb[5].mxu1 }
 0x667   : > { %v3307_v26 = vadd.f32 %v7247_v45, %v3306_v62  ;;  %v3827_v11 = vpop.f32.mrb[6].mxu1  ;;  %v3396_v27 = vadd.f32 %v3395_v19, %v3394_v34  ;;  %v3353_v10 = vadd.f32 %v3352_v6, %v3351_v2 }
 0x668   : > { %v3318_v14 = vadd.f32 %v3827_v11, %v7247_v45  ;;  %v3309_v29 = vpop.f32.mrb[7].mxu1  ;;  %v7283_v8 = vmax.f32 %v3315_v13, 0.0 }
 0x669   : > { %v7285_v43 = vmax.f32 %v3307_v26, 0.0  ;;  %v3310_v38 = vadd.f32 %v7247_v45, %v3309_v29  ;;  %v3398_v16 = vadd.f32 %v3397_v52, %v3396_v27 }
 0x66a   : > { %v7295_v39 = vmax.f32 %v3318_v14, 0.0  ;;  %v3387_v32 = vmul.f32 %v7283_v8, %v7283_v8  ;;  %v3358_v33 = vsel %vm7891_vm12, %v7283_v8, 0.0  ;;  %vm7907_vm12 = vmmov %vm7888_vm0 }
 0x66b   : > { %v3354_v44 = vsel %vm7888_vm0, %v7285_v43, 0.0  ;;  %v3385_v28 = vmul.f32 %v7285_v43, %v7285_v43  ;;  %v7293_v30 = vmax.f32 %v3310_v38, 0.0 }
 0x66c   : > { %v3355_v4 = vadd.f32 %v3354_v44, %v3353_v10  ;;  %v3388_v56 = vmul.f32 %v7295_v39, %v7295_v39  ;;  %v3403_v40 = vsel %vm7893_vm2, %v3387_v32, 0.0  ;;  %v3360_v47 = vsel %vm7894_vm15, %v7295_v39, 0.0  ;;  %vm7909_vm2 = vmmov %vm7888_vm0 }
 0x66d   : > { %v3399_v17 = vsel %vm7889_vm14, %v3385_v28, 0.0  ;;  %v3356_v51 = vsel %vm7890_vm10, %v7293_v30, 0.0  ;;  %v3386_v22 = vmul.f32 %v7293_v30, %v7293_v30  ;;  %vm7905_vm14 = vmmov %vm7888_vm0 }
 0x66e   : > { %v3400_v57 = vadd.f32 %v3399_v17, %v3398_v16  ;;  %v3357_v31 = vadd.f32 %v3356_v51, %v3355_v4  ;;  %v3405_v0 = vsel %vm7895_vm7, %v3388_v56, 0.0  ;;  %v3431_v51 = vld [vmem:[#allocation19] sm:$0x1]  ;;  %vm7906_vm10 = vmmov %vm7888_vm0 }
 0x66f   : > { %v3830_v55 = vpop.f32.mrb[8].mxu1  ;;  %v3401_v60 = vsel %vm7892_vm6, %v3386_v22, 0.0  ;;  %vm7908_vm6 = vmmov %vm7888_vm0 }
 0x670   : > { %v3331_v23 = vadd.f32 %v3830_v55, %v7247_v45  ;;  %v3322_v3 = vpop.f32.mrb[9].mxu1  ;;  %v3359_v35 = vadd.f32 %v3358_v33, %v3357_v31  ;;  %v3402_v36 = vadd.f32 %v3401_v60, %v3400_v57  ;;  %v3434_v55 = vld [vmem:[#allocation21] sm:$0x1]  ;;  %v7900_v60 = vld [vmem:[#allocation36_spill] sm:$0xff]  ;;  %vm7910_vm15 = vmmov %vm7888_vm0 }
 0x671   : > { %v3323_v25 = vadd.f32 %v7247_v45, %v3322_v3  ;;  %v3831_v7 = vpop.f32.mrb[10].mxu1 }
 0x672   : > { %v3325_v53 = vpop.f32.mrb[11].mxu1  ;;  %v3404_v5 = vadd.f32 %v3403_v40, %v3402_v36  ;;  %v7314_v24 = vmax.f32 %v3331_v23, 0.0  ;;  %v3361_v58 = vadd.f32 %v3360_v47, %v3359_v35 }
 0x673   : > { %v7316_v12 = vmax.f32 %v3323_v25, 0.0  ;;  %v3326_v48 = vadd.f32 %v7247_v45, %v3325_v53 }
 0x674   : > { %v3406_v46 = vadd.f32 %v3405_v0, %v3404_v5  ;;  %v3391_v15 = vmul.f32 %v7314_v24, %v7314_v24  ;;  %v3367_v49 = vsel %vm3366_vm5, %v7314_v24, 0.0 }
 0x675   : > { %v3362_v1 = vsel %vm7896_vm1, %v7316_v12, 0.0  ;;  %v3389_v42 = vmul.f32 %v7316_v12, %v7316_v12  ;;  %v7324_v37 = vmax.f32 %v3326_v48, 0.0 }
 0x676   : > { %v3363_v41 = vadd.f32 %v3362_v1, %v3361_v58  ;;  %v3411_v62 = vsel %vm3366_vm5, %v3391_v15, 0.0 }
 0x677   : > { %v3407_v20 = vsel %vm7897_vm9, %v3389_v42, 0.0  ;;  %v3364_v45 = vsel %vm7898_vm3, %v7324_v37, 0.0  ;;  %v3390_v21 = vmul.f32 %v7324_v37, %v7324_v37 }
 0x678   : > { %v3365_v54 = vadd.f32 %v3364_v45, %v3363_v41  ;;  %v3408_v34 = vadd.f32 %v3407_v20, %v3406_v46 }
 0x679   : > { %v3409_v50 = vsel %vm7899_vm13, %v3390_v21, 0.0 }
 0x67a   : > { %v3368_v2 = vadd.f32 %v3367_v49, %v3365_v54  ;;  %v3410_v13 = vadd.f32 %v3409_v50, %v3408_v34 }
 0x67c   : > { %3369 = vadd.xlane.f32.xlu0 %v3368_v2  ;;  %v3412_v19 = vadd.f32 %v3411_v62, %v3410_v13 }
 0x67e   : > { %3413 = vadd.xlane.f32.xlu1 %v3412_v19 }
 0x709   : > { %v3370_v59 = vpop.xlane.xlu0 %3369 }
 0x70a   : > { %v3371_v26 = vrot.slane %v3370_v59, 4 }
 0x70b   : > { %v3414_v11 = vpop.xlane.xlu1 %3413 }
 0x70c   : > { %v3372_v27 = vadd.f32 %v3371_v26, %v3370_v59  ;;  %v3415_v14 = vrot.slane %v3414_v11, 4 }
 0x70e   : > { %v3373_v29 = vrot.slane %v3372_v27, 2  ;;  %v3416_v6 = vadd.f32 %v3415_v14, %v3414_v11 }
 0x710   : > { %v3374_v38 = vadd.f32 %v3373_v29, %v3372_v27  ;;  %v3417_v10 = vrot.slane %v3416_v6, 2 }
 0x712   : > { %v3418_v52 = vadd.f32 %v3417_v10, %v3416_v6  ;;  %v3375_v44 = vrot.slane %v3374_v38, 1 }
 0x714   : > { %v3376_v28 = vadd.f32 %v3375_v44, %v3374_v38  ;;  %v3419_v4 = vrot.slane %v3418_v52, 1 }
 0x716   : > { %3841 = vpush %v3376_v28  ;;  %v3420_v16 = vadd.f32 %v3419_v4, %v3418_v52 }
 0x718   : > { %3843 = vpush %v3420_v16 }
 0x747   : > { %s3842_s16 = spop %3841 }
 0x748   : > { %s3380_s13 = smul.f32 0.0015432099, %s3842_s16 }
 0x749   : > { %s3844_s18 = spop %3843 }
 0x74a   : > { %s3425_s28 = smul.f32 %s3380_s13, %s3380_s13  ;;  %v3435_v31 = vstv %s3380_s13  ;;  %s7904_s13 = sld [smem:[#allocation42_spill]] }
 0x74b   : > { %s3424_s26 = smul.f32 0.0015432099, %s3844_s18 }
 0x74d   : > { %s3426_s21 = ssub.f32 %s3424_s26, %s3425_s28  ;;  %s3484_s28 = scalar_lea.sflag [#allocation9], %s5393_s29 }
 0x74e   : > { %s4936_s26 = scalar_lea.vmem %s7352_s25, 1408 }
 0x74f   : > { %s3427_s1 = sadd.f32 1e-05, %s3426_s21  ;;  %p4937_p12 = scmp.ne.s32.totalorder %s7352_s25, %s4936_s26 }
 0x750   : > { %s7361_s18 = scalar_lea.hbm %s7904_s13, %s3847_s27  ;;  %s5043_s21 = smov [#allocation22]  }
 0x751   : > { %v3428_v32 = vstv %s3427_s1  ;;  %p4938_p1 = pnand %p4937_p12, %p7911_p13  ;;  %s4940_s1 = sshll.u32 %s5043_s21, 4  ;;  %s4941_s1 = int_to_ptr.vmem [resolvable:$false] %s4940_s1 }
 0x752   : > { %4680 = vrsqrt.f32 %v3428_v32  ;;  %p4943_p2 = scmp.lt.s32.totalorder %s7352_s25, %s4941_s1 }
 0x753   : > { %p4939_p3 = pneg %p4938_p1 }
 0x75c   : > { %v4681_v17 = vpop.eup %4680 }
 0x75d   : > { %3845 = vpush %v4681_v17 }
 0x78e   : > { %s3846_s17 = spop %3845 }
 0x78f   : > { %v3432_v22 = vstv %s3846_s17  ;;  %s4942_s17 = scalar_lea.vmem %s4941_s1, 2816 }
 0x790   : > { %v3433_v57 = vmul.f32 %v3432_v22, %v3431_v51  ;;  %p4944_p8 = scmp.lt.s32.totalorder %s4942_s17, %s4936_s26 }
 0x792   : > { %v3436_v33 = vmul.f32 %v3435_v31, %v3433_v57  ;;  %v3442_v23 = vrot.slane %v3433_v57, %v7900_v60  ;;  %p4945_p4 = por %p4944_p8, %p4943_p2 }
 0x794   : > { %v3437_v3 = vsub.f32 %v3434_v55, %v3436_v33  ;;  %v3444_v56 = vmul.f32 %v3442_v23, %v7251_v61  ;;  %v3445_v35 = vmul.f32 %v3442_v23, %v7259_v9  ;;  %v3446_v36 = vmul.f32 %v3442_v23, %v7254_v63  ;;  %p4946_p10 = pnand %p4945_p4, %p4939_p3 }
 0x795   : > { %v3447_v25 = vmul.f32 %v3442_v23, %v7270_v18  ;;  %v3448_v7 = vmul.f32 %v3442_v23, %v7285_v43  ;;  %v3449_v40 = vmul.f32 %v3442_v23, %v7293_v30  ;;  %v3450_v47 = vmul.f32 %v3442_v23, %v7283_v8 }
 0x796   : > { %v3459_v53 = vrot.slane %v3437_v3, %v7900_v60  ;;  %v3451_v5 = vmul.f32 %v3442_v23, %v7295_v39  ;;  %v3452_v61 = vmul.f32 %v3442_v23, %v7316_v12  ;;  %v3453_v9 = vmul.f32 %v3442_v23, %v7324_v37 }
 0x797   : > { %v3454_v63 = vmul.f32 %v3442_v23, %v7314_v24 }
 0x798   : > { %v3461_v18 = vadd.f32 %v3459_v53, %v3444_v56  ;;  %v3462_v48 = vadd.f32 %v3459_v53, %v3445_v35  ;;  %v3463_v43 = vadd.f32 %v3459_v53, %v3446_v36  ;;  %v3464_v58 = vadd.f32 %v3459_v53, %v3447_v25 }
 0x799   : > { %v3465_v30 = vadd.f32 %v3459_v53, %v3448_v7  ;;  %v3466_v0 = vadd.f32 %v3459_v53, %v3449_v40  ;;  %v3467_v8 = vadd.f32 %v3459_v53, %v3450_v47  ;;  %v3468_v1 = vadd.f32 %v3459_v53, %v3451_v5 }
 0x79a   : > { %v3469_v42 = vadd.f32 %v3459_v53, %v3452_v61  ;;  %v3470_v39 = vadd.f32 %v3459_v53, %v3453_v9  ;;  %v3471_v12 = vadd.f32 %v3459_v53, %v3454_v63  ;;  %3472 = vst.msk [vmem:[%s454_s22] sm:$0xff] %vm7901_vm11, %v3461_v18 }
 0x79b   : > { %3473 = vst.msk [vmem:[%s454_s22 + $0x8] sm:$0xff] %vm7902_vm8, %v3462_v48 }
 0x79c   : > { %3474 = vst.msk [vmem:[%s454_s22 + $0x10] sm:$0xff] %vm7903_vm4, %v3463_v43 }
 0x79d   : > { %3475 = vst.msk [vmem:[%s454_s22 + $0x18] sm:$0xff] %vm7888_vm0, %v3464_v58 }
 0x79e   : > { %3476 = vst.msk [vmem:[%s454_s22 + $0x20] sm:$0xff] %vm7905_vm14, %v3465_v30 }
 0x79f   : > { %3477 = vst.msk [vmem:[%s454_s22 + $0x28] sm:$0xff] %vm7906_vm10, %v3466_v0 }
 0x7a0   : > { %3478 = vst.msk [vmem:[%s454_s22 + $0x30] sm:$0xff] %vm7907_vm12, %v3467_v8 }
 0x7a1   : > { %3479 = vst.msk [vmem:[%s454_s22 + $0x38] sm:$0xff] %vm7908_vm6, %v3468_v1 }
 0x7a2   : > { %3480 = vst.msk [vmem:[%s454_s22 + $0x40] sm:$0xff] %vm7909_vm2, %v3469_v42 }
 0x7a3   : > { %3481 = vst.msk [vmem:[%s454_s22 + $0x48] sm:$0xff] %vm7910_vm15, %v3470_v39 }
 0x7a4   : > { %3482 = vst.msk [vmem:[%s454_s22 + $0x50] sm:$0x1] %vm3366_vm5, %v3471_v12 }
 0x7a5   : > { %4949 = shalt.err (!%p4946_p10)
}
 0x7a6   : > { %s4950_s14 = scalar_lea.hbm %s7361_s18, 1408  ;;  %s4954_s15 = scalar_lea.hbm %s7904_s13, 2816 }
 0x7a7   : > { %p4951_p11 = scmp.ne.s32.totalorder %s7361_s18, %s4950_s14  ;;  %p4955_p7 = scmp.lt.u32.totalorder %s7361_s18, %s7904_s13 }
 0x7a8   : > { %p4956_p6 = scmp.lt.u32.totalorder %s4954_s15, %s4950_s14  ;;  %p4958_p12 = scmp.lt.u32.totalorder %s4950_s14, %s7361_s18 }
 0x7a9   : > { %p4952_p0 = pnand %p4951_p11, %p7911_p13 }
 0x7aa   : > { %p4957_p9 = por %p4956_p6, %p4955_p7 }
 0x7ab   : > { %p4953_p5 = pneg %p4952_p0 }
 0x7ac   : > { %p4959_p1 = por %p4958_p12, %p4957_p9 }
 0x7ae   : > { %p4960_p3 = pnand %p4959_p1, %p4953_p5 }
 0x7b0   : > { %4963 = shalt.err (!%p4960_p3)
}
 0x7b1   : > { %s5044_s26 = smov 128  }
 0x7b2   : > { %3882 = dma.vmem_to_hbm [thread:$0]  (%p7911_p13), %s7352_s25, 1408, %s7361_s18, %s3484_s28, %s5044_s26, %s5044_s26, %s5038_s20  }
 0x7b3 PF: > { %s3512_s1 = sand.u32 1, %s5006_s30   ;;  %p7912_p2 = scmp.ne.s32.totalorder %s7490_s23, 0 }
 0x7b4   : > { %p7913_p8 = scmp.ge.s32.totalorder %s5018_s12, 2  ;;  %s3513_s17 = scalar_lea.sflag [#allocation9], %s3512_s1 }
 0x7b6   : > { %p3914_p4 = pnand %p7913_p8, %p7912_p2 }
 0x7b8   : > { %5001 = dma.done.wait (!%p3914_p4), %s3513_s17, 1408  }
 0x7b9   : > { %5003 = vsyncadd (!%p3914_p4), %s3513_s17, 4294965888  ;;  %p26_p10 = scmp.ge.s32.totalorder %s5314_s19, 4   ;;  %s7914_s30 = smov %s5010_s10 }
 0x7ba   : > { %s7915_s10 = smov %s5014_s11  ;;  %s7916_s11 = smov %s5325_s24 }
 0x7bb   : > { %s7917_s12 = smov %s5314_s19  ;;  %28 = sbr.rel (!%p26_p10) target bundleno = 12 (0xc), region = 258 }
 0x7c2   :  { %3518 = vsyncpa [#allocation8], 1 }
 0x7c3   :  { %3520 = vsyncpa [#allocation8 + $0x1], 1 }
 0x7c4   :  { %3521 = vsyncpa [#allocation11], 1 }
 0x7c5   :  { %3522 = vsyncpa [#allocation14], 1 }
 0x7c6   :  { %3523 = vsyncpa [#allocation17], 1 }
 0x7c7   :  { %3524 = vsyncpa [#allocation20], 1 }
 0x7c8   :  { %3525 = vsyncpa [#allocation9], 1 }
 0x7c9   :  { %3527 = vsyncpa [#allocation9 + $0x1], 1 }

</bundles_post_ra>
